<compile_context>
chip_gen: v5e
topology: v5e:2x2
jax: 0.10.0
libtpu: 0.0.40
codegen_flags: <defaults>
</compile_context>

<pallas_src>
import math
import numpy as np
import jax
import jax.numpy as jnp
from jax import lax
from jax.experimental import pallas as pl
from jax.experimental.pallas import tpu as pltpu

WINDOW_SIZE = 11
SIGMA = 1.5
C1 = 0.01 ** 2
C2 = 0.03 ** 2


def _gaussian_1d(window_size=WINDOW_SIZE, sigma=SIGMA):
    # Mirrors SSIM.gaussian (deterministic: window_size=11, sigma=1.5).
    g = np.array(
        [math.exp(-(x - window_size // 2) ** 2 / float(2 * sigma ** 2))
         for x in range(window_size)],
        dtype=np.float64,
    )
    g = g / g.sum()
    return g.astype(np.float32)


def _band_matrix(n, g1d):
    """Banded blur matrix for zero 'same' padding: band[i, j] = g[j - i + pad]."""
    k = g1d.shape[0]
    pad = k // 2
    m = np.zeros((n, n), dtype=np.float32)
    for i in range(n):
        for t in range(k):
            j = i + t - pad
            if 0 <= j < n:
                m[i, j] = g1d[t]
    return m


def _make_ssim_kernel(C):
    """Kernel closure: one grid step = one batch element, all C channels."""

    def kernel(x_ref, y_ref, kh_ref, kw_ref, o_ref):
        # x_ref / y_ref / o_ref: (C, H, W); kh_ref: (H, H); kw_ref: (W, W)
        kh = kh_ref[...]
        kw = kw_ref[...]

        def blur(p):
            # Separable Gaussian as two MXU matmuls with fp32 contraction.
            t = jnp.dot(kh, p, preferred_element_type=jnp.float32,
                        precision=lax.Precision.HIGHEST)
            return jnp.dot(t, kw, preferred_element_type=jnp.float32,
                           precision=lax.Precision.HIGHEST)

        for c in range(C):  # C is small (feat_dim); static unroll keeps dots 2-D.
            x = x_ref[c]
            y = y_ref[c]

            mu1 = blur(x)
            mu2 = blur(y)
            s11 = blur(x * x)
            s22 = blur(y * y)
            s12 = blur(x * y)

            mu1_sq = mu1 * mu1
            mu2_sq = mu2 * mu2
            mu1_mu2 = mu1 * mu2
            sigma1_sq = s11 - mu1_sq
            sigma2_sq = s22 - mu2_sq
            sigma12 = s12 - mu1_mu2

            num = (2.0 * mu1_mu2 + C1) * (2.0 * sigma12 + C2)
            den = (mu1_sq + mu2_sq + C1) * (sigma1_sq + sigma2_sq + C2)
            o_ref[c] = num * pl.reciprocal(den, approx=False)

    return kernel


def ssim_forward(img_out, img_target, bbox=None, mask=None, window_size=WINDOW_SIZE):
    """Pallas implementation of SSIM.forward. Returns ssim_map (B, C, H, W) float32."""
    img_out = img_out.astype(jnp.float32)
    img_target = img_target.astype(jnp.float32)

    if mask is not None:
        img_out = img_out * mask
        img_target = img_target * mask

    _, _, img_height, img_width = img_out.shape
    if bbox is not None:
        # TODO(synk): host-side int() mirrors the torch code; traced bbox values
        # (under jit) would need a static-shape formulation instead.
        xmin, ymin, width, height = [int(v) for v in bbox[0]]
        xmin = max(xmin, 0)
        ymin = max(ymin, 0)
        xmax = min(xmin + width, img_width)
        ymax = min(ymin + height, img_height)
        img_out = img_out[:, :, ymin:ymax, xmin:xmax]
        img_target = img_target[:, :, ymin:ymax, xmin:xmax]

    B, C, H, W = img_out.shape
    g1d = _gaussian_1d(window_size, SIGMA)
    kh = jnp.asarray(_band_matrix(H, g1d))       # (H, H): vertical blur (left mult)
    kw = jnp.asarray(_band_matrix(W, g1d).T)     # (W, W): horizontal blur (right mult)

    kernel = _make_ssim_kernel(C)

    ssim_map = pl.pallas_call(
        kernel,
        out_shape=jax.ShapeDtypeStruct((B, C, H, W), jnp.float32),
        grid_spec=pltpu.PrefetchScalarGridSpec(
            num_scalar_prefetch=0,
            grid=(B,),
            in_specs=[
                pl.BlockSpec((None, C, H, W), lambda b: (b, 0, 0, 0)),
                pl.BlockSpec((None, C, H, W), lambda b: (b, 0, 0, 0)),
                pl.BlockSpec((H, H), lambda b: (0, 0)),
                pl.BlockSpec((W, W), lambda b: (0, 0)),
            ],
            out_specs=pl.BlockSpec((None, C, H, W), lambda b: (b, 0, 0, 0)),
        ),
        compiler_params=pltpu.CompilerParams(
            dimension_semantics=("parallel",)),
    )(img_out, img_target, kh, kw)
    return ssim_map


def _ssim_reference_numpy(img_out, img_target, window_size=WINDOW_SIZE):
    """Independent float64 numpy reference (direct 121-tap zero-padded blur)."""
    g = _gaussian_1d(window_size, SIGMA).astype(np.float64)
    w2d = np.outer(g, g)
    x = img_out.astype(np.float64)
    y = img_target.astype(np.float64)
    _, _, H, W = x.shape
    pad = window_size // 2

    def blur(a):
        ap = np.pad(a, ((0, 0), (0, 0), (pad, pad), (pad, pad)))
        out = np.zeros_like(a)
        for ky in range(window_size):
            for kx in range(window_size):
                out += w2d[ky, kx] * ap[:, :, ky:ky + H, kx:kx + W]
        return out

    mu1, mu2 = blur(x), blur(y)
    mu1_sq, mu2_sq, mu1_mu2 = mu1 * mu1, mu2 * mu2, mu1 * mu2
    sigma1_sq = blur(x * x) - mu1_sq
    sigma2_sq = blur(y * y) - mu2_sq
    sigma12 = blur(x * y) - mu1_mu2
    return ((2 * mu1_mu2 + C1) * (2 * sigma12 + C2)
            / ((mu1_sq + mu2_sq + C1) * (sigma1_sq + sigma2_sq + C2)))


if __name__ == "__main__":
    key = jax.random.PRNGKey(0)
    k1, k2 = jax.random.split(key)
    # Small shapes consistent with the module: batch=2, feat_dim=4, 16x16 images.
    img_out = jax.random.uniform(k1, (2, 4, 16, 16), dtype=jnp.float32)
    img_target = jax.random.uniform(k2, (2, 4, 16, 16), dtype=jnp.float32)

    ssim_map = ssim_forward(img_out, img_target)
    jax.block_until_ready(ssim_map)

    ref = _ssim_reference_numpy(np.asarray(img_out), np.asarray(img_target))
    np.testing.assert_allclose(np.asarray(ssim_map), ref, rtol=1e-3, atol=1e-4)

    print("KERNEL_OK")
</pallas_src>

<mosaic_0001>
module attributes {stable_mosaic.version = 11 : i64} {
  func.func @kernel(%arg0: i32, %arg1: memref<1x4x16x16xf32, #tpu.memory_space<vmem>>, %arg2: memref<1x4x16x16xf32, #tpu.memory_space<vmem>>, %arg3: memref<16x16xf32, #tpu.memory_space<vmem>>, %arg4: memref<16x16xf32, #tpu.memory_space<vmem>>, %arg5: memref<1x4x16x16xf32, #tpu.memory_space<vmem>>) attributes {dimension_semantics = [#tpu.dimension_semantics<parallel>], iteration_bounds = array<i64: 2>, scalar_prefetch = 0 : i64, scratch_operands = 0 : i64, tpu.core_type = #tpu.core_type<tc>, window_params = [{transform_indices = @transform_0, window_bounds = array<i64: 1, 4, 16, 16>}, {transform_indices = @transform_1, window_bounds = array<i64: 1, 4, 16, 16>}, {pipeline_mode = #tpu.pipeline_mode<synchronous>, transform_indices = @transform_2, window_bounds = array<i64: 16, 16>}, {pipeline_mode = #tpu.pipeline_mode<synchronous>, transform_indices = @transform_3, window_bounds = array<i64: 16, 16>}, {transform_indices = @transform_4, window_bounds = array<i64: 1, 4, 16, 16>}]} {
    %c0 = arith.constant 0 : index
    %c0_0 = arith.constant 0 : index
    %0 = vector.load %arg3[%c0, %c0_0] : memref<16x16xf32, #tpu.memory_space<vmem>>, vector<16x16xf32>
    %c0_1 = arith.constant 0 : index
    %c0_2 = arith.constant 0 : index
    %1 = vector.load %arg4[%c0_1, %c0_2] : memref<16x16xf32, #tpu.memory_space<vmem>>, vector<16x16xf32>
    %c0_3 = arith.constant 0 : index
    %c0_4 = arith.constant 0 : index
    %c0_5 = arith.constant 0 : index
    %c0_6 = arith.constant 0 : index
    %2 = vector.load %arg1[%c0_3, %c0_4, %c0_5, %c0_6] : memref<1x4x16x16xf32, #tpu.memory_space<vmem>>, vector<1x1x16x16xf32>
    %3 = vector.shape_cast %2 : vector<1x1x16x16xf32> to vector<16x16xf32>
    %c0_7 = arith.constant 0 : index
    %c0_8 = arith.constant 0 : index
    %c0_9 = arith.constant 0 : index
    %c0_10 = arith.constant 0 : index
    %4 = vector.load %arg2[%c0_7, %c0_8, %c0_9, %c0_10] : memref<1x4x16x16xf32, #tpu.memory_space<vmem>>, vector<1x1x16x16xf32>
    %5 = vector.shape_cast %4 : vector<1x1x16x16xf32> to vector<16x16xf32>
    %cst = arith.constant dense<0.000000e+00> : vector<16x16xf32>
    %6 = tpu.matmul %0, %3, %cst {dimension_numbers = #tpu.dot_dimension_numbers<[1], [0], [0], [1], [0, 0, 1, 1], [], []>, precision = #tpu.contract_precision<fp32>} : vector<16x16xf32>, vector<16x16xf32>, vector<16x16xf32> -> vector<16x16xf32>
    %cst_11 = arith.constant dense<0.000000e+00> : vector<16x16xf32>
    %7 = tpu.matmul %6, %1, %cst_11 {dimension_numbers = #tpu.dot_dimension_numbers<[1], [0], [0], [1], [0, 0, 1, 1], [], []>, precision = #tpu.contract_precision<fp32>} : vector<16x16xf32>, vector<16x16xf32>, vector<16x16xf32> -> vector<16x16xf32>
    %cst_12 = arith.constant dense<0.000000e+00> : vector<16x16xf32>
    %8 = tpu.matmul %0, %5, %cst_12 {dimension_numbers = #tpu.dot_dimension_numbers<[1], [0], [0], [1], [0, 0, 1, 1], [], []>, precision = #tpu.contract_precision<fp32>} : vector<16x16xf32>, vector<16x16xf32>, vector<16x16xf32> -> vector<16x16xf32>
    %cst_13 = arith.constant dense<0.000000e+00> : vector<16x16xf32>
    %9 = tpu.matmul %8, %1, %cst_13 {dimension_numbers = #tpu.dot_dimension_numbers<[1], [0], [0], [1], [0, 0, 1, 1], [], []>, precision = #tpu.contract_precision<fp32>} : vector<16x16xf32>, vector<16x16xf32>, vector<16x16xf32> -> vector<16x16xf32>
    %10 = arith.mulf %3, %3 : vector<16x16xf32>
    %cst_14 = arith.constant dense<0.000000e+00> : vector<16x16xf32>
    %11 = tpu.matmul %0, %10, %cst_14 {dimension_numbers = #tpu.dot_dimension_numbers<[1], [0], [0], [1], [0, 0, 1, 1], [], []>, precision = #tpu.contract_precision<fp32>} : vector<16x16xf32>, vector<16x16xf32>, vector<16x16xf32> -> vector<16x16xf32>
    %cst_15 = arith.constant dense<0.000000e+00> : vector<16x16xf32>
    %12 = tpu.matmul %11, %1, %cst_15 {dimension_numbers = #tpu.dot_dimension_numbers<[1], [0], [0], [1], [0, 0, 1, 1], [], []>, precision = #tpu.contract_precision<fp32>} : vector<16x16xf32>, vector<16x16xf32>, vector<16x16xf32> -> vector<16x16xf32>
    %13 = arith.mulf %5, %5 : vector<16x16xf32>
    %cst_16 = arith.constant dense<0.000000e+00> : vector<16x16xf32>
    %14 = tpu.matmul %0, %13, %cst_16 {dimension_numbers = #tpu.dot_dimension_numbers<[1], [0], [0], [1], [0, 0, 1, 1], [], []>, precision = #tpu.contract_precision<fp32>} : vector<16x16xf32>, vector<16x16xf32>, vector<16x16xf32> -> vector<16x16xf32>
    %cst_17 = arith.constant dense<0.000000e+00> : vector<16x16xf32>
    %15 = tpu.matmul %14, %1, %cst_17 {dimension_numbers = #tpu.dot_dimension_numbers<[1], [0], [0], [1], [0, 0, 1, 1], [], []>, precision = #tpu.contract_precision<fp32>} : vector<16x16xf32>, vector<16x16xf32>, vector<16x16xf32> -> vector<16x16xf32>
    %16 = arith.mulf %3, %5 : vector<16x16xf32>
    %cst_18 = arith.constant dense<0.000000e+00> : vector<16x16xf32>
    %17 = tpu.matmul %0, %16, %cst_18 {dimension_numbers = #tpu.dot_dimension_numbers<[1], [0], [0], [1], [0, 0, 1, 1], [], []>, precision = #tpu.contract_precision<fp32>} : vector<16x16xf32>, vector<16x16xf32>, vector<16x16xf32> -> vector<16x16xf32>
    %cst_19 = arith.constant dense<0.000000e+00> : vector<16x16xf32>
    %18 = tpu.matmul %17, %1, %cst_19 {dimension_numbers = #tpu.dot_dimension_numbers<[1], [0], [0], [1], [0, 0, 1, 1], [], []>, precision = #tpu.contract_precision<fp32>} : vector<16x16xf32>, vector<16x16xf32>, vector<16x16xf32> -> vector<16x16xf32>
    %19 = arith.mulf %7, %7 : vector<16x16xf32>
    %20 = arith.mulf %9, %9 : vector<16x16xf32>
    %21 = arith.mulf %7, %9 : vector<16x16xf32>
    %22 = arith.subf %12, %19 : vector<16x16xf32>
    %23 = arith.subf %15, %20 : vector<16x16xf32>
    %24 = arith.subf %18, %21 : vector<16x16xf32>
    %cst_20 = arith.constant 2.000000e+00 : f32
    %25 = vector.broadcast %cst_20 : f32 to vector<16x16xf32>
    %26 = arith.mulf %25, %21 : vector<16x16xf32>
    %cst_21 = arith.constant 9.99999974E-5 : f32
    %27 = vector.broadcast %cst_21 : f32 to vector<16x16xf32>
    %28 = arith.addf %26, %27 : vector<16x16xf32>
    %cst_22 = arith.constant 2.000000e+00 : f32
    %29 = vector.broadcast %cst_22 : f32 to vector<16x16xf32>
    %30 = arith.mulf %29, %24 : vector<16x16xf32>
    %cst_23 = arith.constant 8.99999984E-4 : f32
    %31 = vector.broadcast %cst_23 : f32 to vector<16x16xf32>
    %32 = arith.addf %30, %31 : vector<16x16xf32>
    %33 = arith.mulf %28, %32 : vector<16x16xf32>
    %34 = arith.addf %19, %20 : vector<16x16xf32>
    %cst_24 = arith.constant 9.99999974E-5 : f32
    %35 = vector.broadcast %cst_24 : f32 to vector<16x16xf32>
    %36 = arith.addf %34, %35 : vector<16x16xf32>
    %37 = arith.addf %22, %23 : vector<16x16xf32>
    %cst_25 = arith.constant 8.99999984E-4 : f32
    %38 = vector.broadcast %cst_25 : f32 to vector<16x16xf32>
    %39 = arith.addf %37, %38 : vector<16x16xf32>
    %40 = arith.mulf %36, %39 : vector<16x16xf32>
    %41 = tpu.reciprocal %40 : vector<16x16xf32> -> vector<16x16xf32>
    %42 = arith.mulf %33, %41 : vector<16x16xf32>
    %c0_26 = arith.constant 0 : index
    %c0_27 = arith.constant 0 : index
    %c0_28 = arith.constant 0 : index
    %c0_29 = arith.constant 0 : index
    %43 = vector.load %arg5[%c0_26, %c0_27, %c0_28, %c0_29] : memref<1x4x16x16xf32, #tpu.memory_space<vmem>>, vector<1x1x16x16xf32>
    %44 = vector.shape_cast %43 : vector<1x1x16x16xf32> to vector<16x16xf32>
    %45 = vector.shape_cast %42 : vector<16x16xf32> to vector<1x1x16x16xf32>
    tpu.vector_store %arg5[%c0_26, %c0_27, %c0_28, %c0_29], %45 {strides = array<i32>} : memref<1x4x16x16xf32, #tpu.memory_space<vmem>>, vector<1x1x16x16xf32>,
    %c0_30 = arith.constant 0 : index
    %c1 = arith.constant 1 : index
    %c0_31 = arith.constant 0 : index
    %c0_32 = arith.constant 0 : index
    %46 = vector.load %arg1[%c0_30, %c1, %c0_31, %c0_32] : memref<1x4x16x16xf32, #tpu.memory_space<vmem>>, vector<1x1x16x16xf32>
    %47 = vector.shape_cast %46 : vector<1x1x16x16xf32> to vector<16x16xf32>
    %c0_33 = arith.constant 0 : index
    %c1_34 = arith.constant 1 : index
    %c0_35 = arith.constant 0 : index
    %c0_36 = arith.constant 0 : index
    %48 = vector.load %arg2[%c0_33, %c1_34, %c0_35, %c0_36] : memref<1x4x16x16xf32, #tpu.memory_space<vmem>>, vector<1x1x16x16xf32>
    %49 = vector.shape_cast %48 : vector<1x1x16x16xf32> to vector<16x16xf32>
    %cst_37 = arith.constant dense<0.000000e+00> : vector<16x16xf32>
    %50 = tpu.matmul %0, %47, %cst_37 {dimension_numbers = #tpu.dot_dimension_numbers<[1], [0], [0], [1], [0, 0, 1, 1], [], []>, precision = #tpu.contract_precision<fp32>} : vector<16x16xf32>, vector<16x16xf32>, vector<16x16xf32> -> vector<16x16xf32>
    %cst_38 = arith.constant dense<0.000000e+00> : vector<16x16xf32>
    %51 = tpu.matmul %50, %1, %cst_38 {dimension_numbers = #tpu.dot_dimension_numbers<[1], [0], [0], [1], [0, 0, 1, 1], [], []>, precision = #tpu.contract_precision<fp32>} : vector<16x16xf32>, vector<16x16xf32>, vector<16x16xf32> -> vector<16x16xf32>
    %cst_39 = arith.constant dense<0.000000e+00> : vector<16x16xf32>
    %52 = tpu.matmul %0, %49, %cst_39 {dimension_numbers = #tpu.dot_dimension_numbers<[1], [0], [0], [1], [0, 0, 1, 1], [], []>, precision = #tpu.contract_precision<fp32>} : vector<16x16xf32>, vector<16x16xf32>, vector<16x16xf32> -> vector<16x16xf32>
    %cst_40 = arith.constant dense<0.000000e+00> : vector<16x16xf32>
    %53 = tpu.matmul %52, %1, %cst_40 {dimension_numbers = #tpu.dot_dimension_numbers<[1], [0], [0], [1], [0, 0, 1, 1], [], []>, precision = #tpu.contract_precision<fp32>} : vector<16x16xf32>, vector<16x16xf32>, vector<16x16xf32> -> vector<16x16xf32>
    %54 = arith.mulf %47, %47 : vector<16x16xf32>
    %cst_41 = arith.constant dense<0.000000e+00> : vector<16x16xf32>
    %55 = tpu.matmul %0, %54, %cst_41 {dimension_numbers = #tpu.dot_dimension_numbers<[1], [0], [0], [1], [0, 0, 1, 1], [], []>, precision = #tpu.contract_precision<fp32>} : vector<16x16xf32>, vector<16x16xf32>, vector<16x16xf32> -> vector<16x16xf32>
    %cst_42 = arith.constant dense<0.000000e+00> : vector<16x16xf32>
    %56 = tpu.matmul %55, %1, %cst_42 {dimension_numbers = #tpu.dot_dimension_numbers<[1], [0], [0], [1], [0, 0, 1, 1], [], []>, precision = #tpu.contract_precision<fp32>} : vector<16x16xf32>, vector<16x16xf32>, vector<16x16xf32> -> vector<16x16xf32>
    %57 = arith.mulf %49, %49 : vector<16x16xf32>
    %cst_43 = arith.constant dense<0.000000e+00> : vector<16x16xf32>
    %58 = tpu.matmul %0, %57, %cst_43 {dimension_numbers = #tpu.dot_dimension_numbers<[1], [0], [0], [1], [0, 0, 1, 1], [], []>, precision = #tpu.contract_precision<fp32>} : vector<16x16xf32>, vector<16x16xf32>, vector<16x16xf32> -> vector<16x16xf32>
    %cst_44 = arith.constant dense<0.000000e+00> : vector<16x16xf32>
    %59 = tpu.matmul %58, %1, %cst_44 {dimension_numbers = #tpu.dot_dimension_numbers<[1], [0], [0], [1], [0, 0, 1, 1], [], []>, precision = #tpu.contract_precision<fp32>} : vector<16x16xf32>, vector<16x16xf32>, vector<16x16xf32> -> vector<16x16xf32>
    %60 = arith.mulf %47, %49 : vector<16x16xf32>
    %cst_45 = arith.constant dense<0.000000e+00> : vector<16x16xf32>
    %61 = tpu.matmul %0, %60, %cst_45 {dimension_numbers = #tpu.dot_dimension_numbers<[1], [0], [0], [1], [0, 0, 1, 1], [], []>, precision = #tpu.contract_precision<fp32>} : vector<16x16xf32>, vector<16x16xf32>, vector<16x16xf32> -> vector<16x16xf32>
    %cst_46 = arith.constant dense<0.000000e+00> : vector<16x16xf32>
    %62 = tpu.matmul %61, %1, %cst_46 {dimension_numbers = #tpu.dot_dimension_numbers<[1], [0], [0], [1], [0, 0, 1, 1], [], []>, precision = #tpu.contract_precision<fp32>} : vector<16x16xf32>, vector<16x16xf32>, vector<16x16xf32> -> vector<16x16xf32>
    %63 = arith.mulf %51, %51 : vector<16x16xf32>
    %64 = arith.mulf %53, %53 : vector<16x16xf32>
    %65 = arith.mulf %51, %53 : vector<16x16xf32>
    %66 = arith.subf %56, %63 : vector<16x16xf32>
    %67 = arith.subf %59, %64 : vector<16x16xf32>
    %68 = arith.subf %62, %65 : vector<16x16xf32>
    %cst_47 = arith.constant 2.000000e+00 : f32
    %69 = vector.broadcast %cst_47 : f32 to vector<16x16xf32>
    %70 = arith.mulf %69, %65 : vector<16x16xf32>
    %cst_48 = arith.constant 9.99999974E-5 : f32
    %71 = vector.broadcast %cst_48 : f32 to vector<16x16xf32>
    %72 = arith.addf %70, %71 : vector<16x16xf32>
    %cst_49 = arith.constant 2.000000e+00 : f32
    %73 = vector.broadcast %cst_49 : f32 to vector<16x16xf32>
    %74 = arith.mulf %73, %68 : vector<16x16xf32>
    %cst_50 = arith.constant 8.99999984E-4 : f32
    %75 = vector.broadcast %cst_50 : f32 to vector<16x16xf32>
    %76 = arith.addf %74, %75 : vector<16x16xf32>
    %77 = arith.mulf %72, %76 : vector<16x16xf32>
    %78 = arith.addf %63, %64 : vector<16x16xf32>
    %cst_51 = arith.constant 9.99999974E-5 : f32
    %79 = vector.broadcast %cst_51 : f32 to vector<16x16xf32>
    %80 = arith.addf %78, %79 : vector<16x16xf32>
    %81 = arith.addf %66, %67 : vector<16x16xf32>
    %cst_52 = arith.constant 8.99999984E-4 : f32
    %82 = vector.broadcast %cst_52 : f32 to vector<16x16xf32>
    %83 = arith.addf %81, %82 : vector<16x16xf32>
    %84 = arith.mulf %80, %83 : vector<16x16xf32>
    %85 = tpu.reciprocal %84 : vector<16x16xf32> -> vector<16x16xf32>
    %86 = arith.mulf %77, %85 : vector<16x16xf32>
    %c0_53 = arith.constant 0 : index
    %c1_54 = arith.constant 1 : index
    %c0_55 = arith.constant 0 : index
    %c0_56 = arith.constant 0 : index
    %87 = vector.load %arg5[%c0_53, %c1_54, %c0_55, %c0_56] : memref<1x4x16x16xf32, #tpu.memory_space<vmem>>, vector<1x1x16x16xf32>
    %88 = vector.shape_cast %87 : vector<1x1x16x16xf32> to vector<16x16xf32>
    %89 = vector.shape_cast %86 : vector<16x16xf32> to vector<1x1x16x16xf32>
    tpu.vector_store %arg5[%c0_53, %c1_54, %c0_55, %c0_56], %89 {strides = array<i32>} : memref<1x4x16x16xf32, #tpu.memory_space<vmem>>, vector<1x1x16x16xf32>,
    %c0_57 = arith.constant 0 : index
    %c2 = arith.constant 2 : index
    %c0_58 = arith.constant 0 : index
    %c0_59 = arith.constant 0 : index
    %90 = vector.load %arg1[%c0_57, %c2, %c0_58, %c0_59] : memref<1x4x16x16xf32, #tpu.memory_space<vmem>>, vector<1x1x16x16xf32>
    %91 = vector.shape_cast %90 : vector<1x1x16x16xf32> to vector<16x16xf32>
    %c0_60 = arith.constant 0 : index
    %c2_61 = arith.constant 2 : index
    %c0_62 = arith.constant 0 : index
    %c0_63 = arith.constant 0 : index
    %92 = vector.load %arg2[%c0_60, %c2_61, %c0_62, %c0_63] : memref<1x4x16x16xf32, #tpu.memory_space<vmem>>, vector<1x1x16x16xf32>
    %93 = vector.shape_cast %92 : vector<1x1x16x16xf32> to vector<16x16xf32>
    %cst_64 = arith.constant dense<0.000000e+00> : vector<16x16xf32>
    %94 = tpu.matmul %0, %91, %cst_64 {dimension_numbers = #tpu.dot_dimension_numbers<[1], [0], [0], [1], [0, 0, 1, 1], [], []>, precision = #tpu.contract_precision<fp32>} : vector<16x16xf32>, vector<16x16xf32>, vector<16x16xf32> -> vector<16x16xf32>
    %cst_65 = arith.constant dense<0.000000e+00> : vector<16x16xf32>
    %95 = tpu.matmul %94, %1, %cst_65 {dimension_numbers = #tpu.dot_dimension_numbers<[1], [0], [0], [1], [0, 0, 1, 1], [], []>, precision = #tpu.contract_precision<fp32>} : vector<16x16xf32>, vector<16x16xf32>, vector<16x16xf32> -> vector<16x16xf32>
    %cst_66 = arith.constant dense<0.000000e+00> : vector<16x16xf32>
    %96 = tpu.matmul %0, %93, %cst_66 {dimension_numbers = #tpu.dot_dimension_numbers<[1], [0], [0], [1], [0, 0, 1, 1], [], []>, precision = #tpu.contract_precision<fp32>} : vector<16x16xf32>, vector<16x16xf32>, vector<16x16xf32> -> vector<16x16xf32>
    %cst_67 = arith.constant dense<0.000000e+00> : vector<16x16xf32>
    %97 = tpu.matmul %96, %1, %cst_67 {dimension_numbers = #tpu.dot_dimension_numbers<[1], [0], [0], [1], [0, 0, 1, 1], [], []>, precision = #tpu.contract_precision<fp32>} : vector<16x16xf32>, vector<16x16xf32>, vector<16x16xf32> -> vector<16x16xf32>
    %98 = arith.mulf %91, %91 : vector<16x16xf32>
    %cst_68 = arith.constant dense<0.000000e+00> : vector<16x16xf32>
    %99 = tpu.matmul %0, %98, %cst_68 {dimension_numbers = #tpu.dot_dimension_numbers<[1], [0], [0], [1], [0, 0, 1, 1], [], []>, precision = #tpu.contract_precision<fp32>} : vector<16x16xf32>, vector<16x16xf32>, vector<16x16xf32> -> vector<16x16xf32>
    %cst_69 = arith.constant dense<0.000000e+00> : vector<16x16xf32>
    %100 = tpu.matmul %99, %1, %cst_69 {dimension_numbers = #tpu.dot_dimension_numbers<[1], [0], [0], [1], [0, 0, 1, 1], [], []>, precision = #tpu.contract_precision<fp32>} : vector<16x16xf32>, vector<16x16xf32>, vector<16x16xf32> -> vector<16x16xf32>
    %101 = arith.mulf %93, %93 : vector<16x16xf32>
    %cst_70 = arith.constant dense<0.000000e+00> : vector<16x16xf32>
    %102 = tpu.matmul %0, %101, %cst_70 {dimension_numbers = #tpu.dot_dimension_numbers<[1], [0], [0], [1], [0, 0, 1, 1], [], []>, precision = #tpu.contract_precision<fp32>} : vector<16x16xf32>, vector<16x16xf32>, vector<16x16xf32> -> vector<16x16xf32>
    %cst_71 = arith.constant dense<0.000000e+00> : vector<16x16xf32>
    %103 = tpu.matmul %102, %1, %cst_71 {dimension_numbers = #tpu.dot_dimension_numbers<[1], [0], [0], [1], [0, 0, 1, 1], [], []>, precision = #tpu.contract_precision<fp32>} : vector<16x16xf32>, vector<16x16xf32>, vector<16x16xf32> -> vector<16x16xf32>
    %104 = arith.mulf %91, %93 : vector<16x16xf32>
    %cst_72 = arith.constant dense<0.000000e+00> : vector<16x16xf32>
    %105 = tpu.matmul %0, %104, %cst_72 {dimension_numbers = #tpu.dot_dimension_numbers<[1], [0], [0], [1], [0, 0, 1, 1], [], []>, precision = #tpu.contract_precision<fp32>} : vector<16x16xf32>, vector<16x16xf32>, vector<16x16xf32> -> vector<16x16xf32>
    %cst_73 = arith.constant dense<0.000000e+00> : vector<16x16xf32>
    %106 = tpu.matmul %105, %1, %cst_73 {dimension_numbers = #tpu.dot_dimension_numbers<[1], [0], [0], [1], [0, 0, 1, 1], [], []>, precision = #tpu.contract_precision<fp32>} : vector<16x16xf32>, vector<16x16xf32>, vector<16x16xf32> -> vector<16x16xf32>
    %107 = arith.mulf %95, %95 : vector<16x16xf32>
    %108 = arith.mulf %97, %97 : vector<16x16xf32>
    %109 = arith.mulf %95, %97 : vector<16x16xf32>
    %110 = arith.subf %100, %107 : vector<16x16xf32>
    %111 = arith.subf %103, %108 : vector<16x16xf32>
    %112 = arith.subf %106, %109 : vector<16x16xf32>
    %cst_74 = arith.constant 2.000000e+00 : f32
    %113 = vector.broadcast %cst_74 : f32 to vector<16x16xf32>
    %114 = arith.mulf %113, %109 : vector<16x16xf32>
    %cst_75 = arith.constant 9.99999974E-5 : f32
    %115 = vector.broadcast %cst_75 : f32 to vector<16x16xf32>
    %116 = arith.addf %114, %115 : vector<16x16xf32>
    %cst_76 = arith.constant 2.000000e+00 : f32
    %117 = vector.broadcast %cst_76 : f32 to vector<16x16xf32>
    %118 = arith.mulf %117, %112 : vector<16x16xf32>
    %cst_77 = arith.constant 8.99999984E-4 : f32
    %119 = vector.broadcast %cst_77 : f32 to vector<16x16xf32>
    %120 = arith.addf %118, %119 : vector<16x16xf32>
    %121 = arith.mulf %116, %120 : vector<16x16xf32>
    %122 = arith.addf %107, %108 : vector<16x16xf32>
    %cst_78 = arith.constant 9.99999974E-5 : f32
    %123 = vector.broadcast %cst_78 : f32 to vector<16x16xf32>
    %124 = arith.addf %122, %123 : vector<16x16xf32>
    %125 = arith.addf %110, %111 : vector<16x16xf32>
    %cst_79 = arith.constant 8.99999984E-4 : f32
    %126 = vector.broadcast %cst_79 : f32 to vector<16x16xf32>
    %127 = arith.addf %125, %126 : vector<16x16xf32>
    %128 = arith.mulf %124, %127 : vector<16x16xf32>
    %129 = tpu.reciprocal %128 : vector<16x16xf32> -> vector<16x16xf32>
    %130 = arith.mulf %121, %129 : vector<16x16xf32>
    %c0_80 = arith.constant 0 : index
    %c2_81 = arith.constant 2 : index
    %c0_82 = arith.constant 0 : index
    %c0_83 = arith.constant 0 : index
    %131 = vector.load %arg5[%c0_80, %c2_81, %c0_82, %c0_83] : memref<1x4x16x16xf32, #tpu.memory_space<vmem>>, vector<1x1x16x16xf32>
    %132 = vector.shape_cast %131 : vector<1x1x16x16xf32> to vector<16x16xf32>
    %133 = vector.shape_cast %130 : vector<16x16xf32> to vector<1x1x16x16xf32>
    tpu.vector_store %arg5[%c0_80, %c2_81, %c0_82, %c0_83], %133 {strides = array<i32>} : memref<1x4x16x16xf32, #tpu.memory_space<vmem>>, vector<1x1x16x16xf32>,
    %c0_84 = arith.constant 0 : index
    %c3 = arith.constant 3 : index
    %c0_85 = arith.constant 0 : index
    %c0_86 = arith.constant 0 : index
    %134 = vector.load %arg1[%c0_84, %c3, %c0_85, %c0_86] : memref<1x4x16x16xf32, #tpu.memory_space<vmem>>, vector<1x1x16x16xf32>
    %135 = vector.shape_cast %134 : vector<1x1x16x16xf32> to vector<16x16xf32>
    %c0_87 = arith.constant 0 : index
    %c3_88 = arith.constant 3 : index
    %c0_89 = arith.constant 0 : index
    %c0_90 = arith.constant 0 : index
    %136 = vector.load %arg2[%c0_87, %c3_88, %c0_89, %c0_90] : memref<1x4x16x16xf32, #tpu.memory_space<vmem>>, vector<1x1x16x16xf32>
    %137 = vector.shape_cast %136 : vector<1x1x16x16xf32> to vector<16x16xf32>
    %cst_91 = arith.constant dense<0.000000e+00> : vector<16x16xf32>
    %138 = tpu.matmul %0, %135, %cst_91 {dimension_numbers = #tpu.dot_dimension_numbers<[1], [0], [0], [1], [0, 0, 1, 1], [], []>, precision = #tpu.contract_precision<fp32>} : vector<16x16xf32>, vector<16x16xf32>, vector<16x16xf32> -> vector<16x16xf32>
    %cst_92 = arith.constant dense<0.000000e+00> : vector<16x16xf32>
    %139 = tpu.matmul %138, %1, %cst_92 {dimension_numbers = #tpu.dot_dimension_numbers<[1], [0], [0], [1], [0, 0, 1, 1], [], []>, precision = #tpu.contract_precision<fp32>} : vector<16x16xf32>, vector<16x16xf32>, vector<16x16xf32> -> vector<16x16xf32>
    %cst_93 = arith.constant dense<0.000000e+00> : vector<16x16xf32>
    %140 = tpu.matmul %0, %137, %cst_93 {dimension_numbers = #tpu.dot_dimension_numbers<[1], [0], [0], [1], [0, 0, 1, 1], [], []>, precision = #tpu.contract_precision<fp32>} : vector<16x16xf32>, vector<16x16xf32>, vector<16x16xf32> -> vector<16x16xf32>
    %cst_94 = arith.constant dense<0.000000e+00> : vector<16x16xf32>
    %141 = tpu.matmul %140, %1, %cst_94 {dimension_numbers = #tpu.dot_dimension_numbers<[1], [0], [0], [1], [0, 0, 1, 1], [], []>, precision = #tpu.contract_precision<fp32>} : vector<16x16xf32>, vector<16x16xf32>, vector<16x16xf32> -> vector<16x16xf32>
    %142 = arith.mulf %135, %135 : vector<16x16xf32>
    %cst_95 = arith.constant dense<0.000000e+00> : vector<16x16xf32>
    %143 = tpu.matmul %0, %142, %cst_95 {dimension_numbers = #tpu.dot_dimension_numbers<[1], [0], [0], [1], [0, 0, 1, 1], [], []>, precision = #tpu.contract_precision<fp32>} : vector<16x16xf32>, vector<16x16xf32>, vector<16x16xf32> -> vector<16x16xf32>
    %cst_96 = arith.constant dense<0.000000e+00> : vector<16x16xf32>
    %144 = tpu.matmul %143, %1, %cst_96 {dimension_numbers = #tpu.dot_dimension_numbers<[1], [0], [0], [1], [0, 0, 1, 1], [], []>, precision = #tpu.contract_precision<fp32>} : vector<16x16xf32>, vector<16x16xf32>, vector<16x16xf32> -> vector<16x16xf32>
    %145 = arith.mulf %137, %137 : vector<16x16xf32>
    %cst_97 = arith.constant dense<0.000000e+00> : vector<16x16xf32>
    %146 = tpu.matmul %0, %145, %cst_97 {dimension_numbers = #tpu.dot_dimension_numbers<[1], [0], [0], [1], [0, 0, 1, 1], [], []>, precision = #tpu.contract_precision<fp32>} : vector<16x16xf32>, vector<16x16xf32>, vector<16x16xf32> -> vector<16x16xf32>
    %cst_98 = arith.constant dense<0.000000e+00> : vector<16x16xf32>
    %147 = tpu.matmul %146, %1, %cst_98 {dimension_numbers = #tpu.dot_dimension_numbers<[1], [0], [0], [1], [0, 0, 1, 1], [], []>, precision = #tpu.contract_precision<fp32>} : vector<16x16xf32>, vector<16x16xf32>, vector<16x16xf32> -> vector<16x16xf32>
    %148 = arith.mulf %135, %137 : vector<16x16xf32>
    %cst_99 = arith.constant dense<0.000000e+00> : vector<16x16xf32>
    %149 = tpu.matmul %0, %148, %cst_99 {dimension_numbers = #tpu.dot_dimension_numbers<[1], [0], [0], [1], [0, 0, 1, 1], [], []>, precision = #tpu.contract_precision<fp32>} : vector<16x16xf32>, vector<16x16xf32>, vector<16x16xf32> -> vector<16x16xf32>
    %cst_100 = arith.constant dense<0.000000e+00> : vector<16x16xf32>
    %150 = tpu.matmul %149, %1, %cst_100 {dimension_numbers = #tpu.dot_dimension_numbers<[1], [0], [0], [1], [0, 0, 1, 1], [], []>, precision = #tpu.contract_precision<fp32>} : vector<16x16xf32>, vector<16x16xf32>, vector<16x16xf32> -> vector<16x16xf32>
    %151 = arith.mulf %139, %139 : vector<16x16xf32>
    %152 = arith.mulf %141, %141 : vector<16x16xf32>
    %153 = arith.mulf %139, %141 : vector<16x16xf32>
    %154 = arith.subf %144, %151 : vector<16x16xf32>
    %155 = arith.subf %147, %152 : vector<16x16xf32>
    %156 = arith.subf %150, %153 : vector<16x16xf32>
    %cst_101 = arith.constant 2.000000e+00 : f32
    %157 = vector.broadcast %cst_101 : f32 to vector<16x16xf32>
    %158 = arith.mulf %157, %153 : vector<16x16xf32>
    %cst_102 = arith.constant 9.99999974E-5 : f32
    %159 = vector.broadcast %cst_102 : f32 to vector<16x16xf32>
    %160 = arith.addf %158, %159 : vector<16x16xf32>
    %cst_103 = arith.constant 2.000000e+00 : f32
    %161 = vector.broadcast %cst_103 : f32 to vector<16x16xf32>
    %162 = arith.mulf %161, %156 : vector<16x16xf32>
    %cst_104 = arith.constant 8.99999984E-4 : f32
    %163 = vector.broadcast %cst_104 : f32 to vector<16x16xf32>
    %164 = arith.addf %162, %163 : vector<16x16xf32>
    %165 = arith.mulf %160, %164 : vector<16x16xf32>
    %166 = arith.addf %151, %152 : vector<16x16xf32>
    %cst_105 = arith.constant 9.99999974E-5 : f32
    %167 = vector.broadcast %cst_105 : f32 to vector<16x16xf32>
    %168 = arith.addf %166, %167 : vector<16x16xf32>
    %169 = arith.addf %154, %155 : vector<16x16xf32>
    %cst_106 = arith.constant 8.99999984E-4 : f32
    %170 = vector.broadcast %cst_106 : f32 to vector<16x16xf32>
    %171 = arith.addf %169, %170 : vector<16x16xf32>
    %172 = arith.mulf %168, %171 : vector<16x16xf32>
    %173 = tpu.reciprocal %172 : vector<16x16xf32> -> vector<16x16xf32>
    %174 = arith.mulf %165, %173 : vector<16x16xf32>
    %c0_107 = arith.constant 0 : index
    %c3_108 = arith.constant 3 : index
    %c0_109 = arith.constant 0 : index
    %c0_110 = arith.constant 0 : index
    %175 = vector.load %arg5[%c0_107, %c3_108, %c0_109, %c0_110] : memref<1x4x16x16xf32, #tpu.memory_space<vmem>>, vector<1x1x16x16xf32>
    %176 = vector.shape_cast %175 : vector<1x1x16x16xf32> to vector<16x16xf32>
    %177 = vector.shape_cast %174 : vector<16x16xf32> to vector<1x1x16x16xf32>
    tpu.vector_store %arg5[%c0_107, %c3_108, %c0_109, %c0_110], %177 {strides = array<i32>} : memref<1x4x16x16xf32, #tpu.memory_space<vmem>>, vector<1x1x16x16xf32>,
    return
  }
  func.func @transform_0(%arg0: i32) -> (i32, i32, i32, i32) {
    %c0_i32 = arith.constant 0 : i32
    %c0_i32_0 = arith.constant 0 : i32
    %c0_i32_1 = arith.constant 0 : i32
    %c0_i32_2 = arith.constant 0 : i32
    return %arg0, %c0_i32, %c0_i32_0, %c0_i32_1 : i32, i32, i32, i32
  }
  func.func @transform_1(%arg0: i32) -> (i32, i32, i32, i32) {
    %c0_i32 = arith.constant 0 : i32
    %c0_i32_0 = arith.constant 0 : i32
    %c0_i32_1 = arith.constant 0 : i32
    %c0_i32_2 = arith.constant 0 : i32
    return %arg0, %c0_i32, %c0_i32_0, %c0_i32_1 : i32, i32, i32, i32
  }
  func.func @transform_2(%arg0: i32) -> (i32, i32) {
    %c0_i32 = arith.constant 0 : i32
    %c0_i32_0 = arith.constant 0 : i32
    %c0_i32_1 = arith.constant 0 : i32
    return %c0_i32, %c0_i32_0 : i32, i32
  }
  func.func @transform_3(%arg0: i32) -> (i32, i32) {
    %c0_i32 = arith.constant 0 : i32
    %c0_i32_0 = arith.constant 0 : i32
    %c0_i32_1 = arith.constant 0 : i32
    return %c0_i32, %c0_i32_0 : i32, i32
  }
  func.func @transform_4(%arg0: i32) -> (i32, i32, i32, i32) {
    %c0_i32 = arith.constant 0 : i32
    %c0_i32_0 = arith.constant 0 : i32
    %c0_i32_1 = arith.constant 0 : i32
    %c0_i32_2 = arith.constant 0 : i32
    return %arg0, %c0_i32, %c0_i32_0, %c0_i32_1 : i32, i32, i32, i32
  }
}

</mosaic_0001>

<bundles_post_ra>
// kernel: tpu_custom_call.1
= control target key start
LH: loop header
LB: loop body
LE: loop exit
PB: predicated region body
PF: predicated region fallthrough
CT: control target
= control target key end

     0   :  { %s10298_s0 = inlined_call_operand.hbm [shape: f32[2,4,16,16], index: 0, kind: input, shape index: {}]   ;;  %s10299_s1 = inlined_call_operand.hbm [shape: f32[2,4,16,16], index: 1, kind: input, shape index: {}]   ;;  %s10300_s2 = inlined_call_operand.hbm [shape: f32[16,16], index: 2, kind: input, shape index: {}]   ;;  %s10301_s3 = inlined_call_operand.hbm [shape: f32[16,16], index: 3, kind: input, shape index: {}]   ;;  %s10302_s4 = inlined_call_operand.hbm [shape: f32[2,4,16,16], index: 4, kind: output, shape index: {}]  }
   0x1   :  { %10312 = sst [smem:[#allocation44_spill]] %s10298_s0 }
   0x2   :  { %10313 = sst [smem:[#allocation45_spill]] %s10300_s2 }
   0x3   :  { %10314 = sst [smem:[#allocation46_spill]] %s10301_s3 }
   0x4   :  { %9 = vsyncpa [#allocation3], 0 }
   0x5   :  { %11 = vsyncpa [#allocation3 + $0x1], 0 }
   0x6   :  { %12 = vsyncpa [#allocation6], 0 }
   0x7   :  { %14 = vsyncpa [#allocation6 + $0x1], 0 }
   0x8   :  { %15 = vsyncpa [#allocation9], 0 }
   0x9   :  { %16 = vsyncpa [#allocation4], 0 }
   0xa   :  { %18 = vsyncpa [#allocation4 + $0x1], 0  ;;  %s8832_s15 = smov 0   ;;  %s8834_s16 = smov 0  }
   0xb   :  { %s8836_s17 = smov 0   ;;  %s8838_s18 = smov 0  }
   0xc LB: > { %s8853_s19 = sadd.s32 4294967295, %s8799_s18   ;;  %s8460_s20 = sadd.s32 4294967294, %s8799_s18   ;;  %s8799_s18 = sphi %s8838_s18, %s10497_s18   ;;  %s8795_s17 = sphi %s8836_s17, %s10496_s17   ;;  %s8791_s16 = sphi %s8834_s16, %s10495_s16   ;;  %s8787_s15 = sphi %s8832_s15, %s10494_s15  }
   0xd   : > { %p44_p0 = scmp.ne.s32.totalorder %s8791_s16, %s8787_s15  ;;  %p45_p1 = scmp.eq.s32.totalorder %s8853_s19, 0 }
   0xe   : > { %p136_p2 = scmp.eq.s32.totalorder %s8853_s19, 1  ;;  %p142_p3 = scmp.eq.s32.totalorder %s8460_s20, 1 }
   0xf   : > { %p8862_p4 = por %p45_p1, %p44_p0  ;;  %p8461_p5 = scmp.ge.s32.totalorder %s8799_s18, 1 }
  0x10   : > { %p8867_p6 = por %p142_p3, %p44_p0  ;;  %p149_p7 = scmp.lt.s32.totalorder %s8799_s18, 3 }
  0x11   : > { %s10317_s2 = sld [smem:[#allocation45_spill]]  ;;  %s8801_s27 = smov [#allocation7]  }
  0x12   : > { %p8875_p8 = pnand %p8461_p5, %p149_p7  ;;  %s162_s28 = sshll.u32 %s8801_s27, 4  ;;  %s163_s28 = int_to_ptr.vmem [resolvable:$true] %s162_s28 }
  0x13   : > { %s10319_s3 = sld [smem:[#allocation46_spill]]  ;;  %s10303_s6 = smov 128  }
  0x14   : > { %p8517_p9 = pneg %p8875_p8  ;;  %s10305_s7 = smov 8  }
  0x15   : > { %s8804_s8 = smov [#allocation8]   ;;  %s8894_s10 = sadd.s32 1, %s8799_s18  }
  0x16   : > { %p8518_p10 = pnand %p8517_p9, %p45_p1  ;;  %s176_s9 = sshll.u32 %s8804_s8, 4  ;;  %s177_s9 = int_to_ptr.vmem [resolvable:$true] %s176_s9 }
  0x17   : > { %s160_s25 = sshll.u32 %s10317_s2, 4  ;;  %s31_s11 = sadd.s32 1, %s8795_s17  ;;  %s161_s25 = int_to_ptr.hbm [resolvable:$true] %s160_s25 }
  0x18   : > { %8520 = dma.hbm_to_vmem [thread:$0]  (!%p8518_p10), %s161_s25, 256, %s163_s28, [#allocation6], %s10303_s6, %s10303_s6, %s10305_s7  }
  0x19   : > { %s174_s5 = sshll.u32 %s10319_s3, 4  ;;  %s28_s12 = ssub.s32 %s8799_s18, %s8894_s10  ;;  %s175_s5 = int_to_ptr.hbm [resolvable:$true] %s174_s5 }
  0x1a   : > { %8523 = dma.hbm_to_vmem [thread:$0]  (!%p8518_p10), %s175_s5, 256, %s177_s9, [#allocation9], %s10303_s6, %s10303_s6, %s10305_s7  }
  0x1b   : > { %p38_p12 = scmp.ne.s32.totalorder %s8795_s17, %s8791_s16  ;;  %p29_p13 = scmp.eq.s32.totalorder %s28_s12, 0 }
  0x1c   : > { %p39_p0 = scmp.eq.s32.totalorder %s8799_s18, 0  ;;  %p8537_p5 = scmp.lt.s32.totalorder %s8799_s18, 2 }
  0x1d   : > { %p8904_p3 = por %p136_p2, %p38_p12  ;;  %s190_s20 = sand.u32 1, %s8795_s17  }
  0x1e   : > { %s8910_s14 = scalar_select %p29_p13, %s8795_s17, %s31_s11  }
  0x1f   : > { %p40_p7 = por %p39_p0, %p38_p12  ;;  %s8913_s23 = sshll.u32 %s190_s20, 6 }
  0x20   : > { %s8500_s24 = sshll.u32 %s8799_s18, 6  ;;  %s10321_s0 = sld [smem:[#allocation44_spill]] }
  0x21   : > { %s194_s29 = scalar_lea.vmem [#allocation2], %s8913_s23  ;;  %p8920_p2 = pnand %p8537_p5, %p40_p7 }
  0x22   : > { %s202_s30 = sshll.u32 %s194_s29, 4  ;;  %s221_s12 = scalar_lea.hbm %s10299_s1, %s8500_s24  ;;  %s203_s30 = int_to_ptr.vmem [resolvable:$true] %s202_s30 }
  0x23   : > { %s222_s6 = sshll.u32 %s221_s12, 4  ;;  %s191_s7 = scalar_lea.sflag [#allocation3], %s190_s20  ;;  %s223_s6 = int_to_ptr.hbm [resolvable:$true] %s222_s6 }
  0x24   : > { %p8665_p10 = pneg %p8920_p2 }
  0x26   : > { %s199_s28 = scalar_lea.hbm %s10321_s0, %s8500_s24  ;;  %s8668_s29 = scalar_lea.hbm %s10321_s0, 128 }
  0x27   : > { %s200_s5 = sshll.u32 %s199_s28, 4  ;;  %s201_s5 = int_to_ptr.hbm [resolvable:$true] %s200_s5 }
  0x28   : > { %s8661_s2 = sshra.s32 %s201_s5, 4  ;;  %s8662_s2 = int_to_ptr.hbm [resolvable:$true] %s8661_s2 }
  0x29   : > { %s8663_s25 = scalar_lea.hbm %s8662_s2, 64  ;;  %p8669_p0 = scmp.lt.s32.totalorder %s8662_s2, %s10321_s0 }
  0x2a   : > { %p8664_p9 = scmp.ne.s32.totalorder %s8662_s2, %s8663_s25  ;;  %p8670_p5 = scmp.lt.s32.totalorder %s8668_s29, %s8663_s25 }
  0x2c   : > { %p8666_p12 = pnand %p8665_p10, %p8664_p9  ;;  %p8671_p7 = por %p8670_p5, %p8669_p0 }
  0x2e   : > { %p8667_p13 = pneg %p8666_p12 }
  0x30   : > { %p8672_p11 = pnand %p8671_p7, %p8667_p13 }
  0x32   : > { %8675 = shalt.err (!%p8672_p11)
}
  0x33   : > { %s10323_s20 = smov 8   ;;  %s10324_s24 = smov 128  }
  0x34   : > { %8527 = dma.hbm_to_vmem [thread:$0]  (!%p8920_p2), %s201_s5, 1024, %s203_s30, %s191_s7, %s10324_s24, %s10324_s24, %s10323_s20  }
  0x35   : > { %s216_s12 = scalar_lea.vmem [#allocation5], %s8913_s23  ;;  %s212_s28 = sand.u32 1, %s8799_s18  }
  0x36   : > { %s224_s27 = sshll.u32 %s216_s12, 4  ;;  %s213_s9 = scalar_lea.sflag [#allocation6], %s212_s28  ;;  %s225_s27 = int_to_ptr.vmem [resolvable:$true] %s224_s27 }
  0x37   : > { %s8691_s2 = sshra.s32 %s223_s6, 4  ;;  %s8698_s0 = scalar_lea.hbm %s10299_s1, 128  ;;  %s8692_s2 = int_to_ptr.hbm [resolvable:$true] %s8691_s2 }
  0x38   : > { %s8693_s25 = scalar_lea.hbm %s8692_s2, 64  ;;  %p8699_p13 = scmp.lt.s32.totalorder %s8692_s2, %s10299_s1 }
  0x39   : > { %p8694_p9 = scmp.ne.s32.totalorder %s8692_s2, %s8693_s25  ;;  %p8700_p0 = scmp.lt.s32.totalorder %s8698_s0, %s8693_s25 }
  0x3b   : > { %p8696_p11 = pnand %p8694_p9, %p8665_p10  ;;  %p8701_p5 = por %p8700_p0, %p8699_p13 }
  0x3d   : > { %p8697_p12 = pneg %p8696_p11 }
  0x3f   : > { %p8702_p7 = pnand %p8701_p5, %p8697_p12 }
  0x41   : > { %8705 = shalt.err (!%p8702_p7)
}
  0x42   : > { %8530 = dma.hbm_to_vmem [thread:$0]  (!%p8920_p2), %s223_s6, 1024, %s225_s27, %s213_s9, %s10324_s24, %s10324_s24, %s10323_s20  }
  0x43   : > { %236 = sbr.rel (%p8875_p8) target bundleno = 3904 (0xf40), region = 36 }
  0x48   : > { %s8962_s23 = sand.u32 1, %s8791_s16  }
  0x49   : > { %s8965_s3 = sshll.u32 %s8962_s23, 6  ;;  %s239_s0 = scalar_lea.sflag [#allocation3], %s8962_s23 }
  0x4a   : > { %s8969_s30 = scalar_lea.vmem [#allocation2], %s8965_s3 }
  0x4b   : > { %8766 = dma.done.wait (%p8862_p4), %s239_s0, 1024  }
  0x4c   : > { %8768 = vsyncadd (%p8862_p4), %s239_s0, 4294966272  ;;  %s248_s26 = sand.u32 1, %s8853_s19   ;;  %s8977_s5 = scalar_lea.vmem [#allocation5], %s8965_s3 }
  0x4d   : > { %s249_s6 = scalar_lea.sflag [#allocation6], %s248_s26 }
  0x4e   : > { %8770 = dma.done.wait (%p8862_p4), %s249_s6, 1024  }
  0x4f   : > { %8772 = vsyncadd (%p8862_p4), %s249_s6, 4294966272 }
  0x50   : > { %8774 = dma.done.wait (%p45_p1), [#allocation6], 256  }
  0x51   : > { %8776 = vsyncadd (%p45_p1), [#allocation6], 4294967040 }
  0x52   : > { %8778 = dma.done.wait (%p45_p1), [#allocation9], 256  }
  0x53   : > { %8780 = vsyncadd (%p45_p1), [#allocation9], 4294967040  ;;  %vm301_vm0 = vcmask 130048   ;;  %v8992_v0 = vld [vmem:[%s8969_s30 + $0x8] sm:$0xff]  ;;  %v8995_v1 = vld [vmem:[%s8969_s30] sm:$0xff]  ;;  %s9398_s21 = scalar_lea.vmem [#allocation10], %s8965_s3 }
  0x54   : > { %v322_v2 = vand.u32 4294901760, %v8992_v0  ;;  %v324_v3 = vand.u32 4294901760, %v8995_v1  ;;  %v293_v4 = vld [vmem:[#allocation7] sm:$0xff]  ;;  %v294_v5 = vld [vmem:[#allocation7 + $0x8] sm:$0xff]  ;;  %v296_v12 = vld [vmem:[#allocation8 + $0x8] sm:$0xff]  ;;  %s8502_s8 = sshll.u32 %s8853_s19, 6 }
  0x55   : > { %v303_v6 = vsel %vm301_vm0, %v293_v4, 0  ;;  %v306_v7 = vsel %vm301_vm0, %v294_v5, 0  ;;  %v9016_v20 = vand.u32 4294901760, %v296_v12  ;;  %v295_v28 = vld [vmem:[#allocation8] sm:$0xff]  ;;  %v9076_v43 = vld [vmem:[%s8977_s5 + $0x8] sm:$0xff]  ;;  %v9081_v50 = vld [vmem:[%s8977_s5] sm:$0xff]  ;;  %s8341_s12 = scalar_lea.hbm %s10302_s4, %s8502_s8 }
  0x56   : > { %v358_v8 = vsub.f32 %v8992_v0, %v322_v2  ;;  %323 = vmatpush.msra.mxu0 %v322_v2  ;;  %v364_v9 = vsub.f32 %v8995_v1, %v324_v3  ;;  %424 = vmatpush.msra.mxu3 %v322_v2  ;;  %v9003_v10 = vand.u32 4294901760, %v303_v6  ;;  %v9005_v11 = vand.u32 4294901760, %v306_v7  ;;  %s8342_s19 = sshll.u32 %s9398_s21, 4  ;;  %s8344_s27 = sshll.u32 %s8341_s12, 4  ;;  %s8343_s19 = int_to_ptr.vmem [resolvable:$true] %s8342_s19  ;;  %s8345_s27 = int_to_ptr.hbm [resolvable:$true] %s8344_s27 }
  0x57   : > { %v9044_v29 = vsub.f32 %v296_v12, %v9016_v20  ;;  %v9046_v30 = vand.u32 4294901760, %v295_v28  ;;  %v708_v45 = vand.u32 4294901760, %v9076_v43  ;;  %v710_v54 = vand.u32 4294901760, %v9081_v50  ;;  %s8330_s28 = scalar_lea.sflag [#allocation4], %s8962_s23  ;;  %s8735_s9 = sshra.s32 %s8345_s27, 4  ;;  %s8736_s9 = int_to_ptr.hbm [resolvable:$true] %s8735_s9 }
  0x58   : > { %394 = vmatpush.msra.mxu2 %v358_v8  ;;  %v9008_v13 = vsub.f32 %v303_v6, %v9003_v10  ;;  %325 = vmatpush.msra.mxu0 %v324_v3  ;;  %v359_v14 = vand.u32 4294901760, %v358_v8  ;;  %v365_v15 = vand.u32 4294901760, %v364_v9  ;;  %v9011_v16 = vsub.f32 %v306_v7, %v9005_v11  ;;  %s8737_s2 = scalar_lea.hbm %s8736_s9, 64  ;;  %s8741_s11 = scalar_lea.hbm %s10302_s4, 128 }
  0x59   : > { %426 = vmatpush.msra.mxu3 %v324_v3  ;;  %v9049_v31 = vand.u32 4294901760, %v9044_v29  ;;  %v9052_v32 = vsub.f32 %v295_v28, %v9046_v30  ;;  %v744_v48 = vsub.f32 %v9076_v43, %v708_v45  ;;  %v750_v60 = vsub.f32 %v9081_v50, %v710_v54  ;;  %p8738_p1 = scmp.ne.s32.totalorder %s8736_s9, %s8737_s2  ;;  %p8742_p2 = scmp.lt.s32.totalorder %s8736_s9, %s10302_s4 }
  0x5a   : > { %397 = vmatpush.msra.mxu2 %v364_v9  ;;  %v360_v17 = vsub.f32 %v358_v8, %v359_v14  ;;  %v9014_v18 = vand.u32 4294901760, %v9008_v13  ;;  %457 = vmatpush.msrb.mxu0 %v359_v14  ;;  %v366_v19 = vsub.f32 %v364_v9, %v365_v15  ;;  %v9023_v24 = vand.u32 4294901760, %v9011_v16  ;;  %p8743_p10 = scmp.lt.s32.totalorder %s8741_s11, %s8737_s2 }
  0x5b   : > { %400 = vmatmul.f32.vlgmr.msra.gmra.mxu2 %v9008_v13  ;;  %v556_v33 = vsub.f32 %v9044_v29, %v9049_v31  ;;  %v9060_v34 = vand.u32 4294901760, %v9052_v32  ;;  %v745_v49 = vand.u32 4294901760, %v744_v48  ;;  %v751_v63 = vand.u32 4294901760, %v750_v60  ;;  %p8739_p4 = pnand %p8738_p1, %p8904_p3 }
  0x5c   : > { %v361_v21 = vand.u32 4294901760, %v360_v17  ;;  %v329_v22 = vsub.f32 %v9008_v13, %v9014_v18  ;;  %430 = vmatmul.f32.vlgmr.msra.gmra.mxu3 %v9014_v18  ;;  %v367_v23 = vand.u32 4294901760, %v366_v19  ;;  %461 = vmatpush.msrb.mxu0 %v365_v15  ;;  %v337_v26 = vsub.f32 %v9011_v16, %v9023_v24  ;;  %p8744_p9 = por %p8743_p10, %p8742_p2 }
  0x5d   : > { %519 = vmatpush.msrb.mxu2 %v9016_v20  ;;  %v9064_v35 = vand.u32 4294901760, %v556_v33  ;;  %v562_v36 = vsub.f32 %v9052_v32, %v9060_v34  ;;  %v746_v53 = vsub.f32 %v744_v48, %v745_v49  ;;  %v752_v4 = vsub.f32 %v750_v60, %v751_v63  ;;  %p8740_p8 = pneg %p8739_p4 }
  0x5e   : > { %362 = vmatpush.msra.mxu1 %v361_v21  ;;  %v9026_v25 = vand.u32 4294901760, %v329_v22  ;;  %v9033_v27 = vand.u32 4294901760, %v337_v26 }
  0x5f   : > { %521 = vmatpush.msrb.mxu2 %v9046_v30  ;;  %558 = vmatpush.msrb.mxu3 %v9064_v35  ;;  %v9070_v37 = vand.u32 4294901760, %v562_v36  ;;  %v747_v59 = vand.u32 4294901760, %v746_v53  ;;  %v753_v7 = vand.u32 4294901760, %v752_v4  ;;  %p8745_p11 = pnand %p8744_p9, %p8740_p8 }
  0x60   : > { %331 = vmatmul.f32.vlgmr.msra.gmra.mxu0 %v9026_v25  ;;  %368 = vmatpush.msra.mxu1 %v367_v23 }
  0x61   : > { %370 = vmatmul.f32.vlgmr.msra.gmra.mxu1 %v9003_v10  ;;  %590 = vmatpush.msra.mxu0 %v9044_v29 }
  0x62   : > { %486 = vmatpush.msrb.mxu1 %v322_v2  ;;  %653 = vmatpush.msra.mxu2 %v9049_v31 }
  0x63   : > { %405 = vmatmul.f32.gmra.mxu2 %v9011_v16  ;;  %593 = vmatpush.msra.mxu0 %v9052_v32 }
  0x64   : > { %436 = vmatmul.f32.gmra.mxu3 %v9023_v24  ;;  %488 = vmatpush.msrb.mxu1 %v324_v3 }
  0x65   : > { %657 = vmatpush.msra.mxu2 %v9060_v34  ;;  %564 = vmatpush.msrb.mxu3 %v9070_v37 }
  0x66   : > { %620 = vmatpush.msra.mxu1 %v9016_v20 }
  0x67   : > { %682 = vmatpush.msra.mxu3 %v9016_v20 }
  0x68   : > { %339 = vmatmul.f32.gmra.mxu0 %v9033_v27  ;;  %622 = vmatpush.msra.mxu1 %v9046_v30 }
  0x69   : > { %374 = vmatmul.f32.gmra.mxu1 %v9005_v11  ;;  %684 = vmatpush.msra.mxu3 %v9046_v30 }
  0x70   : > { %463 = vmatmul.f32.vlgmr.msrb.gmra.mxu0 %v9003_v10 }
  0x71   : > { %490 = vmatmul.f32.vlgmr.msrb.gmra.mxu1 %v9003_v10  ;;  %709 = vmatpush.msrb.mxu0 %v708_v45 }
  0x72   : > { %748 = vmatpush.msrb.mxu1 %v747_v59 }
  0x73   : > { %711 = vmatpush.msrb.mxu0 %v710_v54 }
  0x74   : > { %754 = vmatpush.msrb.mxu1 %v753_v7 }
  0x78   : > { %467 = vmatmul.f32.gmra.mxu0 %v9005_v11 }
  0x79   : > { %494 = vmatmul.f32.gmra.mxu1 %v9005_v11 }
  0xdd   : > { %v332_v38 = vpop.f32.mrf.mxu0 }
  0xde   : > { %v371_v39 = vpop.f32.mrf.mxu1  ;;  %v401_v40 = vpop.f32.mrf.mxu2 }
  0xdf   : > { %v372_v41 = vadd.f32 %v371_v39, %v332_v38  ;;  %v431_v46 = vpop.f32.mrf.mxu3 }
  0xe1   : > { %v402_v47 = vadd.f32 %v401_v40, %v372_v41 }
  0xe3   : > { %v432_v51 = vadd.f32 %v431_v46, %v402_v47 }
  0xe5   : > { %v340_v42 = vpop.f32.mrf.mxu0 }
  0xe6   : > { %v375_v44 = vpop.f32.mrf.mxu1  ;;  %v406_v55 = vpop.f32.mrf.mxu2 }
  0xe7   : > { %v376_v52 = vadd.f32 %v375_v44, %v340_v42  ;;  %v437_v2 = vpop.f32.mrf.mxu3 }
  0xe9   : > { %v407_v61 = vadd.f32 %v406_v55, %v376_v52 }
  0xeb   : > { %v438_v6 = vadd.f32 %v437_v2, %v407_v61  ;;  %v1080_v2 = vmul.f32 %v8995_v1, %v8995_v1 }
  0xed   : > { %v464_v56 = vpop.f32.mrf.mxu0 }
  0xee   : > { %v465_v57 = vadd.f32 %v464_v56, %v432_v51  ;;  %v491_v58 = vpop.f32.mrf.mxu1  ;;  %v1081_v56 = vmul.f32 %v8992_v0, %v8992_v0 }
  0xf0   : > { %v492_v62 = vadd.f32 %v491_v58, %v465_v57  ;;  %v1096_v58 = vand.u32 4294901760, %v1081_v56 }
  0xf2   : > { %v499_v3 = vsel %vm301_vm0, %v492_v62, 0  ;;  %v1132_v62 = vsub.f32 %v1081_v56, %v1096_v58 }
  0xf3   : > { %v522_v5 = vand.u32 4294901760, %v499_v3 }
  0xf4   : > { %v1133_v4 = vand.u32 4294901760, %v1132_v62 }
  0xf5   : > { %v523_v8 = vsub.f32 %v499_v3, %v522_v5  ;;  %v468_v9 = vpop.f32.mrf.mxu0  ;;  %566 = vmatmul.f32.vlgmr.msrb.gmra.mxu3 %v522_v5 }
  0xf6   : > { %v469_v12 = vadd.f32 %v468_v9, %v438_v6  ;;  %v495_v14 = vpop.f32.mrf.mxu1  ;;  %810 = vmatpush.msrb.mxu3 %v708_v45  ;;  %v1098_v6 = vand.u32 4294901760, %v1080_v2  ;;  %v1134_v7 = vsub.f32 %v1132_v62, %v1133_v4 }
  0xf7   : > { %596 = vmatmul.f32.vlgmr.msra.gmra.mxu0 %v523_v8  ;;  %v524_v15 = vand.u32 4294901760, %v523_v8 }
  0xf8   : > { %v496_v17 = vadd.f32 %v495_v14, %v469_v12  ;;  %812 = vmatpush.msrb.mxu3 %v710_v54  ;;  %843 = vmatpush.msra.mxu0 %v745_v49  ;;  %v1138_v9 = vsub.f32 %v1080_v2, %v1098_v6  ;;  %v1135_v12 = vand.u32 4294901760, %v1134_v7 }
  0xf9   : > { %626 = vmatmul.f32.vlgmr.msra.gmra.mxu1 %v524_v15  ;;  %v525_v19 = vsub.f32 %v523_v8, %v524_v15 }
  0xfa   : > { %v502_v21 = vsel %vm301_vm0, %v496_v17, 0  ;;  %872 = vmatpush.msra.mxu1 %v708_v45  ;;  %847 = vmatpush.msra.mxu0 %v751_v63  ;;  %v1139_v17 = vand.u32 4294901760, %v1138_v9 }
  0xfb   : > { %v530_v22 = vand.u32 4294901760, %v502_v21  ;;  %v526_v23 = vand.u32 4294901760, %v525_v19 }
  0xfc   : > { %874 = vmatpush.msra.mxu1 %v710_v54 }
  0xfd   : > { %527 = vmatmul.f32.vlgmr.msrb.gmra.mxu2 %v526_v23  ;;  %570 = vmatmul.f32.gmra.mxu3 %v530_v22  ;;  %v531_v26 = vsub.f32 %v502_v21, %v530_v22 }
  0xfe   : > { %780 = vmatpush.msrb.mxu2 %v744_v48 }
  0xff   : > { %601 = vmatmul.f32.gmra.mxu0 %v531_v26  ;;  %v532_v28 = vand.u32 4294901760, %v531_v26 }
 0x100   : > { %783 = vmatpush.msrb.mxu2 %v750_v60 }
 0x101   : > { %632 = vmatmul.f32.gmra.mxu1 %v532_v28  ;;  %v533_v33 = vsub.f32 %v531_v26, %v532_v28  ;;  %v1140_v26 = vsub.f32 %v1138_v9, %v1139_v17 }
 0x103   : > { %v534_v36 = vand.u32 4294901760, %v533_v33 }
 0x105   : > { %535 = vmatmul.f32.gmra.mxu2 %v534_v36  ;;  %686 = vmatmul.f32.vlgmr.msra.gmra.mxu3 %v522_v5 }
 0x106   : > { %944 = vmatpush.msra.mxu3 %v9064_v35 }
 0x107   : > { %717 = vmatmul.f32.vlgmr.msrb.gmra.mxu0 %v9026_v25 }
 0x108   : > { %950 = vmatpush.msra.mxu3 %v9070_v37  ;;  %976 = vmatpush.msrb.mxu0 %v9044_v29 }
 0x109   : > { %756 = vmatmul.f32.vlgmr.msrb.gmra.mxu1 %v9003_v10 }
 0x10a   : > { %979 = vmatpush.msrb.mxu0 %v9052_v32  ;;  %1006 = vmatpush.msrb.mxu1 %v9016_v20 }
 0x10c   : > { %1008 = vmatpush.msrb.mxu1 %v9046_v30 }
 0x10d   : > { %659 = vmatmul.f32.vlgmr.msra.gmra.mxu2 %v522_v5  ;;  %690 = vmatmul.f32.gmra.mxu3 %v530_v22 }
 0x10e   : > { %905 = vmatpush.msra.mxu2 %v9016_v20 }
 0x10f   : > { %725 = vmatmul.f32.gmra.mxu0 %v9033_v27 }
 0x110   : > { %907 = vmatpush.msra.mxu2 %v9046_v30 }
 0x111   : > { %760 = vmatmul.f32.gmra.mxu1 %v9005_v11 }
 0x115   : > { %663 = vmatmul.f32.gmra.mxu2 %v530_v22  ;;  %816 = vmatmul.f32.vlgmr.msrb.gmra.mxu3 %v9014_v18 }
 0x116   : > { %1068 = vmatpush.msrb.mxu3 %v9016_v20 }
 0x117   : > { %849 = vmatmul.f32.vlgmr.msra.gmra.mxu0 %v9003_v10 }
 0x118   : > { %1070 = vmatpush.msrb.mxu3 %v9046_v30  ;;  %1097 = vmatpush.msra.mxu0 %v1096_v58 }
 0x119   : > { %876 = vmatmul.f32.vlgmr.msra.gmra.mxu1 %v9003_v10 }
 0x11a   : > { %1099 = vmatpush.msra.mxu0 %v1098_v6  ;;  %1136 = vmatpush.msra.mxu1 %v1135_v12 }
 0x11d   : > { %786 = vmatmul.f32.vlgmr.msrb.gmra.mxu2 %v9008_v13  ;;  %822 = vmatmul.f32.gmra.mxu3 %v9023_v24 }
 0x11e   : > { %1039 = vmatpush.msrb.mxu2 %v9049_v31 }
 0x11f   : > { %853 = vmatmul.f32.gmra.mxu0 %v9005_v11 }
 0x120   : > { %1043 = vmatpush.msrb.mxu2 %v9060_v34 }
 0x121   : > { %880 = vmatmul.f32.gmra.mxu1 %v9005_v11 }
 0x125   : > { %791 = vmatmul.f32.gmra.mxu2 %v9011_v16 }
 0x174   : > { %v9113_v39 = vpop.f32.mrf.mxu0 }
 0x176   : > { %v9115_v40 = vpop.f32.mrf.mxu1 }
 0x178   : > { %v9111_v38 = vpop.f32.mrf.mxu3 }
 0x17c   : > { %v9121_v44 = vpop.f32.mrf.mxu0 }
 0x17d   : > { %10325 = vst [vmem:[#allocation16_spill] sm:$0xff] %v9121_v44 }
 0x17e   : > { %v9123_v45 = vpop.f32.mrf.mxu1 }
 0x17f   : > { %10326 = vst [vmem:[#allocation17_spill] sm:$0xff] %v9123_v45 }
 0x180   : > { %v9117_v41 = vpop.f32.mrf.mxu2  ;;  %v9119_v42 = vpop.f32.mrf.mxu3 }
 0x184   : > { %v718_v48 = vpop.f32.mrf.mxu0 }
 0x186   : > { %v757_v51 = vpop.f32.mrf.mxu1 }
 0x187   : > { %v758_v59 = vadd.f32 %v757_v51, %v718_v48  ;;  %v1141_v48 = vand.u32 4294901760, %v1140_v26 }
 0x188   : > { %v9125_v46 = vpop.f32.mrf.mxu2  ;;  %v9127_v47 = vpop.f32.mrf.mxu3 }
 0x189   : > { %10327 = vst [vmem:[#allocation18_spill] sm:$0xff] %v9127_v47  ;;  %1142 = vmatpush.msra.mxu1 %v1141_v48 }
 0x18c   : > { %v726_v53 = vpop.f32.mrf.mxu0 }
 0x18e   : > { %v761_v55 = vpop.f32.mrf.mxu1 }
 0x18f   : > { %v762_v14 = vadd.f32 %v761_v55, %v726_v53 }
 0x190   : > { %v9129_v49 = vpop.f32.mrf.mxu2  ;;  %v9131_v52 = vpop.f32.mrf.mxu3 }
 0x191   : > { %10328 = vst [vmem:[#allocation19_spill] sm:$0xff] %v9129_v49 }
 0x192   : > { %10329 = vst [vmem:[#allocation20_spill] sm:$0xff] %v9131_v52 }
 0x194   : > { %v850_v61 = vpop.f32.mrf.mxu0 }
 0x196   : > { %v877_v3 = vpop.f32.mrf.mxu1 }
 0x198   : > { %v9133_v54 = vpop.f32.mrf.mxu2  ;;  %v817_v57 = vpop.f32.mrf.mxu3 }
 0x199   : > { %10330 = vst [vmem:[#allocation21_spill] sm:$0xff] %v9133_v54 }
 0x19c   : > { %v854_v33 = vpop.f32.mrf.mxu0 }
 0x19e   : > { %v881_v56 = vpop.f32.mrf.mxu1 }
 0x1a0   : > { %v787_v60 = vpop.f32.mrf.mxu2  ;;  %v823_v21 = vpop.f32.mrf.mxu3 }
 0x1a1   : > { %v788_v63 = vadd.f32 %v787_v60, %v758_v59 }
 0x1a3   : > { %v818_v5 = vadd.f32 %v817_v57, %v788_v63 }
 0x1a5   : > { %v851_v8 = vadd.f32 %v850_v61, %v818_v5 }
 0x1a7   : > { %v878_v15 = vadd.f32 %v877_v3, %v851_v8 }
 0x1a8   : > { %v792_v19 = vpop.f32.mrf.mxu2 }
 0x1a9   : > { %v885_v22 = vsel %vm301_vm0, %v878_v15, 0  ;;  %v793_v23 = vadd.f32 %v792_v19, %v762_v14 }
 0x1aa   : > { %v908_v28 = vand.u32 4294901760, %v885_v22 }
 0x1ab   : > { %v824_v36 = vadd.f32 %v823_v21, %v793_v23 }
 0x1ac   : > { %v909_v51 = vsub.f32 %v885_v22, %v908_v28  ;;  %952 = vmatmul.f32.vlgmr.msra.gmra.mxu3 %v908_v28 }
 0x1ad   : > { %v855_v57 = vadd.f32 %v854_v33, %v824_v36  ;;  %1198 = vmatpush.msra.mxu3 %v1096_v58  ;;  %v1469_v33 = vmul.f32 %v9076_v43, %v9076_v43 }
 0x1ae   : > { %982 = vmatmul.f32.vlgmr.msrb.gmra.mxu0 %v909_v51  ;;  %v910_v53 = vand.u32 4294901760, %v909_v51 }
 0x1af   : > { %v882_v55 = vadd.f32 %v881_v56, %v855_v57  ;;  %1200 = vmatpush.msra.mxu3 %v1098_v6  ;;  %1231 = vmatpush.msrb.mxu0 %v1133_v4  ;;  %v1484_v48 = vand.u32 4294901760, %v1469_v33 }
 0x1b0   : > { %1012 = vmatmul.f32.vlgmr.msrb.gmra.mxu1 %v910_v53  ;;  %v911_v59 = vsub.f32 %v909_v51, %v910_v53 }
 0x1b1   : > { %v888_v60 = vsel %vm301_vm0, %v882_v55, 0  ;;  %1260 = vmatpush.msrb.mxu1 %v1096_v58  ;;  %1235 = vmatpush.msrb.mxu0 %v1139_v17  ;;  %v1520_v53 = vsub.f32 %v1469_v33, %v1484_v48 }
 0x1b2   : > { %v916_v61 = vand.u32 4294901760, %v888_v60  ;;  %v912_v63 = vand.u32 4294901760, %v911_v59  ;;  %v1468_v59 = vmul.f32 %v9081_v50, %v9081_v50 }
 0x1b3   : > { %1262 = vmatpush.msrb.mxu1 %v1098_v6 }
 0x1b4   : > { %913 = vmatmul.f32.vlgmr.msra.gmra.mxu2 %v912_v63  ;;  %956 = vmatmul.f32.gmra.mxu3 %v916_v61  ;;  %v917_v2 = vsub.f32 %v888_v60, %v916_v61 }
 0x1b5   : > { %1168 = vmatpush.msra.mxu2 %v1132_v62 }
 0x1b6   : > { %987 = vmatmul.f32.gmra.mxu0 %v917_v2  ;;  %v918_v3 = vand.u32 4294901760, %v917_v2 }
 0x1b7   : > { %1171 = vmatpush.msra.mxu2 %v1138_v9 }
 0x1b8   : > { %1018 = vmatmul.f32.gmra.mxu1 %v918_v3  ;;  %v919_v5 = vsub.f32 %v917_v2, %v918_v3  ;;  %v1486_v2 = vand.u32 4294901760, %v1468_v59 }
 0x1ba   : > { %v920_v7 = vand.u32 4294901760, %v919_v5 }
 0x1bc   : > { %921 = vmatmul.f32.gmra.mxu2 %v920_v7  ;;  %1072 = vmatmul.f32.vlgmr.msrb.gmra.mxu3 %v908_v28  ;;  %v1526_v7 = vsub.f32 %v1468_v59, %v1486_v2 }
 0x1bd   : > { %1332 = vmatpush.msrb.mxu3 %v9064_v35 }
 0x1be   : > { %1105 = vmatmul.f32.vlgmr.msra.gmra.mxu0 %v9026_v25 }
 0x1bf   : > { %1338 = vmatpush.msrb.mxu3 %v9070_v37  ;;  %1364 = vmatpush.msra.mxu0 %v9044_v29 }
 0x1c0   : > { %1144 = vmatmul.f32.vlgmr.msra.gmra.mxu1 %v9003_v10 }
 0x1c1   : > { %1367 = vmatpush.msra.mxu0 %v9052_v32  ;;  %1394 = vmatpush.msra.mxu1 %v9016_v20 }
 0x1c3   : > { %1396 = vmatpush.msra.mxu1 %v9046_v30 }
 0x1c4   : > { %1045 = vmatmul.f32.vlgmr.msrb.gmra.mxu2 %v908_v28  ;;  %1076 = vmatmul.f32.gmra.mxu3 %v916_v61 }
 0x1c5   : > { %1293 = vmatpush.msrb.mxu2 %v9016_v20 }
 0x1c6   : > { %1113 = vmatmul.f32.gmra.mxu0 %v9033_v27 }
 0x1c7   : > { %1295 = vmatpush.msrb.mxu2 %v9046_v30 }
 0x1c8   : > { %1148 = vmatmul.f32.gmra.mxu1 %v9005_v11 }
 0x1cc   : > { %1049 = vmatmul.f32.gmra.mxu2 %v916_v61  ;;  %1204 = vmatmul.f32.vlgmr.msra.gmra.mxu3 %v9014_v18  ;;  %v1521_v61 = vand.u32 4294901760, %v1520_v53 }
 0x1cd   : > { %1456 = vmatpush.msra.mxu3 %v9016_v20 }
 0x1ce   : > { %1237 = vmatmul.f32.vlgmr.msrb.gmra.mxu0 %v9003_v10  ;;  %v1522_v3 = vsub.f32 %v1520_v53, %v1521_v61 }
 0x1cf   : > { %1458 = vmatpush.msra.mxu3 %v9046_v30  ;;  %1485 = vmatpush.msrb.mxu0 %v1484_v48 }
 0x1d0   : > { %1264 = vmatmul.f32.vlgmr.msrb.gmra.mxu1 %v9003_v10  ;;  %v1523_v52 = vand.u32 4294901760, %v1522_v3 }
 0x1d1   : > { %1487 = vmatpush.msrb.mxu0 %v1486_v2 }
 0x1d2   : > { %1524 = vmatpush.msrb.mxu1 %v1523_v52 }
 0x1d4   : > { %1174 = vmatmul.f32.vlgmr.msra.gmra.mxu2 %v9008_v13  ;;  %1210 = vmatmul.f32.gmra.mxu3 %v9023_v24 }
 0x1d5   : > { %1427 = vmatpush.msra.mxu2 %v9049_v31 }
 0x1d6   : > { %1241 = vmatmul.f32.gmra.mxu0 %v9005_v11 }
 0x1d7   : > { %1431 = vmatpush.msra.mxu2 %v9060_v34 }
 0x1d8   : > { %1268 = vmatmul.f32.gmra.mxu1 %v9005_v11 }
 0x1dc   : > { %1179 = vmatmul.f32.gmra.mxu2 %v9011_v16 }
 0x22b   : > { %v9167_v62 = vpop.f32.mrf.mxu0 }
 0x22d   : > { %v9169_v4 = vpop.f32.mrf.mxu1 }
 0x22f   : > { %v9165_v58 = vpop.f32.mrf.mxu3 }
 0x233   : > { %v9175_v9 = vpop.f32.mrf.mxu0 }
 0x234   : > { %10331 = vst [vmem:[#allocation22_spill] sm:$0xff] %v9175_v9 }
 0x235   : > { %v9177_v12 = vpop.f32.mrf.mxu1 }
 0x236   : > { %10332 = vst [vmem:[#allocation23_spill] sm:$0xff] %v9177_v12 }
 0x237   : > { %v9171_v6 = vpop.f32.mrf.mxu2  ;;  %v9173_v8 = vpop.f32.mrf.mxu3 }
 0x23b   : > { %v1106_v17 = vpop.f32.mrf.mxu0 }
 0x23d   : > { %v1145_v21 = vpop.f32.mrf.mxu1 }
 0x23e   : > { %v1146_v51 = vadd.f32 %v1145_v21, %v1106_v17  ;;  %v1527_v17 = vand.u32 4294901760, %v1526_v7 }
 0x23f   : > { %v9179_v14 = vpop.f32.mrf.mxu2  ;;  %v9181_v15 = vpop.f32.mrf.mxu3 }
 0x240   : > { %10333 = vst [vmem:[#allocation24_spill] sm:$0xff] %v9181_v15 }
 0x243   : > { %v1114_v23 = vpop.f32.mrf.mxu0 }
 0x245   : > { %v1149_v28 = vpop.f32.mrf.mxu1 }
 0x247   : > { %v9183_v19 = vpop.f32.mrf.mxu2  ;;  %v9185_v22 = vpop.f32.mrf.mxu3 }
 0x248   : > { %10334 = vst [vmem:[#allocation25_spill] sm:$0xff] %v9185_v22  ;;  %v1150_v22 = vadd.f32 %v1149_v28, %v1114_v23 }
 0x24b   : > { %v1238_v57 = vpop.f32.mrf.mxu0 }
 0x24d   : > { %v1265_v60 = vpop.f32.mrf.mxu1 }
 0x24f   : > { %v9187_v26 = vpop.f32.mrf.mxu2  ;;  %v1205_v36 = vpop.f32.mrf.mxu3 }
 0x250   : > { %10335 = vst [vmem:[#allocation26_spill] sm:$0xff] %v9187_v26 }
 0x253   : > { %v1242_v12 = vpop.f32.mrf.mxu0 }
 0x257   : > { %v1175_v56 = vpop.f32.mrf.mxu2  ;;  %v1211_v26 = vpop.f32.mrf.mxu3 }
 0x258   : > { %v1176_v55 = vadd.f32 %v1175_v56, %v1146_v51  ;;  %v1528_v56 = vsub.f32 %v1526_v7, %v1527_v17 }
 0x25a   : > { %v1206_v63 = vadd.f32 %v1205_v36, %v1176_v55  ;;  %v1529_v36 = vand.u32 4294901760, %v1528_v56 }
 0x25c   : > { %v1239_v5 = vadd.f32 %v1238_v57, %v1206_v63  ;;  %v1269_v57 = vpop.f32.mrf.mxu1  ;;  %1530 = vmatpush.msrb.mxu1 %v1529_v36 }
 0x25e   : > { %v1266_v54 = vadd.f32 %v1265_v60, %v1239_v5 }
 0x25f   : > { %v1180_v21 = vpop.f32.mrf.mxu2 }
 0x260   : > { %v1273_v33 = vsel %vm301_vm0, %v1266_v54, 0  ;;  %v1181_v51 = vadd.f32 %v1180_v21, %v1150_v22 }
 0x261   : > { %v1296_v45 = vand.u32 4294901760, %v1273_v33 }
 0x262   : > { %v1212_v47 = vadd.f32 %v1211_v26, %v1181_v51 }
 0x263   : > { %v1297_v55 = vsub.f32 %v1273_v33, %v1296_v45  ;;  %1340 = vmatmul.f32.vlgmr.msrb.gmra.mxu3 %v1296_v45 }
 0x264   : > { %v1243_v63 = vadd.f32 %v1242_v12, %v1212_v47  ;;  %1586 = vmatpush.msrb.mxu3 %v1484_v48 }
 0x265   : > { %1370 = vmatmul.f32.vlgmr.msra.gmra.mxu0 %v1297_v55  ;;  %v1298_v23 = vand.u32 4294901760, %v1297_v55 }
 0x266   : > { %v1270_v28 = vadd.f32 %v1269_v57, %v1243_v63  ;;  %1588 = vmatpush.msrb.mxu3 %v1486_v2  ;;  %1619 = vmatpush.msra.mxu0 %v1521_v61  ;;  %v1857_v63 = vmul.f32 %v9076_v43, %v8992_v0 }
 0x267   : > { %1400 = vmatmul.f32.vlgmr.msra.gmra.mxu1 %v1298_v23  ;;  %v1299_v52 = vsub.f32 %v1297_v55, %v1298_v23 }
 0x268   : > { %v1276_v54 = vsel %vm301_vm0, %v1270_v28, 0  ;;  %1648 = vmatpush.msra.mxu1 %v1484_v48  ;;  %1623 = vmatpush.msra.mxu0 %v1527_v17  ;;  %v1872_v28 = vand.u32 4294901760, %v1857_v63 }
 0x269   : > { %v1304_v22 = vand.u32 4294901760, %v1276_v54  ;;  %v1300_v26 = vand.u32 4294901760, %v1299_v52 }
 0x26a   : > { %1650 = vmatpush.msra.mxu1 %v1486_v2 }
 0x26b   : > { %1301 = vmatmul.f32.vlgmr.msrb.gmra.mxu2 %v1300_v26  ;;  %1344 = vmatmul.f32.gmra.mxu3 %v1304_v22  ;;  %v1305_v59 = vsub.f32 %v1276_v54, %v1304_v22  ;;  %v1908_v26 = vsub.f32 %v1857_v63, %v1872_v28 }
 0x26c   : > { %1556 = vmatpush.msrb.mxu2 %v1520_v53 }
 0x26d   : > { %1375 = vmatmul.f32.gmra.mxu0 %v1305_v59  ;;  %v1306_v47 = vand.u32 4294901760, %v1305_v59 }
 0x26e   : > { %1559 = vmatpush.msrb.mxu2 %v1526_v7 }
 0x26f   : > { %1406 = vmatmul.f32.gmra.mxu1 %v1306_v47  ;;  %v1307_v12 = vsub.f32 %v1305_v59, %v1306_v47  ;;  %v1856_v47 = vmul.f32 %v9081_v50, %v8995_v1 }
 0x271   : > { %v1308_v60 = vand.u32 4294901760, %v1307_v12 }
 0x273   : > { %1309 = vmatmul.f32.gmra.mxu2 %v1308_v60  ;;  %1460 = vmatmul.f32.vlgmr.msra.gmra.mxu3 %v1296_v45  ;;  %v1909_v60 = vand.u32 4294901760, %v1908_v26 }
 0x274   : > { %1720 = vmatpush.msra.mxu3 %v9064_v35 }
 0x275   : > { %1493 = vmatmul.f32.vlgmr.msrb.gmra.mxu0 %v9026_v25 }
 0x276   : > { %1726 = vmatpush.msra.mxu3 %v9070_v37  ;;  %1752 = vmatpush.msrb.mxu0 %v9044_v29 }
 0x277   : > { %1532 = vmatmul.f32.vlgmr.msrb.gmra.mxu1 %v9003_v10 }
 0x278   : > { %1755 = vmatpush.msrb.mxu0 %v9052_v32  ;;  %1782 = vmatpush.msrb.mxu1 %v9016_v20 }
 0x27a   : > { %1784 = vmatpush.msrb.mxu1 %v9046_v30 }
 0x27b   : > { %1433 = vmatmul.f32.vlgmr.msra.gmra.mxu2 %v1296_v45  ;;  %1464 = vmatmul.f32.gmra.mxu3 %v1304_v22 }
 0x27c   : > { %1681 = vmatpush.msra.mxu2 %v9016_v20 }
 0x27d   : > { %1501 = vmatmul.f32.gmra.mxu0 %v9033_v27 }
 0x27e   : > { %1683 = vmatpush.msra.mxu2 %v9046_v30 }
 0x27f   : > { %1536 = vmatmul.f32.gmra.mxu1 %v9005_v11 }
 0x283   : > { %1437 = vmatmul.f32.gmra.mxu2 %v1304_v22  ;;  %1592 = vmatmul.f32.vlgmr.msrb.gmra.mxu3 %v9014_v18 }
 0x284   : > { %1844 = vmatpush.msrb.mxu3 %v9016_v20 }
 0x285   : > { %1625 = vmatmul.f32.vlgmr.msra.gmra.mxu0 %v9003_v10 }
 0x286   : > { %1846 = vmatpush.msrb.mxu3 %v9046_v30  ;;  %1873 = vmatpush.msra.mxu0 %v1872_v28 }
 0x287   : > { %1652 = vmatmul.f32.vlgmr.msra.gmra.mxu1 %v9003_v10 }
 0x28b   : > { %1562 = vmatmul.f32.vlgmr.msrb.gmra.mxu2 %v9008_v13  ;;  %1598 = vmatmul.f32.gmra.mxu3 %v9023_v24 }
 0x28c   : > { %1815 = vmatpush.msrb.mxu2 %v9049_v31 }
 0x28d   : > { %1629 = vmatmul.f32.gmra.mxu0 %v9005_v11 }
 0x28e   : > { %1819 = vmatpush.msrb.mxu2 %v9060_v34 }
 0x28f   : > { %1656 = vmatmul.f32.gmra.mxu1 %v9005_v11 }
 0x293   : > { %1567 = vmatmul.f32.gmra.mxu2 %v9011_v16 }
 0x2e2   : > { %v9221_v48 = vpop.f32.mrf.mxu0 }
 0x2e4   : > { %v9223_v53 = vpop.f32.mrf.mxu1 }
 0x2e5   : > { %10336 = vst [vmem:[#allocation27_spill] sm:$0xff] %v9223_v53 }
 0x2e6   : > { %v9219_v45 = vpop.f32.mrf.mxu3 }
 0x2ea   : > { %v9229_v3 = vpop.f32.mrf.mxu0 }
 0x2eb   : > { %10338 = vst [vmem:[#allocation29_spill] sm:$0xff] %v9229_v3 }
 0x2ec   : > { %v9231_v5 = vpop.f32.mrf.mxu1 }
 0x2ed   : > { %10339 = vst [vmem:[#allocation30_spill] sm:$0xff] %v9231_v5  ;;  %v1874_v5 = vand.u32 4294901760, %v1856_v47 }
 0x2ee   : > { %v9225_v61 = vpop.f32.mrf.mxu2  ;;  %v9227_v2 = vpop.f32.mrf.mxu3 }
 0x2ef   : > { %10337 = vst [vmem:[#allocation28_spill] sm:$0xff] %v9227_v2  ;;  %1875 = vmatpush.msra.mxu0 %v1874_v5  ;;  %v1914_v3 = vsub.f32 %v1856_v47, %v1874_v5 }
 0x2f2   : > { %v1494_v21 = vpop.f32.mrf.mxu0 }
 0x2f4   : > { %v1533_v51 = vpop.f32.mrf.mxu1 }
 0x2f5   : > { %v1534_v52 = vadd.f32 %v1533_v51, %v1494_v21  ;;  %v1915_v21 = vand.u32 4294901760, %v1914_v3 }
 0x2f6   : > { %v9233_v7 = vpop.f32.mrf.mxu2  ;;  %v9235_v17 = vpop.f32.mrf.mxu3 }
 0x2f7   : > { %10340 = vst [vmem:[#allocation31_spill] sm:$0xff] %v9233_v7 }
 0x2f8   : > { %10341 = vst [vmem:[#allocation32_spill] sm:$0xff] %v9235_v17 }
 0x2fa   : > { %v1502_v36 = vpop.f32.mrf.mxu0 }
 0x2fc   : > { %v1537_v57 = vpop.f32.mrf.mxu1 }
 0x2fd   : > { %v1538_v43 = vadd.f32 %v1537_v57, %v1502_v36 }
 0x2fe   : > { %v9237_v33 = vpop.f32.mrf.mxu2  ;;  %v9239_v56 = vpop.f32.mrf.mxu3 }
 0x2ff   : > { %10342 = vst [vmem:[#allocation33_spill] sm:$0xff] %v9237_v33 }
 0x300   : > { %10343 = vst [vmem:[#allocation34_spill] sm:$0xff] %v9239_v56 }
 0x302   : > { %v1626_v22 = vpop.f32.mrf.mxu0 }
 0x304   : > { %v1653_v12 = vpop.f32.mrf.mxu1 }
 0x306   : > { %v9241_v55 = vpop.f32.mrf.mxu2  ;;  %v1593_v23 = vpop.f32.mrf.mxu3 }
 0x307   : > { %10344 = vst [vmem:[#allocation35_spill] sm:$0xff] %v9241_v55  ;;  %v1910_v55 = vsub.f32 %v1908_v26, %v1909_v60 }
 0x309   : > { %v1911_v0 = vand.u32 4294901760, %v1910_v55 }
 0x30a   : > { %v1630_v50 = vpop.f32.mrf.mxu0 }
 0x30b   : > { %1912 = vmatpush.msra.mxu1 %v1911_v0 }
 0x30e   : > { %v1563_v54 = vpop.f32.mrf.mxu2  ;;  %v1599_v15 = vpop.f32.mrf.mxu3 }
 0x30f   : > { %v1564_v59 = vadd.f32 %v1563_v54, %v1534_v52  ;;  %v1916_v54 = vsub.f32 %v1914_v3, %v1915_v21 }
 0x311   : > { %v1594_v56 = vadd.f32 %v1593_v23, %v1564_v59  ;;  %v1917_v23 = vand.u32 4294901760, %v1916_v54 }
 0x313   : > { %v1627_v17 = vadd.f32 %v1626_v22, %v1594_v56  ;;  %v1657_v56 = vpop.f32.mrf.mxu1  ;;  %1918 = vmatpush.msra.mxu1 %v1917_v23 }
 0x315   : > { %v1654_v33 = vadd.f32 %v1653_v12, %v1627_v17 }
 0x316   : > { %v1568_v51 = vpop.f32.mrf.mxu2 }
 0x317   : > { %v1661_v63 = vsel %vm301_vm0, %v1654_v33, 0  ;;  %v1569_v52 = vadd.f32 %v1568_v51, %v1538_v43 }
 0x318   : > { %v1684_v1 = vand.u32 4294901760, %v1661_v63 }
 0x319   : > { %v1600_v44 = vadd.f32 %v1599_v15, %v1569_v52 }
 0x31a   : > { %v1685_v59 = vsub.f32 %v1661_v63, %v1684_v1  ;;  %1728 = vmatmul.f32.vlgmr.msra.gmra.mxu3 %v1684_v1 }
 0x31b   : > { %v1631_v22 = vadd.f32 %v1630_v50, %v1600_v44  ;;  %1974 = vmatpush.msra.mxu3 %v1872_v28 }
 0x31c   : > { %1758 = vmatmul.f32.vlgmr.msrb.gmra.mxu0 %v1685_v59  ;;  %v1686_v17 = vand.u32 4294901760, %v1685_v59 }
 0x31d   : > { %v1658_v36 = vadd.f32 %v1657_v56, %v1631_v22  ;;  %1976 = vmatpush.msra.mxu3 %v1874_v5  ;;  %2007 = vmatpush.msrb.mxu0 %v1909_v60  ;;  %v9298_v22 = vld [vmem:[%s8969_s30 + $0x18] sm:$0xff] }
 0x31e   : > { %1788 = vmatmul.f32.vlgmr.msrb.gmra.mxu1 %v1686_v17  ;;  %v1687_v55 = vsub.f32 %v1685_v59, %v1686_v17  ;;  %10352 = vst [vmem:[#allocation43_spill] sm:$0xff] %v9298_v22  ;;  %v2328_v17 = vand.u32 4294901760, %v9298_v22 }
 0x31f   : > { %v1664_v33 = vsel %vm301_vm0, %v1658_v36, 0  ;;  %2036 = vmatpush.msrb.mxu1 %v1872_v28  ;;  %2011 = vmatpush.msrb.mxu0 %v1915_v21 }
 0x320   : > { %v1692_v57 = vand.u32 4294901760, %v1664_v33  ;;  %v1688_v15 = vand.u32 4294901760, %v1687_v55 }
 0x321   : > { %2038 = vmatpush.msrb.mxu1 %v1874_v5 }
 0x322   : > { %1689 = vmatmul.f32.vlgmr.msra.gmra.mxu2 %v1688_v15  ;;  %1732 = vmatmul.f32.gmra.mxu3 %v1692_v57  ;;  %v1693_v47 = vsub.f32 %v1664_v33, %v1692_v57  ;;  %v2364_v33 = vsub.f32 %v9298_v22, %v2328_v17 }
 0x323   : > { %1944 = vmatpush.msra.mxu2 %v1908_v26 }
 0x324   : > { %1763 = vmatmul.f32.gmra.mxu0 %v1693_v47  ;;  %v1694_v44 = vand.u32 4294901760, %v1693_v47 }
 0x325   : > { %1947 = vmatpush.msra.mxu2 %v1914_v3 }
 0x326   : > { %1794 = vmatmul.f32.gmra.mxu1 %v1694_v44  ;;  %v1695_v12 = vsub.f32 %v1693_v47, %v1694_v44  ;;  %v2365_v44 = vand.u32 4294901760, %v2364_v33 }
 0x328   : > { %v1696_v0 = vand.u32 4294901760, %v1695_v12 }
 0x32a   : > { %1697 = vmatmul.f32.gmra.mxu2 %v1696_v0  ;;  %1848 = vmatmul.f32.vlgmr.msrb.gmra.mxu3 %v1684_v1  ;;  %v9303_v0 = vld [vmem:[%s8969_s30 + $0x10] sm:$0xff] }
 0x32b   : > { %2108 = vmatpush.msrb.mxu3 %v9064_v35 }
 0x32c   : > { %1881 = vmatmul.f32.vlgmr.msra.gmra.mxu0 %v9026_v25 }
 0x32d   : > { %2114 = vmatpush.msrb.mxu3 %v9070_v37  ;;  %2140 = vmatpush.msra.mxu0 %v9044_v29 }
 0x32e   : > { %1920 = vmatmul.f32.vlgmr.msra.gmra.mxu1 %v9003_v10 }
 0x32f   : > { %2143 = vmatpush.msra.mxu0 %v9052_v32  ;;  %2170 = vmatpush.msra.mxu1 %v9016_v20 }
 0x331   : > { %2172 = vmatpush.msra.mxu1 %v9046_v30 }
 0x332   : > { %1821 = vmatmul.f32.vlgmr.msrb.gmra.mxu2 %v1684_v1  ;;  %1852 = vmatmul.f32.gmra.mxu3 %v1692_v57 }
 0x333   : > { %2069 = vmatpush.msrb.mxu2 %v9016_v20 }
 0x334   : > { %1889 = vmatmul.f32.gmra.mxu0 %v9033_v27 }
 0x335   : > { %2071 = vmatpush.msrb.mxu2 %v9046_v30 }
 0x336   : > { %1924 = vmatmul.f32.gmra.mxu1 %v9005_v11 }
 0x33a   : > { %1825 = vmatmul.f32.gmra.mxu2 %v1692_v57  ;;  %1980 = vmatmul.f32.vlgmr.msra.gmra.mxu3 %v9014_v18 }
 0x33b   : > { %2232 = vmatpush.msra.mxu3 %v9016_v20 }
 0x33c   : > { %2013 = vmatmul.f32.vlgmr.msrb.gmra.mxu0 %v9003_v10 }
 0x33d   : > { %2234 = vmatpush.msra.mxu3 %v9046_v30  ;;  %2329 = vmatpush.msrb.mxu0 %v2328_v17 }
 0x33e   : > { %2040 = vmatmul.f32.vlgmr.msrb.gmra.mxu1 %v9003_v10 }
 0x342   : > { %1950 = vmatmul.f32.vlgmr.msra.gmra.mxu2 %v9008_v13  ;;  %1986 = vmatmul.f32.gmra.mxu3 %v9023_v24 }
 0x343   : > { %2203 = vmatpush.msra.mxu2 %v9049_v31 }
 0x344   : > { %2017 = vmatmul.f32.gmra.mxu0 %v9005_v11 }
 0x345   : > { %2207 = vmatpush.msra.mxu2 %v9060_v34 }
 0x346   : > { %2044 = vmatmul.f32.gmra.mxu1 %v9005_v11 }
 0x34a   : > { %1955 = vmatmul.f32.gmra.mxu2 %v9011_v16 }
 0x399   : > { %v9275_v5 = vpop.f32.mrf.mxu0 }
 0x39b   : > { %v9277_v28 = vpop.f32.mrf.mxu1 }
 0x39c   : > { %10345 = vst [vmem:[#allocation36_spill] sm:$0xff] %v9277_v28 }
 0x39d   : > { %v9273_v3 = vpop.f32.mrf.mxu3 }
 0x3a1   : > { %v9283_v43 = vpop.f32.mrf.mxu0 }
 0x3a2   : > { %10346 = vst [vmem:[#allocation37_spill] sm:$0xff] %v9283_v43 }
 0x3a3   : > { %v9285_v21 = vpop.f32.mrf.mxu1 }
 0x3a4   : > { %10347 = vst [vmem:[#allocation38_spill] sm:$0xff] %v9285_v21  ;;  %v2366_v21 = vsub.f32 %v2364_v33, %v2365_v44 }
 0x3a5   : > { %v9279_v26 = vpop.f32.mrf.mxu2  ;;  %v9281_v60 = vpop.f32.mrf.mxu3 }
 0x3a6   : > { %v2367_v43 = vand.u32 4294901760, %v2366_v21 }
 0x3a8   : > { %2368 = vmatpush.msrb.mxu1 %v2367_v43 }
 0x3a9   : > { %v1882_v52 = vpop.f32.mrf.mxu0 }
 0x3ab   : > { %v1921_v1 = vpop.f32.mrf.mxu1 }
 0x3ac   : > { %v1922_v55 = vadd.f32 %v1921_v1, %v1882_v52 }
 0x3ad   : > { %v9287_v51 = vpop.f32.mrf.mxu2  ;;  %v9289_v63 = vpop.f32.mrf.mxu3 }
 0x3ae   : > { %10348 = vst [vmem:[#allocation39_spill] sm:$0xff] %v9289_v63 }
 0x3b1   : > { %v1890_v23 = vpop.f32.mrf.mxu0 }
 0x3b3   : > { %v1925_v56 = vpop.f32.mrf.mxu1 }
 0x3b4   : > { %v1926_v52 = vadd.f32 %v1925_v56, %v1890_v23 }
 0x3b5   : > { %v9291_v54 = vpop.f32.mrf.mxu2  ;;  %v9293_v50 = vpop.f32.mrf.mxu3 }
 0x3b6   : > { %10349 = vst [vmem:[#allocation40_spill] sm:$0xff] %v9291_v54 }
 0x3b7   : > { %10350 = vst [vmem:[#allocation41_spill] sm:$0xff] %v9293_v50 }
 0x3b9   : > { %v2014_v15 = vpop.f32.mrf.mxu0 }
 0x3bb   : > { %v2041_v12 = vpop.f32.mrf.mxu1 }
 0x3bd   : > { %v9295_v59 = vpop.f32.mrf.mxu2  ;;  %v1981_v36 = vpop.f32.mrf.mxu3 }
 0x3be   : > { %10351 = vst [vmem:[#allocation42_spill] sm:$0xff] %v9295_v59  ;;  %v2330_v59 = vand.u32 4294901760, %v9303_v0 }
 0x3c0   : > { %2331 = vmatpush.msrb.mxu0 %v2330_v59  ;;  %v2370_v54 = vsub.f32 %v9303_v0, %v2330_v59 }
 0x3c2   : > { %v2371_v22 = vand.u32 4294901760, %v2370_v54 }
 0x3c3   : > { %v2045_v21 = vpop.f32.mrf.mxu1 }
 0x3c4   : > { %v2372_v7 = vsub.f32 %v2370_v54, %v2371_v22 }
 0x3c5   : > { %v1951_v57 = vpop.f32.mrf.mxu2  ;;  %v1987_v2 = vpop.f32.mrf.mxu3 }
 0x3c6   : > { %v1952_v47 = vadd.f32 %v1951_v57, %v1922_v55  ;;  %v2373_v49 = vand.u32 4294901760, %v2372_v7 }
 0x3c8   : > { %v1982_v50 = vadd.f32 %v1981_v36, %v1952_v47  ;;  %v2018_v36 = vpop.f32.mrf.mxu0  ;;  %2374 = vmatpush.msrb.mxu1 %v2373_v49 }
 0x3ca   : > { %v2015_v63 = vadd.f32 %v2014_v15, %v1982_v50 }
 0x3cc   : > { %v2042_v1 = vadd.f32 %v2041_v12, %v2015_v63 }
 0x3cd   : > { %v1956_v53 = vpop.f32.mrf.mxu2 }
 0x3ce   : > { %v2049_v55 = vsel %vm301_vm0, %v2042_v1, 0  ;;  %v1957_v57 = vadd.f32 %v1956_v53, %v1926_v52 }
 0x3cf   : > { %v2072_v9 = vand.u32 4294901760, %v2049_v55 }
 0x3d0   : > { %v1988_v47 = vadd.f32 %v1987_v2, %v1957_v57  ;;  %v10361_v57 = vld [vmem:[#allocation24_spill] sm:$0xff] }
 0x3d1   : > { %v2073_v28 = vsub.f32 %v2049_v55, %v2072_v9  ;;  %2116 = vmatmul.f32.vlgmr.msrb.gmra.mxu3 %v2072_v9  ;;  %v10359_v55 = vld [vmem:[#allocation40_spill] sm:$0xff] }
 0x3d2   : > { %v2019_v50 = vadd.f32 %v2018_v36, %v1988_v47  ;;  %2430 = vmatpush.msrb.mxu3 %v2328_v17  ;;  %v10362_v36 = vld [vmem:[#allocation33_spill] sm:$0xff] }
 0x3d3   : > { %v2074_v23 = vand.u32 4294901760, %v2073_v28  ;;  %2146 = vmatmul.f32.vlgmr.msra.gmra.mxu0 %v2073_v28 }
 0x3d4   : > { %v2046_v43 = vadd.f32 %v2045_v21, %v2019_v50  ;;  %2432 = vmatpush.msrb.mxu3 %v2330_v59  ;;  %2463 = vmatpush.msra.mxu0 %v2365_v44  ;;  %v958_v44 = vadd.f32 %v9173_v8, %v9179_v14  ;;  %v10356_v14 = vld [vmem:[#allocation31_spill] sm:$0xff]  ;;  %v10364_v21 = vld [vmem:[#allocation18_spill] sm:$0xff] }
 0x3d5   : > { %v2075_v63 = vsub.f32 %v2073_v28, %v2074_v23  ;;  %2176 = vmatmul.f32.vlgmr.msra.gmra.mxu1 %v2074_v23  ;;  %v568_v28 = vadd.f32 %v9111_v38, %v9117_v41  ;;  %v572_v38 = vadd.f32 %v9119_v42, %v9125_v46  ;;  %v10360_v46 = vld [vmem:[#allocation16_spill] sm:$0xff]  ;;  %v10365_v23 = vld [vmem:[#allocation23_spill] sm:$0xff] }
 0x3d6   : > { %v2052_v53 = vsel %vm301_vm0, %v2046_v43, 0  ;;  %2492 = vmatpush.msra.mxu1 %v2328_v17  ;;  %2467 = vmatpush.msra.mxu0 %v2371_v22  ;;  %v1342_v22 = vadd.f32 %v9219_v45, %v9225_v61  ;;  %v1734_v45 = vadd.f32 %v9281_v60, %v9287_v51  ;;  %v10363_v60 = vld [vmem:[#allocation37_spill] sm:$0xff] }
 0x3d7   : > { %v2076_v56 = vand.u32 4294901760, %v2075_v63  ;;  %v2080_v2 = vand.u32 4294901760, %v2052_v53  ;;  %v598_v17 = vadd.f32 %v9113_v39, %v568_v28  ;;  %v10353_v39 = vld [vmem:[#allocation36_spill] sm:$0xff]  ;;  %v10366_v63 = vld [vmem:[#allocation29_spill] sm:$0xff] }
 0x3d8   : > { %2494 = vmatpush.msra.mxu1 %v2330_v59  ;;  %v1765_v51 = vadd.f32 %v10363_v60, %v1734_v45  ;;  %v10370_v28 = vld [vmem:[#allocation32_spill] sm:$0xff]  ;;  %v10375_v45 = vld [vmem:[#allocation25_spill] sm:$0xff] }
 0x3d9   : > { %2077 = vmatmul.f32.vlgmr.msrb.gmra.mxu2 %v2076_v56  ;;  %2120 = vmatmul.f32.gmra.mxu3 %v2080_v2  ;;  %v2081_v7 = vsub.f32 %v2052_v53, %v2080_v2  ;;  %v628_v41 = vadd.f32 %v9115_v40, %v598_v17  ;;  %v603_v40 = vadd.f32 %v10360_v46, %v572_v38  ;;  %v10367_v56 = vld [vmem:[#allocation39_spill] sm:$0xff] }
 0x3da   : > { %2400 = vmatpush.msrb.mxu2 %v2364_v33 }
 0x3db   : > { %2151 = vmatmul.f32.gmra.mxu0 %v2081_v7  ;;  %v2082_v49 = vand.u32 4294901760, %v2081_v7 }
 0x3dc   : > { %2403 = vmatpush.msrb.mxu2 %v2370_v54  ;;  %v1730_v54 = vadd.f32 %v9273_v3, %v9279_v26  ;;  %v10354_v3 = vld [vmem:[#allocation19_spill] sm:$0xff]  ;;  %v10355_v26 = vld [vmem:[#allocation22_spill] sm:$0xff] }
 0x3dd   : > { %2182 = vmatmul.f32.gmra.mxu1 %v2082_v49  ;;  %v2083_v15 = vsub.f32 %v2081_v7, %v2082_v49  ;;  %v989_v8 = vadd.f32 %v10355_v26, %v958_v44  ;;  %v10368_v7 = vld [vmem:[#allocation17_spill] sm:$0xff]  ;;  %v10377_v26 = vld [vmem:[#allocation20_spill] sm:$0xff] }
 0x3de   : > { %v1760_v33 = vadd.f32 %v9275_v5, %v1730_v54  ;;  %v661_v5 = vadd.f32 %v10354_v3, %v628_v41  ;;  %v634_v49 = vadd.f32 %v10368_v7, %v603_v40  ;;  %v10374_v41 = vld [vmem:[#allocation42_spill] sm:$0xff]  ;;  %v10376_v3 = vld [vmem:[#allocation35_spill] sm:$0xff] }
 0x3df   : > { %v2084_v12 = vand.u32 4294901760, %v2083_v15  ;;  %v1020_v43 = vadd.f32 %v10365_v23, %v989_v8 }
 0x3e0   : > { %v1790_v61 = vadd.f32 %v10353_v39, %v1760_v33  ;;  %v688_v50 = vadd.f32 %v10364_v21, %v661_v5  ;;  %v10372_v33 = vld [vmem:[#allocation21_spill] sm:$0xff] }
 0x3e1   : > { %2085 = vmatmul.f32.gmra.mxu2 %v2084_v12  ;;  %2236 = vmatmul.f32.vlgmr.msra.gmra.mxu3 %v2072_v9  ;;  %v10369_v12 = vld [vmem:[#allocation26_spill] sm:$0xff]  ;;  %v665_v44 = vadd.f32 %v10372_v33, %v634_v49 }
 0x3e2   : > { %2564 = vmatpush.msra.mxu3 %v9064_v35  ;;  %v1823_v42 = vadd.f32 %v10359_v55, %v1790_v61  ;;  %v2244_v17 = vmul.f32 %v688_v50, %v688_v50  ;;  %v10379_v55 = vld [vmem:[#allocation34_spill] sm:$0xff] }
 0x3e3   : > { %2337 = vmatmul.f32.vlgmr.msrb.gmra.mxu0 %v9026_v25  ;;  %v692_v8 = vadd.f32 %v10377_v26, %v665_v44 }
 0x3e4   : > { %2570 = vmatpush.msra.mxu3 %v9070_v37  ;;  %2596 = vmatpush.msrb.mxu0 %v9044_v29 }
 0x3e5   : > { %2376 = vmatmul.f32.vlgmr.msrb.gmra.mxu1 %v9003_v10  ;;  %v2245_v46 = vmul.f32 %v692_v8, %v692_v8 }
 0x3e6   : > { %2599 = vmatpush.msrb.mxu0 %v9052_v32  ;;  %2626 = vmatpush.msrb.mxu1 %v9016_v20 }
 0x3e8   : > { %2628 = vmatpush.msrb.mxu1 %v9046_v30 }
 0x3e9   : > { %2209 = vmatmul.f32.vlgmr.msra.gmra.mxu2 %v2072_v9  ;;  %2240 = vmatmul.f32.gmra.mxu3 %v2080_v2  ;;  %v954_v9 = vadd.f32 %v9165_v58, %v9171_v6  ;;  %v1372_v6 = vadd.f32 %v9221_v48, %v1342_v22  ;;  %v10358_v48 = vld [vmem:[#allocation27_spill] sm:$0xff] }
 0x3ea   : > { %2525 = vmatpush.msra.mxu2 %v9016_v20 }
 0x3eb   : > { %2345 = vmatmul.f32.gmra.mxu0 %v9033_v27  ;;  %v984_v59 = vadd.f32 %v9167_v62, %v954_v9  ;;  %v1402_v1 = vadd.f32 %v10358_v48, %v1372_v6  ;;  %v1051_v9 = vadd.f32 %v10369_v12, %v1020_v43 }
 0x3ec   : > { %2527 = vmatpush.msra.mxu2 %v9046_v30 }
 0x3ed   : > { %2380 = vmatmul.f32.gmra.mxu1 %v9005_v11  ;;  %v1014_v58 = vadd.f32 %v9169_v4, %v984_v59  ;;  %v10357_v4 = vld [vmem:[#allocation28_spill] sm:$0xff]  ;;  %v1435_v47 = vadd.f32 %v10362_v36, %v1402_v1  ;;  %v10371_v59 = vld [vmem:[#allocation38_spill] sm:$0xff]  ;;  %v1078_v39 = vadd.f32 %v10375_v45, %v1051_v9 }
 0x3ee   : > { %v1346_v52 = vadd.f32 %v10357_v4, %v10356_v14  ;;  %v1796_v22 = vadd.f32 %v10371_v59, %v1765_v51  ;;  %v10378_v4 = vld [vmem:[#allocation41_spill] sm:$0xff] }
 0x3ef   : > { %v1047_v62 = vadd.f32 %v9183_v19, %v1014_v58  ;;  %v1462_v54 = vadd.f32 %v10370_v28, %v1435_v47  ;;  %v10373_v58 = vld [vmem:[#allocation30_spill] sm:$0xff]  ;;  %v2247_v1 = vmul.f32 %v1078_v39, %v1078_v39 }
 0x3f0   : > { %v1377_v53 = vadd.f32 %v10366_v63, %v1346_v52 }
 0x3f1   : > { %2213 = vmatmul.f32.gmra.mxu2 %v2080_v2  ;;  %2436 = vmatmul.f32.vlgmr.msrb.gmra.mxu3 %v9014_v18  ;;  %v1074_v19 = vadd.f32 %v10361_v57, %v1047_v62  ;;  %v1850_v2 = vadd.f32 %v10367_v56, %v1823_v42  ;;  %v1827_v62 = vadd.f32 %v10374_v41, %v1796_v22 }
 0x3f2   : > { %2688 = vmatpush.msrb.mxu3 %v9016_v20  ;;  %v1408_v6 = vadd.f32 %v10373_v58, %v1377_v53  ;;  %v2250_v61 = vsub.f32 %v1462_v54, %v2244_v17  ;;  %v2267_v43 = vadd.f32 %v2247_v1, %v2245_v46 }
 0x3f3   : > { %2469 = vmatmul.f32.vlgmr.msra.gmra.mxu0 %v9003_v10  ;;  %v2246_v15 = vmul.f32 %v1074_v19, %v1074_v19  ;;  %v1854_v52 = vadd.f32 %v10378_v4, %v1827_v62  ;;  %v2248_v41 = vmul.f32 %v1074_v19, %v688_v50 }
 0x3f4   : > { %2690 = vmatpush.msrb.mxu3 %v9046_v30  ;;  %v1439_v5 = vadd.f32 %v10376_v3, %v1408_v6 }
 0x3f5   : > { %2496 = vmatmul.f32.vlgmr.msra.gmra.mxu1 %v9003_v10  ;;  %v2252_v38 = vsub.f32 %v1850_v2, %v2246_v15  ;;  %v2266_v48 = vadd.f32 %v2246_v15, %v2244_v17  ;;  %v2253_v57 = vsub.f32 %v1854_v52, %v2247_v1  ;;  %v2269_v2 = vadd.f32 0.0001, %v2267_v43 }
 0x3f6   : > { %v1466_v42 = vadd.f32 %v10379_v55, %v1439_v5  ;;  %v2256_v4 = vmul.f32 2.0, %v2248_v41 }
 0x3f7   : > { %v2270_v14 = vadd.f32 %v2252_v38, %v2250_v61  ;;  %v2268_v47 = vadd.f32 0.0001, %v2266_v48 }
 0x3f8   : > { %v2251_v60 = vsub.f32 %v1466_v42, %v2245_v46 }
 0x3f9   : > { %2406 = vmatmul.f32.vlgmr.msrb.gmra.mxu2 %v9008_v13  ;;  %2442 = vmatmul.f32.gmra.mxu3 %v9023_v24  ;;  %v2272_v40 = vadd.f32 0.0009, %v2270_v14 }
 0x3fa   : > { %2659 = vmatpush.msrb.mxu2 %v9049_v31  ;;  %v2271_v23 = vadd.f32 %v2253_v57, %v2251_v60  ;;  %v2258_v57 = vadd.f32 0.0001, %v2256_v4  ;;  %v9408_v4 = vld [vmem:[%s8977_s5 + $0x10] sm:$0xff] }
 0x3fb   : > { %2473 = vmatmul.f32.gmra.mxu0 %v9005_v11  ;;  %v2274_v21 = vmul.f32 %v2272_v40, %v2268_v47 }
 0x3fc   : > { %2663 = vmatpush.msrb.mxu2 %v9060_v34  ;;  %v2273_v53 = vadd.f32 0.0009, %v2271_v23 }
 0x3fd   : > { %2500 = vmatmul.f32.gmra.mxu1 %v9005_v11  ;;  %8579 = vrcp.f32 %v2274_v21  ;;  %v2287_v55 = vand.u32 2147483648, %v2274_v21  ;;  %vm2281_vm2 = vweird.f32 %v2274_v21  ;;  %v2285_v19 = vand.u32 2147483647, %v2274_v21 }
 0x3fe   : > { %v9381_v49 = vmul.f32 %v2273_v53, %v2269_v2 }
 0x3ff   : > { %vm2286_vm4 = vcmp.eq.f32.partialorder %v2285_v19, 8.507059e+37 }
 0x400   : > { %8581 = vrcp.f32 %v9381_v49  ;;  %vm2295_vm6 = vweird.f32 %v9381_v49 }
 0x401   : > { %2411 = vmatmul.f32.gmra.mxu2 %v9011_v16 }
 0x403   : > { %v8580_v12 = vpop.eup %8579 }
 0x404   : > { %v2277_v59 = vmul.f32 %v8580_v12, %v2274_v21  ;;  %vm2282_vm1 = vweird.f32 %v8580_v12  ;;  %v9391_v21 = vld [vmem:[%s8977_s5 + $0x18] sm:$0xff] }
 0x405   : > { %vm2283_vm3 = vmor %vm2281_vm2, %vm2282_vm1 }
 0x406   : > { %v2278_v44 = vsub.f32 1.0, %v2277_v59  ;;  %v9384_v58 = vpop.eup %8581 }
 0x407   : > { %v2291_v61 = vmul.f32 %v9384_v58, %v9381_v49  ;;  %vm2296_vm5 = vweird.f32 %v9384_v58 }
 0x408   : > { %v2279_v5 = vmul.f32 %v8580_v12, %v2278_v44  ;;  %vm2297_vm7 = vmor %vm2295_vm6, %vm2296_vm5 }
 0x409   : > { %v2292_v1 = vsub.f32 1.0, %v2291_v61 }
 0x40a   : > { %v2280_v48 = vadd.f32 %v8580_v12, %v2279_v5 }
 0x40b   : > { %v2293_v43 = vmul.f32 %v9384_v58, %v2292_v1 }
 0x450   : > { %v2147_v51 = vpop.f32.mrf.mxu0 }
 0x452   : > { %v2177_v63 = vpop.f32.mrf.mxu1 }
 0x454   : > { %v2117_v36 = vpop.f32.mrf.mxu3 }
 0x458   : > { %v2152_v15 = vpop.f32.mrf.mxu0 }
 0x45a   : > { %v2183_v28 = vpop.f32.mrf.mxu1 }
 0x45c   : > { %v2078_v56 = vpop.f32.mrf.mxu2  ;;  %v2121_v7 = vpop.f32.mrf.mxu3 }
 0x45d   : > { %v2118_v9 = vadd.f32 %v2117_v36, %v2078_v56  ;;  %v2249_v36 = vmul.f32 %v1078_v39, %v692_v8 }
 0x45f   : > { %v2148_v22 = vadd.f32 %v2147_v51, %v2118_v9  ;;  %v2284_v51 = vsel %vm2283_vm3, %v8580_v12, %v2280_v48  ;;  %v2294_v9 = vadd.f32 %v9384_v58, %v2293_v43  ;;  %v2714_v12 = vand.u32 4294901760, %v9391_v21 }
 0x460   : > { %v2338_v33 = vpop.f32.mrf.mxu0  ;;  %v2716_v48 = vand.u32 4294901760, %v9408_v4 }
 0x461   : > { %v2178_v38 = vadd.f32 %v2177_v63, %v2148_v22  ;;  %v2288_v63 = vor.u32 1.1754944e-38, %v2287_v55  ;;  %2715 = vmatpush.msra.mxu0 %v2714_v12  ;;  %v2750_v44 = vsub.f32 %v9391_v21, %v2714_v12  ;;  %v2298_v61 = vsel %vm2297_vm7, %v9384_v58, %v2294_v9 }
 0x462   : > { %v2377_v45 = vpop.f32.mrf.mxu1  ;;  %v2756_v58 = vsub.f32 %v9408_v4, %v2716_v48 }
 0x463   : > { %v2378_v59 = vadd.f32 %v2377_v45, %v2338_v33  ;;  %v2751_v5 = vand.u32 4294901760, %v2750_v44  ;;  %2717 = vmatpush.msra.mxu0 %v2716_v48 }
 0x464   : > { %v2086_v54 = vpop.f32.mrf.mxu2  ;;  %v2237_v17 = vpop.f32.mrf.mxu3 }
 0x465   : > { %v2122_v6 = vadd.f32 %v2121_v7, %v2086_v54  ;;  %v2257_v7 = vmul.f32 2.0, %v2249_v36 }
 0x467   : > { %v2153_v26 = vadd.f32 %v2152_v15, %v2122_v6  ;;  %v2289_v15 = vsel %vm2286_vm4, %v2288_v63, %v2284_v51  ;;  %v2259_v6 = vadd.f32 0.0001, %v2257_v7 }
 0x468   : > { %v2346_v46 = vpop.f32.mrf.mxu0 }
 0x469   : > { %v2184_v50 = vadd.f32 %v2183_v28, %v2153_v26  ;;  %v2301_v28 = vand.u32 2147483648, %v9381_v49 }
 0x46a   : > { %v2381_v53 = vpop.f32.mrf.mxu1 }
 0x46b   : > { %v2302_v33 = vor.u32 1.1754944e-38, %v2301_v28 }
 0x46c   : > { %v2210_v62 = vpop.f32.mrf.mxu2  ;;  %v2241_v42 = vpop.f32.mrf.mxu3 }
 0x46d   : > { %v2211_v3 = vadd.f32 %v2210_v62, %v2178_v38 }
 0x46f   : > { %v2238_v14 = vadd.f32 %v2237_v17, %v2211_v3  ;;  %v2299_v17 = vand.u32 2147483647, %v9381_v49 }
 0x471   : > { %v2254_v52 = vsub.f32 %v2238_v14, %v2248_v41  ;;  %v2470_v41 = vpop.f32.mrf.mxu0  ;;  %vm2300_vm8 = vcmp.eq.f32.partialorder %v2299_v17, 8.507059e+37  ;;  %v2752_v14 = vsub.f32 %v2750_v44, %v2751_v5 }
 0x472   : > { %v2497_v45 = vpop.f32.mrf.mxu1 }
 0x473   : > { %v2260_v40 = vmul.f32 2.0, %v2254_v52  ;;  %v2303_v52 = vsel %vm2300_vm8, %v2302_v33, %v2298_v61 }
 0x474   : > { %v2214_v47 = vpop.f32.mrf.mxu2  ;;  %v2437_v54 = vpop.f32.mrf.mxu3 }
 0x475   : > { %v2262_v60 = vadd.f32 0.0009, %v2260_v40  ;;  %v2215_v23 = vadd.f32 %v2214_v47, %v2184_v50  ;;  %v2382_v40 = vadd.f32 %v2381_v53, %v2346_v46 }
 0x477   : > { %v2264_v56 = vmul.f32 %v2262_v60, %v2258_v57  ;;  %v2242_v2 = vadd.f32 %v2241_v42, %v2215_v23  ;;  %v2753_v42 = vand.u32 4294901760, %v2752_v14 }
 0x479   : > { %v2304_v39 = vmul.f32 %v2289_v15, %v2264_v56  ;;  %v2255_v8 = vsub.f32 %v2242_v2, %v2249_v36  ;;  %2754 = vmatpush.msra.mxu1 %v2753_v42  ;;  %v2757_v36 = vand.u32 4294901760, %v2756_v58  ;;  %v2474_v23 = vpop.f32.mrf.mxu0 }
 0x47a   : > { %v2501_v2 = vpop.f32.mrf.mxu1 }
 0x47b   : > { %2306 = vst.msk [vmem:[%s9398_s21] sm:$0xff] %vm301_vm0, %v2304_v39  ;;  %v2261_v22 = vmul.f32 2.0, %v2255_v8  ;;  %v2758_v43 = vsub.f32 %v2756_v58, %v2757_v36 }
 0x47c   : > { %v2407_v38 = vpop.f32.mrf.mxu2  ;;  %v2443_v57 = vpop.f32.mrf.mxu3 }
 0x47d   : > { %v2263_v62 = vadd.f32 0.0009, %v2261_v22  ;;  %v2408_v3 = vadd.f32 %v2407_v38, %v2378_v59  ;;  %v2759_v7 = vand.u32 4294901760, %v2758_v43 }
 0x47f   : > { %v2265_v26 = vmul.f32 %v2263_v62, %v2259_v6  ;;  %v2438_v49 = vadd.f32 %v2437_v54, %v2408_v3  ;;  %2760 = vmatpush.msra.mxu1 %v2759_v7 }
 0x481   : > { %v2305_v1 = vmul.f32 %v2303_v52, %v2265_v26  ;;  %v2471_v55 = vadd.f32 %v2470_v41, %v2438_v49 }
 0x483   : > { %2307 = vst.msk [vmem:[%s9398_s21 + $0x8] sm:$0xff] %vm301_vm0, %v2305_v1  ;;  %v2498_v19 = vadd.f32 %v2497_v45, %v2471_v55  ;;  %v10386_v1 = vld [vmem:[#allocation43_spill] sm:$0xff] }
 0x484   : > { %v2412_v50 = vpop.f32.mrf.mxu2  ;;  %v3087_v55 = vmul.f32 %v10386_v1, %v10386_v1 }
 0x485   : > { %v2505_v47 = vsel %vm301_vm0, %v2498_v19, 0  ;;  %v2413_v60 = vadd.f32 %v2412_v50, %v2382_v40 }
 0x486   : > { %v2528_v51 = vand.u32 4294901760, %v2505_v47 }
 0x487   : > { %v2444_v63 = vadd.f32 %v2443_v57, %v2413_v60 }
 0x488   : > { %v2529_v56 = vsub.f32 %v2505_v47, %v2528_v51  ;;  %2572 = vmatmul.f32.vlgmr.msra.gmra.mxu3 %v2528_v51 }
 0x489   : > { %v2475_v15 = vadd.f32 %v2474_v23, %v2444_v63  ;;  %2816 = vmatpush.msra.mxu3 %v2714_v12 }
 0x48a   : > { %v2530_v39 = vand.u32 4294901760, %v2529_v56  ;;  %2602 = vmatmul.f32.vlgmr.msrb.gmra.mxu0 %v2529_v56 }
 0x48b   : > { %v2502_v46 = vadd.f32 %v2501_v2, %v2475_v15  ;;  %2818 = vmatpush.msra.mxu3 %v2716_v48  ;;  %2849 = vmatpush.msrb.mxu0 %v2751_v5 }
 0x48c   : > { %v2531_v53 = vsub.f32 %v2529_v56, %v2530_v39  ;;  %2632 = vmatmul.f32.vlgmr.msrb.gmra.mxu1 %v2530_v39 }
 0x48d   : > { %v2508_v8 = vsel %vm301_vm0, %v2502_v46, 0  ;;  %2878 = vmatpush.msrb.mxu1 %v2714_v12  ;;  %2853 = vmatpush.msrb.mxu0 %v2757_v36 }
 0x48e   : > { %v2532_v9 = vand.u32 4294901760, %v2531_v53  ;;  %v2536_v28 = vand.u32 4294901760, %v2508_v8 }
 0x48f   : > { %2880 = vmatpush.msrb.mxu1 %v2716_v48 }
 0x490   : > { %2533 = vmatmul.f32.vlgmr.msra.gmra.mxu2 %v2532_v9  ;;  %2576 = vmatmul.f32.gmra.mxu3 %v2536_v28  ;;  %v2537_v54 = vsub.f32 %v2508_v8, %v2536_v28 }
 0x491   : > { %2786 = vmatpush.msra.mxu2 %v2750_v44 }
 0x492   : > { %2607 = vmatmul.f32.gmra.mxu0 %v2537_v54  ;;  %v2538_v59 = vand.u32 4294901760, %v2537_v54 }
 0x493   : > { %2789 = vmatpush.msra.mxu2 %v2756_v58  ;;  %v3102_v58 = vand.u32 4294901760, %v3087_v55 }
 0x494   : > { %2638 = vmatmul.f32.gmra.mxu1 %v2538_v59  ;;  %v2539_v22 = vsub.f32 %v2537_v54, %v2538_v59 }
 0x495   : > { %v3138_v57 = vsub.f32 %v3087_v55, %v3102_v58 }
 0x496   : > { %v2540_v17 = vand.u32 4294901760, %v2539_v22 }
 0x497   : > { %v3139_v60 = vand.u32 4294901760, %v3138_v57 }
 0x498   : > { %2541 = vmatmul.f32.gmra.mxu2 %v2540_v17  ;;  %2692 = vmatmul.f32.vlgmr.msrb.gmra.mxu3 %v2528_v51 }
 0x499   : > { %2950 = vmatpush.msrb.mxu3 %v9064_v35  ;;  %v3140_v43 = vsub.f32 %v3138_v57, %v3139_v60 }
 0x49a   : > { %2723 = vmatmul.f32.vlgmr.msra.gmra.mxu0 %v9026_v25 }
 0x49b   : > { %2956 = vmatpush.msrb.mxu3 %v9070_v37  ;;  %2982 = vmatpush.msra.mxu0 %v9044_v29  ;;  %v3141_v2 = vand.u32 4294901760, %v3140_v43 }
 0x49c   : > { %2762 = vmatmul.f32.vlgmr.msra.gmra.mxu1 %v9003_v10 }
 0x49d   : > { %2985 = vmatpush.msra.mxu0 %v9052_v32  ;;  %3012 = vmatpush.msra.mxu1 %v9016_v20 }
 0x49f   : > { %3014 = vmatpush.msra.mxu1 %v9046_v30 }
 0x4a0   : > { %2665 = vmatmul.f32.vlgmr.msrb.gmra.mxu2 %v2528_v51  ;;  %2696 = vmatmul.f32.gmra.mxu3 %v2536_v28  ;;  %v3086_v51 = vmul.f32 %v9303_v0, %v9303_v0 }
 0x4a1   : > { %2911 = vmatpush.msrb.mxu2 %v9016_v20 }
 0x4a2   : > { %2731 = vmatmul.f32.gmra.mxu0 %v9033_v27  ;;  %v3104_v63 = vand.u32 4294901760, %v3086_v51 }
 0x4a3   : > { %2913 = vmatpush.msrb.mxu2 %v9046_v30 }
 0x4a4   : > { %2766 = vmatmul.f32.gmra.mxu1 %v9005_v11  ;;  %v3144_v7 = vsub.f32 %v3086_v51, %v3104_v63 }
 0x4a6   : > { %v3145_v8 = vand.u32 4294901760, %v3144_v7 }
 0x4a8   : > { %2669 = vmatmul.f32.gmra.mxu2 %v2536_v28  ;;  %2822 = vmatmul.f32.vlgmr.msra.gmra.mxu3 %v9014_v18  ;;  %v3146_v22 = vsub.f32 %v3144_v7, %v3145_v8 }
 0x4a9   : > { %3074 = vmatpush.msra.mxu3 %v9016_v20 }
 0x4aa   : > { %2855 = vmatmul.f32.vlgmr.msrb.gmra.mxu0 %v9003_v10 }
 0x4ab   : > { %3076 = vmatpush.msra.mxu3 %v9046_v30  ;;  %3103 = vmatpush.msrb.mxu0 %v3102_v58 }
 0x4ac   : > { %2882 = vmatmul.f32.vlgmr.msrb.gmra.mxu1 %v9003_v10 }
 0x4ad   : > { %3105 = vmatpush.msrb.mxu0 %v3104_v63  ;;  %3142 = vmatpush.msrb.mxu1 %v3141_v2 }
 0x4b0   : > { %2792 = vmatmul.f32.vlgmr.msra.gmra.mxu2 %v9008_v13  ;;  %2828 = vmatmul.f32.gmra.mxu3 %v9023_v24 }
 0x4b1   : > { %3045 = vmatpush.msra.mxu2 %v9049_v31 }
 0x4b2   : > { %2859 = vmatmul.f32.gmra.mxu0 %v9005_v11 }
 0x4b3   : > { %3049 = vmatpush.msra.mxu2 %v9060_v34 }
 0x4b4   : > { %2886 = vmatmul.f32.gmra.mxu1 %v9005_v11 }
 0x4b8   : > { %2797 = vmatmul.f32.gmra.mxu2 %v9011_v16 }
 0x507   : > { %v9442_v44 = vpop.f32.mrf.mxu0 }
 0x509   : > { %v9444_v6 = vpop.f32.mrf.mxu1 }
 0x50b   : > { %v9440_v12 = vpop.f32.mrf.mxu3 }
 0x50f   : > { %v9450_v62 = vpop.f32.mrf.mxu0 }
 0x510   : > { %10380 = vst [vmem:[#allocation36_spill] sm:$0xff] %v9450_v62 }
 0x511   : > { %v9452_v61 = vpop.f32.mrf.mxu1 }
 0x512   : > { %10381 = vst [vmem:[#allocation19_spill] sm:$0xff] %v9452_v61 }
 0x513   : > { %v9446_v38 = vpop.f32.mrf.mxu2  ;;  %v9448_v41 = vpop.f32.mrf.mxu3 }
 0x517   : > { %v2724_v33 = vpop.f32.mrf.mxu0 }
 0x519   : > { %v2763_v26 = vpop.f32.mrf.mxu1 }
 0x51a   : > { %v2764_v40 = vadd.f32 %v2763_v26, %v2724_v33  ;;  %v3147_v26 = vand.u32 4294901760, %v3146_v22 }
 0x51b   : > { %v9454_v3 = vpop.f32.mrf.mxu2  ;;  %v9456_v5 = vpop.f32.mrf.mxu3 }
 0x51c   : > { %10382 = vst [vmem:[#allocation22_spill] sm:$0xff] %v9456_v5  ;;  %3148 = vmatpush.msrb.mxu1 %v3147_v26 }
 0x51f   : > { %v2732_v14 = vpop.f32.mrf.mxu0 }
 0x521   : > { %v2767_v48 = vpop.f32.mrf.mxu1 }
 0x522   : > { %v2768_v15 = vadd.f32 %v2767_v48, %v2732_v14 }
 0x523   : > { %v9458_v45 = vpop.f32.mrf.mxu2  ;;  %v9460_v49 = vpop.f32.mrf.mxu3 }
 0x524   : > { %10383 = vst [vmem:[#allocation31_spill] sm:$0xff] %v9458_v45 }
 0x525   : > { %10384 = vst [vmem:[#allocation28_spill] sm:$0xff] %v9460_v49 }
 0x527   : > { %v2856_v50 = vpop.f32.mrf.mxu0 }
 0x529   : > { %v2883_v47 = vpop.f32.mrf.mxu1 }
 0x52b   : > { %v9462_v52 = vpop.f32.mrf.mxu2  ;;  %v2823_v42 = vpop.f32.mrf.mxu3 }
 0x52c   : > { %10385 = vst [vmem:[#allocation27_spill] sm:$0xff] %v9462_v52 }
 0x52f   : > { %v2860_v59 = vpop.f32.mrf.mxu0 }
 0x531   : > { %v2887_v33 = vpop.f32.mrf.mxu1 }
 0x533   : > { %v2793_v19 = vpop.f32.mrf.mxu2  ;;  %v2829_v53 = vpop.f32.mrf.mxu3 }
 0x534   : > { %v2794_v36 = vadd.f32 %v2793_v19, %v2764_v40 }
 0x536   : > { %v2824_v23 = vadd.f32 %v2823_v42, %v2794_v36 }
 0x538   : > { %v2857_v56 = vadd.f32 %v2856_v50, %v2824_v23 }
 0x53a   : > { %v2884_v39 = vadd.f32 %v2883_v47, %v2857_v56 }
 0x53b   : > { %v2798_v46 = vpop.f32.mrf.mxu2 }
 0x53c   : > { %v2891_v9 = vsel %vm301_vm0, %v2884_v39, 0  ;;  %v2799_v28 = vadd.f32 %v2798_v46, %v2768_v15 }
 0x53d   : > { %v2914_v54 = vand.u32 4294901760, %v2891_v9 }
 0x53e   : > { %v2830_v0 = vadd.f32 %v2829_v53, %v2799_v28 }
 0x53f   : > { %v2915_v17 = vsub.f32 %v2891_v9, %v2914_v54  ;;  %2958 = vmatmul.f32.vlgmr.msrb.gmra.mxu3 %v2914_v54 }
 0x540   : > { %v2861_v1 = vadd.f32 %v2860_v59, %v2830_v0  ;;  %3204 = vmatpush.msrb.mxu3 %v3102_v58 }
 0x541   : > { %v2916_v55 = vand.u32 4294901760, %v2915_v17  ;;  %2988 = vmatmul.f32.vlgmr.msra.gmra.mxu0 %v2915_v17 }
 0x542   : > { %v2888_v14 = vadd.f32 %v2887_v33, %v2861_v1  ;;  %3206 = vmatpush.msrb.mxu3 %v3104_v63  ;;  %3237 = vmatpush.msra.mxu0 %v3139_v60 }
 0x543   : > { %v2917_v48 = vsub.f32 %v2915_v17, %v2916_v55  ;;  %3018 = vmatmul.f32.vlgmr.msra.gmra.mxu1 %v2916_v55 }
 0x544   : > { %v2894_v42 = vsel %vm301_vm0, %v2888_v14, 0  ;;  %3266 = vmatpush.msra.mxu1 %v3102_v58  ;;  %3241 = vmatpush.msra.mxu0 %v3145_v8 }
 0x545   : > { %v2918_v40 = vand.u32 4294901760, %v2917_v48  ;;  %v2922_v19 = vand.u32 4294901760, %v2894_v42  ;;  %v3474_v48 = vmul.f32 %v9408_v4, %v9408_v4 }
 0x546   : > { %3268 = vmatpush.msra.mxu1 %v3104_v63 }
 0x547   : > { %2919 = vmatmul.f32.vlgmr.msrb.gmra.mxu2 %v2918_v40  ;;  %2962 = vmatmul.f32.gmra.mxu3 %v2922_v19  ;;  %v2923_v50 = vsub.f32 %v2894_v42, %v2922_v19 }
 0x548   : > { %3174 = vmatpush.msrb.mxu2 %v3138_v57 }
 0x549   : > { %2993 = vmatmul.f32.gmra.mxu0 %v2923_v50  ;;  %v2924_v36 = vand.u32 4294901760, %v2923_v50 }
 0x54a   : > { %3177 = vmatpush.msrb.mxu2 %v3144_v7 }
 0x54b   : > { %3024 = vmatmul.f32.gmra.mxu1 %v2924_v36  ;;  %v2925_v47 = vsub.f32 %v2923_v50, %v2924_v36 }
 0x54d   : > { %v2926_v51 = vand.u32 4294901760, %v2925_v47 }
 0x54f   : > { %2927 = vmatmul.f32.gmra.mxu2 %v2926_v51  ;;  %3078 = vmatmul.f32.vlgmr.msra.gmra.mxu3 %v2914_v54 }
 0x550   : > { %3338 = vmatpush.msra.mxu3 %v9064_v35 }
 0x551   : > { %3111 = vmatmul.f32.vlgmr.msrb.gmra.mxu0 %v9026_v25 }
 0x552   : > { %3344 = vmatpush.msra.mxu3 %v9070_v37  ;;  %3370 = vmatpush.msrb.mxu0 %v9044_v29 }
 0x553   : > { %3150 = vmatmul.f32.vlgmr.msrb.gmra.mxu1 %v9003_v10 }
 0x554   : > { %3373 = vmatpush.msrb.mxu0 %v9052_v32  ;;  %3400 = vmatpush.msrb.mxu1 %v9016_v20 }
 0x556   : > { %3402 = vmatpush.msrb.mxu1 %v9046_v30 }
 0x557   : > { %3051 = vmatmul.f32.vlgmr.msra.gmra.mxu2 %v2914_v54  ;;  %3082 = vmatmul.f32.gmra.mxu3 %v2922_v19  ;;  %v3475_v54 = vmul.f32 %v9391_v21, %v9391_v21 }
 0x558   : > { %3299 = vmatpush.msra.mxu2 %v9016_v20 }
 0x559   : > { %3119 = vmatmul.f32.gmra.mxu0 %v9033_v27  ;;  %v3490_v22 = vand.u32 4294901760, %v3475_v54 }
 0x55a   : > { %3301 = vmatpush.msra.mxu2 %v9046_v30 }
 0x55b   : > { %3154 = vmatmul.f32.gmra.mxu1 %v9005_v11  ;;  %v3526_v26 = vsub.f32 %v3475_v54, %v3490_v22 }
 0x55d   : > { %v3527_v14 = vand.u32 4294901760, %v3526_v26 }
 0x55f   : > { %3055 = vmatmul.f32.gmra.mxu2 %v2922_v19  ;;  %3210 = vmatmul.f32.vlgmr.msrb.gmra.mxu3 %v9014_v18  ;;  %v3528_v40 = vsub.f32 %v3526_v26, %v3527_v14  ;;  %v3492_v19 = vand.u32 4294901760, %v3474_v48 }
 0x560   : > { %3462 = vmatpush.msrb.mxu3 %v9016_v20 }
 0x561   : > { %3243 = vmatmul.f32.vlgmr.msra.gmra.mxu0 %v9003_v10  ;;  %v3529_v36 = vand.u32 4294901760, %v3528_v40  ;;  %v3532_v47 = vsub.f32 %v3474_v48, %v3492_v19 }
 0x562   : > { %3464 = vmatpush.msrb.mxu3 %v9046_v30  ;;  %3491 = vmatpush.msra.mxu0 %v3490_v22 }
 0x563   : > { %3270 = vmatmul.f32.vlgmr.msra.gmra.mxu1 %v9003_v10 }
 0x564   : > { %3493 = vmatpush.msra.mxu0 %v3492_v19  ;;  %3530 = vmatpush.msra.mxu1 %v3529_v36 }
 0x567   : > { %3180 = vmatmul.f32.vlgmr.msrb.gmra.mxu2 %v9008_v13  ;;  %3216 = vmatmul.f32.gmra.mxu3 %v9023_v24 }
 0x568   : > { %3433 = vmatpush.msrb.mxu2 %v9049_v31 }
 0x569   : > { %3247 = vmatmul.f32.gmra.mxu0 %v9005_v11 }
 0x56a   : > { %3437 = vmatpush.msrb.mxu2 %v9060_v34 }
 0x56b   : > { %3274 = vmatmul.f32.gmra.mxu1 %v9005_v11 }
 0x56f   : > { %3185 = vmatmul.f32.gmra.mxu2 %v9011_v16 }
 0x5be   : > { %v9496_v57 = vpop.f32.mrf.mxu0 }
 0x5c0   : > { %v9498_v60 = vpop.f32.mrf.mxu1 }
 0x5c2   : > { %v9494_v58 = vpop.f32.mrf.mxu3 }
 0x5c6   : > { %v9504_v63 = vpop.f32.mrf.mxu0 }
 0x5c7   : > { %10387 = vst [vmem:[#allocation40_spill] sm:$0xff] %v9504_v63 }
 0x5c8   : > { %v9506_v56 = vpop.f32.mrf.mxu1 }
 0x5c9   : > { %10388 = vst [vmem:[#allocation16_spill] sm:$0xff] %v9506_v56 }
 0x5ca   : > { %v9500_v23 = vpop.f32.mrf.mxu2  ;;  %v9502_v43 = vpop.f32.mrf.mxu3 }
 0x5ce   : > { %v3112_v15 = vpop.f32.mrf.mxu0 }
 0x5d0   : > { %v3151_v46 = vpop.f32.mrf.mxu1 }
 0x5d1   : > { %v3152_v0 = vadd.f32 %v3151_v46, %v3112_v15 }
 0x5d2   : > { %v9508_v2 = vpop.f32.mrf.mxu2  ;;  %v9510_v7 = vpop.f32.mrf.mxu3 }
 0x5d3   : > { %10389 = vst [vmem:[#allocation24_spill] sm:$0xff] %v9510_v7 }
 0x5d6   : > { %v3120_v8 = vpop.f32.mrf.mxu0 }
 0x5d8   : > { %v3155_v28 = vpop.f32.mrf.mxu1 }
 0x5d9   : > { %v3156_v51 = vadd.f32 %v3155_v28, %v3120_v8 }
 0x5da   : > { %v9512_v39 = vpop.f32.mrf.mxu2  ;;  %v9514_v53 = vpop.f32.mrf.mxu3 }
 0x5db   : > { %10390 = vst [vmem:[#allocation33_spill] sm:$0xff] %v9514_v53  ;;  %v3533_v53 = vand.u32 4294901760, %v3532_v47 }
 0x5de   : > { %v3244_v33 = vpop.f32.mrf.mxu0 }
 0x5e0   : > { %v3271_v55 = vpop.f32.mrf.mxu1 }
 0x5e2   : > { %v9516_v9 = vpop.f32.mrf.mxu2  ;;  %v3211_v59 = vpop.f32.mrf.mxu3 }
 0x5e3   : > { %10391 = vst [vmem:[#allocation37_spill] sm:$0xff] %v9516_v9  ;;  %v3534_v9 = vsub.f32 %v3532_v47, %v3533_v53 }
 0x5e6   : > { %v3248_v52 = vpop.f32.mrf.mxu0 }
 0x5ea   : > { %v3181_v17 = vpop.f32.mrf.mxu2  ;;  %v3217_v46 = vpop.f32.mrf.mxu3 }
 0x5eb   : > { %v3182_v1 = vadd.f32 %v3181_v17, %v3152_v0 }
 0x5ed   : > { %v3212_v42 = vadd.f32 %v3211_v59, %v3182_v1  ;;  %v3275_v1 = vpop.f32.mrf.mxu1 }
 0x5ef   : > { %v3245_v50 = vadd.f32 %v3244_v33, %v3212_v42  ;;  %v3535_v33 = vand.u32 4294901760, %v3534_v9 }
 0x5f1   : > { %v3272_v49 = vadd.f32 %v3271_v55, %v3245_v50  ;;  %3536 = vmatpush.msra.mxu1 %v3535_v33 }
 0x5f2   : > { %v3186_v15 = vpop.f32.mrf.mxu2 }
 0x5f3   : > { %v3279_v54 = vsel %vm301_vm0, %v3272_v49, 0  ;;  %v3187_v0 = vadd.f32 %v3186_v15, %v3156_v51 }
 0x5f4   : > { %v3302_v17 = vand.u32 4294901760, %v3279_v54 }
 0x5f5   : > { %v3218_v61 = vadd.f32 %v3217_v46, %v3187_v0 }
 0x5f6   : > { %v3303_v59 = vsub.f32 %v3279_v54, %v3302_v17  ;;  %3346 = vmatmul.f32.vlgmr.msra.gmra.mxu3 %v3302_v17 }
 0x5f7   : > { %v3249_v42 = vadd.f32 %v3248_v52, %v3218_v61  ;;  %3592 = vmatpush.msra.mxu3 %v3490_v22 }
 0x5f8   : > { %v3304_v48 = vand.u32 4294901760, %v3303_v59  ;;  %3376 = vmatmul.f32.vlgmr.msrb.gmra.mxu0 %v3303_v59 }
 0x5f9   : > { %v3276_v8 = vadd.f32 %v3275_v1, %v3249_v42  ;;  %3594 = vmatpush.msra.mxu3 %v3492_v19  ;;  %3625 = vmatpush.msrb.mxu0 %v3527_v14  ;;  %v8595_v42 = vld [vmem:[%s8969_s30 + $0x18] sm:$0xff] }
 0x5fa   : > { %v3305_v28 = vsub.f32 %v3303_v59, %v3304_v48  ;;  %3406 = vmatmul.f32.vlgmr.msrb.gmra.mxu1 %v3304_v48  ;;  %v3863_v48 = vmul.f32 %v8595_v42, %v9391_v21 }
 0x5fb   : > { %v3282_v49 = vsel %vm301_vm0, %v3276_v8, 0  ;;  %3654 = vmatpush.msrb.mxu1 %v3490_v22  ;;  %3629 = vmatpush.msrb.mxu0 %v3533_v53 }
 0x5fc   : > { %v3306_v55 = vand.u32 4294901760, %v3305_v28  ;;  %v3310_v40 = vand.u32 4294901760, %v3282_v49  ;;  %v3878_v28 = vand.u32 4294901760, %v3863_v48 }
 0x5fd   : > { %3656 = vmatpush.msrb.mxu1 %v3492_v19 }
 0x5fe   : > { %3307 = vmatmul.f32.vlgmr.msra.gmra.mxu2 %v3306_v55  ;;  %3350 = vmatmul.f32.gmra.mxu3 %v3310_v40  ;;  %v3311_v9 = vsub.f32 %v3282_v49, %v3310_v40 }
 0x5ff   : > { %3562 = vmatpush.msra.mxu2 %v3526_v26 }
 0x600   : > { %3381 = vmatmul.f32.gmra.mxu0 %v3311_v9  ;;  %v3312_v61 = vand.u32 4294901760, %v3311_v9 }
 0x601   : > { %3565 = vmatpush.msra.mxu2 %v3532_v47 }
 0x602   : > { %3412 = vmatmul.f32.gmra.mxu1 %v3312_v61  ;;  %v3313_v52 = vsub.f32 %v3311_v9, %v3312_v61  ;;  %v3914_v9 = vsub.f32 %v3863_v48, %v3878_v28 }
 0x604   : > { %v3314_v50 = vand.u32 4294901760, %v3313_v52 }
 0x606   : > { %3315 = vmatmul.f32.gmra.mxu2 %v3314_v50  ;;  %3466 = vmatmul.f32.vlgmr.msrb.gmra.mxu3 %v3302_v17  ;;  %v3915_v50 = vand.u32 4294901760, %v3914_v9 }
 0x607   : > { %3726 = vmatpush.msrb.mxu3 %v9064_v35 }
 0x608   : > { %3499 = vmatmul.f32.vlgmr.msra.gmra.mxu0 %v9026_v25 }
 0x609   : > { %3732 = vmatpush.msrb.mxu3 %v9070_v37  ;;  %3758 = vmatpush.msra.mxu0 %v9044_v29 }
 0x60a   : > { %3538 = vmatmul.f32.vlgmr.msra.gmra.mxu1 %v9003_v10 }
 0x60b   : > { %3761 = vmatpush.msra.mxu0 %v9052_v32  ;;  %3788 = vmatpush.msra.mxu1 %v9016_v20 }
 0x60d   : > { %3790 = vmatpush.msra.mxu1 %v9046_v30 }
 0x60e   : > { %3439 = vmatmul.f32.vlgmr.msrb.gmra.mxu2 %v3302_v17  ;;  %3470 = vmatmul.f32.gmra.mxu3 %v3310_v40 }
 0x60f   : > { %3687 = vmatpush.msrb.mxu2 %v9016_v20 }
 0x610   : > { %3507 = vmatmul.f32.gmra.mxu0 %v9033_v27 }
 0x611   : > { %3689 = vmatpush.msrb.mxu2 %v9046_v30 }
 0x612   : > { %3542 = vmatmul.f32.gmra.mxu1 %v9005_v11 }
 0x616   : > { %3443 = vmatmul.f32.gmra.mxu2 %v3310_v40  ;;  %3598 = vmatmul.f32.vlgmr.msra.gmra.mxu3 %v9014_v18 }
 0x617   : > { %3850 = vmatpush.msra.mxu3 %v9016_v20 }
 0x618   : > { %3631 = vmatmul.f32.vlgmr.msrb.gmra.mxu0 %v9003_v10 }
 0x619   : > { %3852 = vmatpush.msra.mxu3 %v9046_v30  ;;  %3879 = vmatpush.msrb.mxu0 %v3878_v28 }
 0x61a   : > { %3658 = vmatmul.f32.vlgmr.msrb.gmra.mxu1 %v9003_v10 }
 0x61e   : > { %3568 = vmatmul.f32.vlgmr.msra.gmra.mxu2 %v9008_v13  ;;  %3604 = vmatmul.f32.gmra.mxu3 %v9023_v24 }
 0x61f   : > { %3821 = vmatpush.msra.mxu2 %v9049_v31 }
 0x620   : > { %3635 = vmatmul.f32.gmra.mxu0 %v9005_v11 }
 0x621   : > { %3825 = vmatpush.msra.mxu2 %v9060_v34 }
 0x622   : > { %3662 = vmatmul.f32.gmra.mxu1 %v9005_v11 }
 0x626   : > { %3573 = vmatmul.f32.gmra.mxu2 %v9011_v16 }
 0x675   : > { %v9550_v22 = vpop.f32.mrf.mxu0 }
 0x677   : > { %v9552_v26 = vpop.f32.mrf.mxu1 }
 0x678   : > { %10392 = vst [vmem:[#allocation18_spill] sm:$0xff] %v9552_v26 }
 0x679   : > { %v9548_v53 = vpop.f32.mrf.mxu3 }
 0x67d   : > { %v9558_v36 = vpop.f32.mrf.mxu0 }
 0x67e   : > { %10394 = vst [vmem:[#allocation29_spill] sm:$0xff] %v9558_v36  ;;  %v3916_v36 = vsub.f32 %v3914_v9, %v3915_v50 }
 0x67f   : > { %v9560_v47 = vpop.f32.mrf.mxu1 }
 0x680   : > { %10395 = vst [vmem:[#allocation39_spill] sm:$0xff] %v9560_v47  ;;  %v8596_v47 = vld [vmem:[%s8969_s30 + $0x10] sm:$0xff]  ;;  %v3917_v5 = vand.u32 4294901760, %v3916_v36 }
 0x681   : > { %v9554_v14 = vpop.f32.mrf.mxu2  ;;  %v9556_v19 = vpop.f32.mrf.mxu3 }
 0x682   : > { %10393 = vst [vmem:[#allocation23_spill] sm:$0xff] %v9556_v19  ;;  %3918 = vmatpush.msrb.mxu1 %v3917_v5 }
 0x685   : > { %v3500_v46 = vpop.f32.mrf.mxu0 }
 0x687   : > { %v3539_v0 = vpop.f32.mrf.mxu1 }
 0x688   : > { %v3540_v49 = vadd.f32 %v3539_v0, %v3500_v46 }
 0x689   : > { %v9562_v51 = vpop.f32.mrf.mxu2  ;;  %v9564_v15 = vpop.f32.mrf.mxu3 }
 0x68a   : > { %10396 = vst [vmem:[#allocation17_spill] sm:$0xff] %v9562_v51 }
 0x68b   : > { %10397 = vst [vmem:[#allocation26_spill] sm:$0xff] %v9564_v15 }
 0x68d   : > { %v3508_v59 = vpop.f32.mrf.mxu0 }
 0x68f   : > { %v3543_v33 = vpop.f32.mrf.mxu1 }
 0x690   : > { %v3544_v42 = vadd.f32 %v3543_v33, %v3508_v59 }
 0x691   : > { %v9566_v54 = vpop.f32.mrf.mxu2  ;;  %v9568_v17 = vpop.f32.mrf.mxu3 }
 0x692   : > { %10398 = vst [vmem:[#allocation32_spill] sm:$0xff] %v9566_v54 }
 0x693   : > { %10399 = vst [vmem:[#allocation38_spill] sm:$0xff] %v9568_v17  ;;  %v3862_v17 = vmul.f32 %v8596_v47, %v9408_v4 }
 0x695   : > { %v3632_v40 = vpop.f32.mrf.mxu0 }
 0x697   : > { %v3659_v52 = vpop.f32.mrf.mxu1 }
 0x699   : > { %v9570_v1 = vpop.f32.mrf.mxu2  ;;  %v3599_v8 = vpop.f32.mrf.mxu3 }
 0x69a   : > { %10400 = vst [vmem:[#allocation21_spill] sm:$0xff] %v9570_v1  ;;  %v3880_v1 = vand.u32 4294901760, %v3862_v17 }
 0x69c   : > { %3881 = vmatpush.msrb.mxu0 %v3880_v1  ;;  %v3920_v21 = vsub.f32 %v3862_v17, %v3880_v1 }
 0x69d   : > { %v3636_v62 = vpop.f32.mrf.mxu0 }
 0x69e   : > { %v3921_v7 = vand.u32 4294901760, %v3920_v21 }
 0x6a0   : > { %v3922_v26 = vsub.f32 %v3920_v21, %v3921_v7 }
 0x6a1   : > { %v3569_v55 = vpop.f32.mrf.mxu2  ;;  %v3605_v0 = vpop.f32.mrf.mxu3 }
 0x6a2   : > { %v3570_v61 = vadd.f32 %v3569_v55, %v3540_v49 }
 0x6a4   : > { %v3600_v15 = vadd.f32 %v3599_v8, %v3570_v61  ;;  %v3663_v8 = vpop.f32.mrf.mxu1 }
 0x6a6   : > { %v3633_v56 = vadd.f32 %v3632_v40, %v3600_v15  ;;  %v3923_v15 = vand.u32 4294901760, %v3922_v26 }
 0x6a8   : > { %v3660_v54 = vadd.f32 %v3659_v52, %v3633_v56  ;;  %3924 = vmatpush.msrb.mxu1 %v3923_v15  ;;  %v9627_v15 = vld [vmem:[%s8969_s30 + $0x28] sm:$0xff] }
 0x6a9   : > { %v3574_v46 = vpop.f32.mrf.mxu2  ;;  %10407 = vst [vmem:[#allocation34_spill] sm:$0xff] %v9627_v15 }
 0x6aa   : > { %v3667_v48 = vsel %vm301_vm0, %v3660_v54, 0  ;;  %v3575_v49 = vadd.f32 %v3574_v46, %v3544_v42 }
 0x6ab   : > { %v3690_v55 = vand.u32 4294901760, %v3667_v48 }
 0x6ac   : > { %v3606_v4 = vadd.f32 %v3605_v0, %v3575_v49 }
 0x6ad   : > { %v3691_v47 = vsub.f32 %v3667_v48, %v3690_v55  ;;  %3734 = vmatmul.f32.vlgmr.msrb.gmra.mxu3 %v3690_v55 }
 0x6ae   : > { %v3637_v36 = vadd.f32 %v3636_v62, %v3606_v4  ;;  %3980 = vmatpush.msrb.mxu3 %v3878_v28 }
 0x6af   : > { %v3692_v17 = vand.u32 4294901760, %v3691_v47  ;;  %3764 = vmatmul.f32.vlgmr.msra.gmra.mxu0 %v3691_v47 }
 0x6b0   : > { %v3664_v56 = vadd.f32 %v3663_v8, %v3637_v36  ;;  %3982 = vmatpush.msrb.mxu3 %v3880_v1  ;;  %4013 = vmatpush.msra.mxu0 %v3915_v50  ;;  %v4335_v36 = vand.u32 4294901760, %v9627_v15 }
 0x6b1   : > { %v3693_v5 = vsub.f32 %v3691_v47, %v3692_v17  ;;  %3794 = vmatmul.f32.vlgmr.msra.gmra.mxu1 %v3692_v17 }
 0x6b2   : > { %v3670_v54 = vsel %vm301_vm0, %v3664_v56, 0  ;;  %4042 = vmatpush.msra.mxu1 %v3878_v28  ;;  %4017 = vmatpush.msra.mxu0 %v3921_v7 }
 0x6b3   : > { %v3694_v59 = vand.u32 4294901760, %v3693_v5  ;;  %v3698_v33 = vand.u32 4294901760, %v3670_v54  ;;  %v4371_v5 = vsub.f32 %v9627_v15, %v4335_v36 }
 0x6b4   : > { %4044 = vmatpush.msra.mxu1 %v3880_v1 }
 0x6b5   : > { %3695 = vmatmul.f32.vlgmr.msrb.gmra.mxu2 %v3694_v59  ;;  %3738 = vmatmul.f32.gmra.mxu3 %v3698_v33  ;;  %v3699_v26 = vsub.f32 %v3670_v54, %v3698_v33 }
 0x6b6   : > { %3950 = vmatpush.msrb.mxu2 %v3914_v9 }
 0x6b7   : > { %3769 = vmatmul.f32.gmra.mxu0 %v3699_v26  ;;  %v3700_v62 = vand.u32 4294901760, %v3699_v26 }
 0x6b8   : > { %3953 = vmatpush.msrb.mxu2 %v3920_v21 }
 0x6b9   : > { %3800 = vmatmul.f32.gmra.mxu1 %v3700_v62  ;;  %v3701_v40 = vsub.f32 %v3699_v26, %v3700_v62  ;;  %v4372_v26 = vand.u32 4294901760, %v4371_v5 }
 0x6bb   : > { %v3702_v61 = vand.u32 4294901760, %v3701_v40 }
 0x6bd   : > { %3703 = vmatmul.f32.gmra.mxu2 %v3702_v61  ;;  %3854 = vmatmul.f32.vlgmr.msra.gmra.mxu3 %v3690_v55  ;;  %v4373_v61 = vsub.f32 %v4371_v5, %v4372_v26 }
 0x6be   : > { %4114 = vmatpush.msra.mxu3 %v9064_v35 }
 0x6bf   : > { %3887 = vmatmul.f32.vlgmr.msrb.gmra.mxu0 %v9026_v25 }
 0x6c0   : > { %4120 = vmatpush.msra.mxu3 %v9070_v37  ;;  %4146 = vmatpush.msrb.mxu0 %v9044_v29 }
 0x6c1   : > { %3926 = vmatmul.f32.vlgmr.msrb.gmra.mxu1 %v9003_v10 }
 0x6c2   : > { %4149 = vmatpush.msrb.mxu0 %v9052_v32  ;;  %4176 = vmatpush.msrb.mxu1 %v9016_v20 }
 0x6c4   : > { %4178 = vmatpush.msrb.mxu1 %v9046_v30 }
 0x6c5   : > { %3827 = vmatmul.f32.vlgmr.msra.gmra.mxu2 %v3690_v55  ;;  %3858 = vmatmul.f32.gmra.mxu3 %v3698_v33 }
 0x6c6   : > { %4075 = vmatpush.msra.mxu2 %v9016_v20 }
 0x6c7   : > { %3895 = vmatmul.f32.gmra.mxu0 %v9033_v27 }
 0x6c8   : > { %4077 = vmatpush.msra.mxu2 %v9046_v30 }
 0x6c9   : > { %3930 = vmatmul.f32.gmra.mxu1 %v9005_v11 }
 0x6cd   : > { %3831 = vmatmul.f32.gmra.mxu2 %v3698_v33  ;;  %3986 = vmatmul.f32.vlgmr.msrb.gmra.mxu3 %v9014_v18 }
 0x6ce   : > { %4238 = vmatpush.msrb.mxu3 %v9016_v20 }
 0x6cf   : > { %4019 = vmatmul.f32.vlgmr.msra.gmra.mxu0 %v9003_v10 }
 0x6d0   : > { %4240 = vmatpush.msrb.mxu3 %v9046_v30  ;;  %4336 = vmatpush.msra.mxu0 %v4335_v36 }
 0x6d1   : > { %4046 = vmatmul.f32.vlgmr.msra.gmra.mxu1 %v9003_v10 }
 0x6d5   : > { %3956 = vmatmul.f32.vlgmr.msrb.gmra.mxu2 %v9008_v13  ;;  %3992 = vmatmul.f32.gmra.mxu3 %v9023_v24 }
 0x6d6   : > { %4209 = vmatpush.msrb.mxu2 %v9049_v31 }
 0x6d7   : > { %4023 = vmatmul.f32.gmra.mxu0 %v9005_v11 }
 0x6d8   : > { %4213 = vmatpush.msrb.mxu2 %v9060_v34 }
 0x6d9   : > { %4050 = vmatmul.f32.gmra.mxu1 %v9005_v11 }
 0x6dd   : > { %3961 = vmatmul.f32.gmra.mxu2 %v9011_v16 }
 0x72c   : > { %v9604_v1 = vpop.f32.mrf.mxu0 }
 0x72e   : > { %v9606_v28 = vpop.f32.mrf.mxu1 }
 0x730   : > { %v9602_v7 = vpop.f32.mrf.mxu3 }
 0x734   : > { %v9612_v50 = vpop.f32.mrf.mxu0 }
 0x735   : > { %10401 = vst [vmem:[#allocation30_spill] sm:$0xff] %v9612_v50 }
 0x736   : > { %v9614_v21 = vpop.f32.mrf.mxu1 }
 0x737   : > { %10402 = vst [vmem:[#allocation42_spill] sm:$0xff] %v9614_v21 }
 0x738   : > { %v9608_v9 = vpop.f32.mrf.mxu2  ;;  %v9610_v52 = vpop.f32.mrf.mxu3 }
 0x73c   : > { %v3888_v0 = vpop.f32.mrf.mxu0 }
 0x73e   : > { %v3927_v49 = vpop.f32.mrf.mxu1 }
 0x73f   : > { %v3928_v56 = vadd.f32 %v3927_v49, %v3888_v0 }
 0x740   : > { %v9616_v42 = vpop.f32.mrf.mxu2  ;;  %v9618_v46 = vpop.f32.mrf.mxu3 }
 0x741   : > { %10403 = vst [vmem:[#allocation25_spill] sm:$0xff] %v9618_v46  ;;  %v4374_v46 = vand.u32 4294901760, %v4373_v61 }
 0x743   : > { %4375 = vmatpush.msra.mxu1 %v4374_v46 }
 0x744   : > { %v3896_v4 = vpop.f32.mrf.mxu0 }
 0x746   : > { %v3931_v8 = vpop.f32.mrf.mxu1 }
 0x747   : > { %v3932_v0 = vadd.f32 %v3931_v8, %v3896_v4 }
 0x748   : > { %v9620_v48 = vpop.f32.mrf.mxu2  ;;  %v9622_v55 = vpop.f32.mrf.mxu3 }
 0x749   : > { %10404 = vst [vmem:[#allocation35_spill] sm:$0xff] %v9620_v48 }
 0x74a   : > { %10405 = vst [vmem:[#allocation20_spill] sm:$0xff] %v9622_v55  ;;  %v9632_v55 = vld [vmem:[%s8969_s30 + $0x20] sm:$0xff] }
 0x74b   : > { %10408 = vst [vmem:[#allocation43_spill] sm:$0xff] %v9632_v55 }
 0x74c   : > { %v4020_v59 = vpop.f32.mrf.mxu0 }
 0x74e   : > { %v4047_v62 = vpop.f32.mrf.mxu1 }
 0x750   : > { %v9624_v47 = vpop.f32.mrf.mxu2  ;;  %v3987_v17 = vpop.f32.mrf.mxu3 }
 0x751   : > { %10406 = vst [vmem:[#allocation41_spill] sm:$0xff] %v9624_v47  ;;  %v4337_v47 = vand.u32 4294901760, %v9632_v55 }
 0x753   : > { %4338 = vmatpush.msra.mxu0 %v4337_v47  ;;  %v4377_v50 = vsub.f32 %v9632_v55, %v4337_v47 }
 0x755   : > { %v4378_v19 = vand.u32 4294901760, %v4377_v50 }
 0x757   : > { %v4379_v51 = vsub.f32 %v4377_v50, %v4378_v19 }
 0x758   : > { %v3957_v54 = vpop.f32.mrf.mxu2  ;;  %v3993_v48 = vpop.f32.mrf.mxu3 }
 0x759   : > { %v3958_v33 = vadd.f32 %v3957_v54, %v3928_v56 }
 0x75b   : > { %v3988_v40 = vadd.f32 %v3987_v17, %v3958_v33  ;;  %v4024_v33 = vpop.f32.mrf.mxu0 }
 0x75d   : > { %v4021_v21 = vadd.f32 %v4020_v59, %v3988_v40  ;;  %v4051_v59 = vpop.f32.mrf.mxu1  ;;  %v4380_v40 = vand.u32 4294901760, %v4379_v51 }
 0x75f   : > { %v4048_v49 = vadd.f32 %v4047_v62, %v4021_v21  ;;  %4381 = vmatpush.msra.mxu1 %v4380_v40 }
 0x760   : > { %v3962_v15 = vpop.f32.mrf.mxu2 }
 0x761   : > { %v4055_v56 = vsel %vm301_vm0, %v4048_v49, 0  ;;  %v3963_v54 = vadd.f32 %v3962_v15, %v3932_v0  ;;  %v10414_v49 = vld [vmem:[#allocation35_spill] sm:$0xff] }
 0x762   : > { %v4078_v17 = vand.u32 4294901760, %v4055_v56 }
 0x763   : > { %v3994_v63 = vadd.f32 %v3993_v48, %v3963_v54  ;;  %v10417_v54 = vld [vmem:[#allocation32_spill] sm:$0xff] }
 0x764   : > { %v4079_v45 = vsub.f32 %v4055_v56, %v4078_v17  ;;  %4122 = vmatmul.f32.vlgmr.msra.gmra.mxu3 %v4078_v17  ;;  %v10416_v56 = vld [vmem:[#allocation24_spill] sm:$0xff] }
 0x765   : > { %v4025_v61 = vadd.f32 %v4024_v33, %v3994_v63  ;;  %4437 = vmatpush.msra.mxu3 %v4335_v36 }
 0x766   : > { %v4080_v55 = vand.u32 4294901760, %v4079_v45  ;;  %4152 = vmatmul.f32.vlgmr.msrb.gmra.mxu0 %v4079_v45 }
 0x767   : > { %v4052_v21 = vadd.f32 %v4051_v59, %v4025_v61  ;;  %4439 = vmatpush.msra.mxu3 %v4337_v47  ;;  %4470 = vmatpush.msrb.mxu0 %v4372_v26  ;;  %v2964_v26 = vadd.f32 %v9502_v43, %v9508_v2  ;;  %v10411_v2 = vld [vmem:[#allocation17_spill] sm:$0xff]  ;;  %v10420_v59 = vld [vmem:[#allocation16_spill] sm:$0xff] }
 0x768   : > { %v4081_v46 = vsub.f32 %v4079_v45, %v4080_v55  ;;  %4182 = vmatmul.f32.vlgmr.msrb.gmra.mxu1 %v4080_v55  ;;  %v2960_v45 = vadd.f32 %v9494_v58, %v9500_v23  ;;  %v10421_v61 = vld [vmem:[#allocation29_spill] sm:$0xff] }
 0x769   : > { %v4058_v4 = vsel %vm301_vm0, %v4052_v21, 0  ;;  %4499 = vmatpush.msrb.mxu1 %v4335_v36  ;;  %4474 = vmatpush.msrb.mxu0 %v4378_v19  ;;  %v2574_v19 = vadd.f32 %v9440_v12, %v9446_v38  ;;  %v2578_v12 = vadd.f32 %v9448_v41, %v9454_v3  ;;  %v10415_v3 = vld [vmem:[#allocation36_spill] sm:$0xff] }
 0x76a   : > { %v4082_v8 = vand.u32 4294901760, %v4081_v46  ;;  %v4086_v48 = vand.u32 4294901760, %v4058_v4  ;;  %v2990_v55 = vadd.f32 %v9496_v57, %v2960_v45  ;;  %v10422_v46 = vld [vmem:[#allocation25_spill] sm:$0xff] }
 0x76b   : > { %4501 = vmatpush.msrb.mxu1 %v4337_v47  ;;  %v3348_v47 = vadd.f32 %v9548_v53, %v9554_v14  ;;  %v2604_v36 = vadd.f32 %v9442_v44, %v2574_v19  ;;  %v3740_v53 = vadd.f32 %v9610_v52, %v9616_v42  ;;  %v10409_v14 = vld [vmem:[#allocation31_spill] sm:$0xff]  ;;  %v10418_v52 = vld [vmem:[#allocation30_spill] sm:$0xff] }
 0x76c   : > { %4083 = vmatmul.f32.vlgmr.msra.gmra.mxu2 %v4082_v8  ;;  %4126 = vmatmul.f32.gmra.mxu3 %v4086_v48  ;;  %v4087_v51 = vsub.f32 %v4058_v4, %v4086_v48  ;;  %v3020_v58 = vadd.f32 %v9498_v60, %v2990_v55  ;;  %v10412_v60 = vld [vmem:[#allocation23_spill] sm:$0xff]  ;;  %v10426_v19 = vld [vmem:[#allocation42_spill] sm:$0xff] }
 0x76d   : > { %4407 = vmatpush.msra.mxu2 %v4371_v5  ;;  %v3378_v23 = vadd.f32 %v9550_v22, %v3348_v47  ;;  %v2634_v38 = vadd.f32 %v9444_v6, %v2604_v36  ;;  %v10413_v22 = vld [vmem:[#allocation18_spill] sm:$0xff]  ;;  %v2609_v6 = vadd.f32 %v10415_v3, %v2578_v12  ;;  %v3771_v42 = vadd.f32 %v10418_v52, %v3740_v53  ;;  %v10423_v8 = vld [vmem:[#allocation19_spill] sm:$0xff] }
 0x76e   : > { %4157 = vmatmul.f32.gmra.mxu0 %v4087_v51  ;;  %v4088_v63 = vand.u32 4294901760, %v4087_v51  ;;  %v3053_v57 = vadd.f32 %v9512_v39, %v3020_v58  ;;  %v10427_v47 = vld [vmem:[#allocation27_spill] sm:$0xff] }
 0x76f   : > { %4410 = vmatpush.msra.mxu2 %v4377_v50  ;;  %v3736_v50 = vadd.f32 %v9602_v7, %v9608_v9  ;;  %v2667_v7 = vadd.f32 %v10409_v14, %v2634_v38  ;;  %v3352_v9 = vadd.f32 %v10412_v60, %v10411_v2  ;;  %v3408_v0 = vadd.f32 %v10413_v22, %v3378_v23  ;;  %v10429_v23 = vld [vmem:[#allocation41_spill] sm:$0xff]  ;;  %v10433_v2 = vld [vmem:[#allocation20_spill] sm:$0xff] }
 0x770   : > { %4188 = vmatmul.f32.gmra.mxu1 %v4088_v63  ;;  %v4089_v15 = vsub.f32 %v4087_v51, %v4088_v63  ;;  %v3080_v39 = vadd.f32 %v10416_v56, %v3053_v57  ;;  %v10424_v63 = vld [vmem:[#allocation37_spill] sm:$0xff] }
 0x771   : > { %v3766_v5 = vadd.f32 %v9604_v1, %v3736_v50  ;;  %v10410_v1 = vld [vmem:[#allocation40_spill] sm:$0xff]  ;;  %v3383_v21 = vadd.f32 %v10421_v61, %v3352_v9  ;;  %v3802_v50 = vadd.f32 %v10426_v19, %v3771_v42  ;;  %v10430_v38 = vld [vmem:[#allocation33_spill] sm:$0xff] }
 0x772   : > { %v4090_v62 = vand.u32 4294901760, %v4089_v15  ;;  %v2995_v43 = vadd.f32 %v10410_v1, %v2964_v26  ;;  %v4252_v51 = vmul.f32 %v3080_v39, %v3080_v39 }
 0x773   : > { %v3796_v44 = vadd.f32 %v9606_v28, %v3766_v5  ;;  %v10419_v28 = vld [vmem:[#allocation22_spill] sm:$0xff]  ;;  %v10428_v5 = vld [vmem:[#allocation39_spill] sm:$0xff]  ;;  %v3833_v12 = vadd.f32 %v10429_v23, %v3802_v50 }
 0x774   : > { %4091 = vmatmul.f32.gmra.mxu2 %v4090_v62  ;;  %4242 = vmatmul.f32.vlgmr.msrb.gmra.mxu3 %v4078_v17  ;;  %v2694_v33 = vadd.f32 %v10419_v28, %v2667_v7  ;;  %v3026_v40 = vadd.f32 %v10420_v59, %v2995_v43  ;;  %v10425_v62 = vld [vmem:[#allocation26_spill] sm:$0xff]  ;;  %v3414_v26 = vadd.f32 %v10428_v5, %v3383_v21  ;;  %v10432_v7 = vld [vmem:[#allocation28_spill] sm:$0xff] }
 0x775   : > { %4571 = vmatpush.msrb.mxu3 %v9064_v35  ;;  %v3829_v41 = vadd.f32 %v10414_v49, %v3796_v44  ;;  %v10431_v44 = vld [vmem:[#allocation21_spill] sm:$0xff]  ;;  %v3860_v60 = vadd.f32 %v10433_v2, %v3833_v12 }
 0x776   : > { %4344 = vmatmul.f32.vlgmr.msra.gmra.mxu0 %v9026_v25  ;;  %v3057_v15 = vadd.f32 %v10424_v63, %v3026_v40  ;;  %v4250_v55 = vmul.f32 %v2694_v33, %v2694_v33  ;;  %v3445_v14 = vadd.f32 %v10431_v44, %v3414_v26 }
 0x777   : > { %4577 = vmatpush.msrb.mxu3 %v9070_v37  ;;  %4603 = vmatpush.msra.mxu0 %v9044_v29  ;;  %v3856_v4 = vadd.f32 %v10422_v46, %v3829_v41 }
 0x778   : > { %4383 = vmatmul.f32.vlgmr.msra.gmra.mxu1 %v9003_v10  ;;  %v3084_v57 = vadd.f32 %v10430_v38, %v3057_v15  ;;  %v4272_v9 = vadd.f32 %v4252_v51, %v4250_v55 }
 0x779   : > { %4606 = vmatpush.msra.mxu0 %v9052_v32  ;;  %4633 = vmatpush.msra.mxu1 %v9016_v20  ;;  %v4258_v58 = vsub.f32 %v3856_v4, %v4252_v51 }
 0x77a   : > { %v4253_v22 = vmul.f32 %v3084_v57, %v3084_v57 }
 0x77b   : > { %4635 = vmatpush.msra.mxu1 %v9046_v30 }
 0x77c   : > { %4215 = vmatmul.f32.vlgmr.msrb.gmra.mxu2 %v4078_v17  ;;  %4246 = vmatmul.f32.gmra.mxu3 %v4086_v48  ;;  %v3441_v17 = vadd.f32 %v10417_v54, %v3408_v0  ;;  %v10434_v0 = vld [vmem:[#allocation38_spill] sm:$0xff]  ;;  %v4274_v54 = vadd.f32 0.0001, %v4272_v9 }
 0x77d   : > { %4532 = vmatpush.msrb.mxu2 %v9016_v20  ;;  %v3472_v49 = vadd.f32 %v10434_v0, %v3445_v14 }
 0x77e   : > { %4352 = vmatmul.f32.gmra.mxu0 %v9033_v27  ;;  %v3468_v45 = vadd.f32 %v10425_v62, %v3441_v17 }
 0x77f   : > { %4534 = vmatpush.msrb.mxu2 %v9046_v30 }
 0x780   : > { %4387 = vmatmul.f32.gmra.mxu1 %v9005_v11  ;;  %v4256_v53 = vsub.f32 %v3468_v45, %v4250_v55 }
 0x782   : > { %v4276_v43 = vadd.f32 %v4258_v58, %v4256_v53  ;;  %v4254_v58 = vmul.f32 %v3080_v39, %v2694_v33 }
 0x784   : > { %4219 = vmatmul.f32.gmra.mxu2 %v4086_v48  ;;  %4443 = vmatmul.f32.vlgmr.msra.gmra.mxu3 %v9014_v18  ;;  %v2640_v48 = vadd.f32 %v10423_v8, %v2609_v6  ;;  %v4278_v3 = vadd.f32 0.0009, %v4276_v43  ;;  %v4259_v6 = vsub.f32 %v3860_v60, %v4253_v22  ;;  %v4262_v43 = vmul.f32 2.0, %v4254_v58 }
 0x785   : > { %4695 = vmatpush.msra.mxu3 %v9016_v20 }
 0x786   : > { %4476 = vmatmul.f32.vlgmr.msrb.gmra.mxu0 %v9003_v10  ;;  %v2671_v36 = vadd.f32 %v10427_v47, %v2640_v48  ;;  %v4280_v42 = vmul.f32 %v4278_v3, %v4274_v54  ;;  %v4264_v3 = vadd.f32 0.0001, %v4262_v43 }
 0x787   : > { %4697 = vmatpush.msra.mxu3 %v9046_v30 }
 0x788   : > { %4503 = vmatmul.f32.vlgmr.msrb.gmra.mxu1 %v9003_v10  ;;  %v2698_v1 = vadd.f32 %v10432_v7, %v2671_v36  ;;  %8583 = vrcp.f32 %v4280_v42  ;;  %vm4287_vm10 = vweird.f32 %v4280_v42  ;;  %v4291_v39 = vand.u32 2147483647, %v4280_v42 }
 0x78a   : > { %v4251_v41 = vmul.f32 %v2698_v1, %v2698_v1  ;;  %vm4292_vm12 = vcmp.eq.f32.partialorder %v4291_v39, 8.507059e+37 }
 0x78c   : > { %4413 = vmatmul.f32.vlgmr.msra.gmra.mxu2 %v9008_v13  ;;  %4449 = vmatmul.f32.gmra.mxu3 %v9023_v24  ;;  %v4257_v17 = vsub.f32 %v3472_v49, %v4251_v41  ;;  %v4273_v59 = vadd.f32 %v4253_v22, %v4251_v41  ;;  %v4293_v22 = vand.u32 2147483648, %v4280_v42 }
 0x78d   : > { %4666 = vmatpush.msra.mxu2 %v9049_v31 }
 0x78e   : > { %4480 = vmatmul.f32.gmra.mxu0 %v9005_v11  ;;  %v4277_v28 = vadd.f32 %v4259_v6, %v4257_v17  ;;  %v4275_v46 = vadd.f32 0.0001, %v4273_v59  ;;  %v8584_v51 = vpop.eup %8583  ;;  %v4255_v6 = vmul.f32 %v3084_v57, %v2698_v1  ;;  %v4294_v59 = vor.u32 1.1754944e-38, %v4293_v22 }
 0x78f   : > { %4670 = vmatpush.msra.mxu2 %v9060_v34  ;;  %v4283_v45 = vmul.f32 %v8584_v51, %v4280_v42  ;;  %vm4288_vm9 = vweird.f32 %v8584_v51  ;;  %v9720_v42 = vld [vmem:[%s8977_s5 + $0x28] sm:$0xff] }
 0x790   : > { %4507 = vmatmul.f32.gmra.mxu1 %v9005_v11  ;;  %v4279_v61 = vadd.f32 0.0009, %v4277_v28  ;;  %vm4289_vm11 = vmor %vm4287_vm10, %vm4288_vm9 }
 0x791   : > { %v4284_v47 = vsub.f32 1.0, %v4283_v45 }
 0x792   : > { %v9710_v8 = vmul.f32 %v4279_v61, %v4275_v46  ;;  %v4263_v46 = vmul.f32 2.0, %v4255_v6 }
 0x793   : > { %v4285_v44 = vmul.f32 %v8584_v51, %v4284_v47 }
 0x794   : > { %4418 = vmatmul.f32.gmra.mxu2 %v9011_v16  ;;  %8585 = vrcp.f32 %v9710_v8  ;;  %vm4301_vm14 = vweird.f32 %v9710_v8  ;;  %v4265_v47 = vadd.f32 0.0001, %v4263_v46 }
 0x795   : > { %v4286_v60 = vadd.f32 %v8584_v51, %v4285_v44 }
 0x797   : > { %v4290_v17 = vsel %vm4289_vm11, %v8584_v51, %v4286_v60  ;;  %v4721_v51 = vand.u32 4294901760, %v9720_v42 }
 0x799   : > { %4722 = vmatpush.msrb.mxu0 %v4721_v51 }
 0x79a   : > { %v9713_v36 = vpop.eup %8585 }
 0x79b   : > { %v4297_v38 = vmul.f32 %v9713_v36, %v9710_v8  ;;  %vm4302_vm13 = vweird.f32 %v9713_v36 }
 0x79c   : > { %vm4303_vm15 = vmor %vm4301_vm14, %vm4302_vm13 }
 0x79d   : > { %v4298_v9 = vsub.f32 1.0, %v4297_v38 }
 0x79f   : > { %v4299_v28 = vmul.f32 %v9713_v36, %v4298_v9 }
 0x7e3   : > { %v4153_v52 = vpop.f32.mrf.mxu0 }
 0x7e5   : > { %v4183_v40 = vpop.f32.mrf.mxu1 }
 0x7e7   : > { %v4123_v56 = vpop.f32.mrf.mxu3 }
 0x7eb   : > { %v4158_v48 = vpop.f32.mrf.mxu0 }
 0x7ed   : > { %v4189_v15 = vpop.f32.mrf.mxu1 }
 0x7ef   : > { %v4084_v21 = vpop.f32.mrf.mxu2  ;;  %v4127_v4 = vpop.f32.mrf.mxu3 }
 0x7f0   : > { %v4124_v63 = vadd.f32 %v4123_v56, %v4084_v21 }
 0x7f2   : > { %v4154_v19 = vadd.f32 %v4153_v52, %v4124_v63  ;;  %v4307_v63 = vand.u32 2147483648, %v9710_v8 }
 0x7f3   : > { %v4345_v55 = vpop.f32.mrf.mxu0 }
 0x7f4   : > { %v4184_v26 = vadd.f32 %v4183_v40, %v4154_v19  ;;  %v4305_v19 = vand.u32 2147483647, %v9710_v8 }
 0x7f5   : > { %v4384_v12 = vpop.f32.mrf.mxu1 }
 0x7f6   : > { %vm4306_vm1 = vcmp.eq.f32.partialorder %v4305_v19, 8.507059e+37 }
 0x7f7   : > { %v4092_v62 = vpop.f32.mrf.mxu2  ;;  %v4243_v50 = vpop.f32.mrf.mxu3 }
 0x7f8   : > { %v4128_v5 = vadd.f32 %v4127_v4, %v4092_v62  ;;  %v4295_v4 = vsel %vm4292_vm12, %v4294_v59, %v4290_v17  ;;  %v4385_v62 = vadd.f32 %v4384_v12, %v4345_v55  ;;  %v4308_v55 = vor.u32 1.1754944e-38, %v4307_v63 }
 0x7fa   : > { %v4159_v14 = vadd.f32 %v4158_v48, %v4128_v5  ;;  %v4300_v48 = vadd.f32 %v9713_v36, %v4299_v28 }
 0x7fb   : > { %v4353_v49 = vpop.f32.mrf.mxu0 }
 0x7fc   : > { %v4190_v33 = vadd.f32 %v4189_v15, %v4159_v14 }
 0x7fd   : > { %v4388_v40 = vpop.f32.mrf.mxu1 }
 0x7ff   : > { %v4216_v23 = vpop.f32.mrf.mxu2  ;;  %v4247_v0 = vpop.f32.mrf.mxu3 }
 0x800   : > { %v4217_v53 = vadd.f32 %v4216_v23, %v4184_v26  ;;  %v4304_v23 = vsel %vm4303_vm15, %v9713_v36, %v4300_v48 }
 0x801   : > { %v4309_v43 = vsel %vm4306_vm1, %v4308_v55, %v4304_v23 }
 0x802   : > { %v4244_v7 = vadd.f32 %v4243_v50, %v4217_v53  ;;  %v4757_v50 = vsub.f32 %v9720_v42, %v4721_v51 }
 0x803   : > { %v4477_v26 = vpop.f32.mrf.mxu0 }
 0x804   : > { %v4260_v2 = vsub.f32 %v4244_v7, %v4254_v58  ;;  %v4758_v53 = vand.u32 4294901760, %v4757_v50  ;;  %v9734_v7 = vld [vmem:[%s8977_s5 + $0x20] sm:$0xff] }
 0x805   : > { %v4504_v12 = vpop.f32.mrf.mxu1 }
 0x806   : > { %v4266_v41 = vmul.f32 2.0, %v4260_v2  ;;  %v4759_v14 = vsub.f32 %v4757_v50, %v4758_v53  ;;  %v4723_v2 = vand.u32 4294901760, %v9734_v7 }
 0x807   : > { %v4220_v56 = vpop.f32.mrf.mxu2  ;;  %v4444_v15 = vpop.f32.mrf.mxu3 }
 0x808   : > { %v4268_v54 = vadd.f32 0.0009, %v4266_v41  ;;  %v4221_v52 = vadd.f32 %v4220_v56, %v4190_v33  ;;  %v4760_v22 = vand.u32 4294901760, %v4759_v14  ;;  %4724 = vmatpush.msrb.mxu0 %v4723_v2  ;;  %v4763_v36 = vsub.f32 %v9734_v7, %v4723_v2 }
 0x80a   : > { %v4270_v61 = vmul.f32 %v4268_v54, %v4264_v3  ;;  %v4248_v21 = vadd.f32 %v4247_v0, %v4221_v52  ;;  %v4389_v0 = vadd.f32 %v4388_v40, %v4353_v49  ;;  %4761 = vmatpush.msrb.mxu1 %v4760_v22  ;;  %v4764_v3 = vand.u32 4294901760, %v4763_v36 }
 0x80b   : > { %v4481_v17 = vpop.f32.mrf.mxu0 }
 0x80c   : > { %v4310_v57 = vmul.f32 %v4295_v4, %v4270_v61  ;;  %v4261_v1 = vsub.f32 %v4248_v21, %v4255_v6  ;;  %v4765_v52 = vsub.f32 %v4763_v36, %v4764_v3 }
 0x80d   : > { %v4508_v61 = vpop.f32.mrf.mxu1 }
 0x80e   : > { %8481 = vst.msk [vmem:[%s9398_s21 + $0x10] sm:$0xff] %vm301_vm0, %v4310_v57  ;;  %v4267_v45 = vmul.f32 2.0, %v4261_v1  ;;  %v4766_v21 = vand.u32 4294901760, %v4765_v52 }
 0x80f   : > { %v4414_v5 = vpop.f32.mrf.mxu2  ;;  %v4450_v33 = vpop.f32.mrf.mxu3 }
 0x810   : > { %v4269_v58 = vadd.f32 0.0009, %v4267_v45  ;;  %v4415_v38 = vadd.f32 %v4414_v5, %v4385_v62  ;;  %4767 = vmatpush.msrb.mxu1 %v4766_v21 }
 0x812   : > { %v4271_v44 = vmul.f32 %v4269_v58, %v4265_v47  ;;  %v4445_v8 = vadd.f32 %v4444_v15, %v4415_v38 }
 0x814   : > { %v4311_v60 = vmul.f32 %v4309_v43, %v4271_v44  ;;  %v4478_v9 = vadd.f32 %v4477_v26, %v4445_v8 }
 0x816   : > { %8482 = vst.msk [vmem:[%s9398_s21 + $0x18] sm:$0xff] %vm301_vm0, %v4311_v60  ;;  %v4505_v41 = vadd.f32 %v4504_v12, %v4478_v9 }
 0x817   : > { %v4419_v39 = vpop.f32.mrf.mxu2 }
 0x818   : > { %v4512_v6 = vsel %vm301_vm0, %v4505_v41, 0  ;;  %v4420_v56 = vadd.f32 %v4419_v39, %v4389_v0 }
 0x819   : > { %v4535_v54 = vand.u32 4294901760, %v4512_v6 }
 0x81a   : > { %v4451_v28 = vadd.f32 %v4450_v33, %v4420_v56  ;;  %v10442_v56 = vld [vmem:[#allocation43_spill] sm:$0xff] }
 0x81b   : > { %v4536_v59 = vsub.f32 %v4512_v6, %v4535_v54  ;;  %4579 = vmatmul.f32.vlgmr.msrb.gmra.mxu3 %v4535_v54 }
 0x81c   : > { %v4482_v46 = vadd.f32 %v4481_v17, %v4451_v28  ;;  %4823 = vmatpush.msrb.mxu3 %v4721_v51 }
 0x81d   : > { %v4537_v4 = vand.u32 4294901760, %v4536_v59  ;;  %4609 = vmatmul.f32.vlgmr.msra.gmra.mxu0 %v4536_v59 }
 0x81e   : > { %v4509_v49 = vadd.f32 %v4508_v61, %v4482_v46  ;;  %4825 = vmatpush.msrb.mxu3 %v4723_v2  ;;  %4856 = vmatpush.msra.mxu0 %v4758_v53 }
 0x81f   : > { %v4538_v40 = vsub.f32 %v4536_v59, %v4537_v4  ;;  %4639 = vmatmul.f32.vlgmr.msra.gmra.mxu1 %v4537_v4 }
 0x820   : > { %v4515_v57 = vsel %vm301_vm0, %v4509_v49, 0  ;;  %4885 = vmatpush.msra.mxu1 %v4721_v51  ;;  %4860 = vmatpush.msra.mxu0 %v4764_v3 }
 0x821   : > { %v4539_v1 = vand.u32 4294901760, %v4538_v40  ;;  %v4543_v48 = vand.u32 4294901760, %v4515_v57 }
 0x822   : > { %4887 = vmatpush.msra.mxu1 %v4723_v2  ;;  %v10441_v2 = vld [vmem:[#allocation34_spill] sm:$0xff] }
 0x823   : > { %4540 = vmatmul.f32.vlgmr.msrb.gmra.mxu2 %v4539_v1  ;;  %4583 = vmatmul.f32.gmra.mxu3 %v4543_v48  ;;  %v4544_v63 = vsub.f32 %v4515_v57, %v4543_v48  ;;  %v5094_v60 = vmul.f32 %v10441_v2, %v10441_v2 }
 0x824   : > { %4793 = vmatpush.msrb.mxu2 %v4757_v50 }
 0x825   : > { %4614 = vmatmul.f32.gmra.mxu0 %v4544_v63  ;;  %v4545_v15 = vand.u32 4294901760, %v4544_v63  ;;  %v5109_v22 = vand.u32 4294901760, %v5094_v60 }
 0x826   : > { %4796 = vmatpush.msrb.mxu2 %v4763_v36 }
 0x827   : > { %4645 = vmatmul.f32.gmra.mxu1 %v4545_v15  ;;  %v4546_v62 = vsub.f32 %v4544_v63, %v4545_v15  ;;  %v5145_v39 = vsub.f32 %v5094_v60, %v5109_v22 }
 0x829   : > { %v4547_v45 = vand.u32 4294901760, %v4546_v62  ;;  %v5146_v6 = vand.u32 4294901760, %v5145_v39 }
 0x82b   : > { %4548 = vmatmul.f32.gmra.mxu2 %v4547_v45  ;;  %4699 = vmatmul.f32.vlgmr.msra.gmra.mxu3 %v4535_v54  ;;  %v5147_v52 = vsub.f32 %v5145_v39, %v5146_v6 }
 0x82c   : > { %4957 = vmatpush.msra.mxu3 %v9064_v35 }
 0x82d   : > { %4730 = vmatmul.f32.vlgmr.msrb.gmra.mxu0 %v9026_v25  ;;  %v5148_v61 = vand.u32 4294901760, %v5147_v52 }
 0x82e   : > { %4963 = vmatpush.msra.mxu3 %v9070_v37  ;;  %4989 = vmatpush.msrb.mxu0 %v9044_v29 }
 0x82f   : > { %4769 = vmatmul.f32.vlgmr.msrb.gmra.mxu1 %v9003_v10 }
 0x830   : > { %4992 = vmatpush.msrb.mxu0 %v9052_v32  ;;  %5019 = vmatpush.msrb.mxu1 %v9016_v20 }
 0x832   : > { %5021 = vmatpush.msrb.mxu1 %v9046_v30 }
 0x833   : > { %4672 = vmatmul.f32.vlgmr.msra.gmra.mxu2 %v4535_v54  ;;  %4703 = vmatmul.f32.gmra.mxu3 %v4543_v48  ;;  %v5093_v54 = vmul.f32 %v10442_v56, %v10442_v56 }
 0x834   : > { %4918 = vmatpush.msra.mxu2 %v9016_v20 }
 0x835   : > { %4738 = vmatmul.f32.gmra.mxu0 %v9033_v27  ;;  %v5111_v28 = vand.u32 4294901760, %v5093_v54 }
 0x836   : > { %4920 = vmatpush.msra.mxu2 %v9046_v30 }
 0x837   : > { %4773 = vmatmul.f32.gmra.mxu1 %v9005_v11  ;;  %v5151_v21 = vsub.f32 %v5093_v54, %v5111_v28 }
 0x839   : > { %v5152_v57 = vand.u32 4294901760, %v5151_v21 }
 0x83b   : > { %4676 = vmatmul.f32.gmra.mxu2 %v4543_v48  ;;  %4829 = vmatmul.f32.vlgmr.msrb.gmra.mxu3 %v9014_v18  ;;  %v5153_v62 = vsub.f32 %v5151_v21, %v5152_v57 }
 0x83c   : > { %5081 = vmatpush.msrb.mxu3 %v9016_v20 }
 0x83d   : > { %4862 = vmatmul.f32.vlgmr.msra.gmra.mxu0 %v9003_v10  ;;  %v5154_v2 = vand.u32 4294901760, %v5153_v62 }
 0x83e   : > { %5083 = vmatpush.msrb.mxu3 %v9046_v30  ;;  %5110 = vmatpush.msra.mxu0 %v5109_v22 }
 0x83f   : > { %4889 = vmatmul.f32.vlgmr.msra.gmra.mxu1 %v9003_v10 }
 0x840   : > { %5112 = vmatpush.msra.mxu0 %v5111_v28  ;;  %5149 = vmatpush.msra.mxu1 %v5148_v61 }
 0x842   : > { %5155 = vmatpush.msra.mxu1 %v5154_v2 }
 0x843   : > { %4799 = vmatmul.f32.vlgmr.msrb.gmra.mxu2 %v9008_v13  ;;  %4835 = vmatmul.f32.gmra.mxu3 %v9023_v24 }
 0x844   : > { %5052 = vmatpush.msrb.mxu2 %v9049_v31 }
 0x845   : > { %4866 = vmatmul.f32.gmra.mxu0 %v9005_v11 }
 0x846   : > { %5056 = vmatpush.msrb.mxu2 %v9060_v34 }
 0x847   : > { %4893 = vmatmul.f32.gmra.mxu1 %v9005_v11 }
 0x84b   : > { %4804 = vmatmul.f32.gmra.mxu2 %v9011_v16 }
 0x89a   : > { %v9768_v19 = vpop.f32.mrf.mxu0 }
 0x89c   : > { %v9770_v50 = vpop.f32.mrf.mxu1 }
 0x89e   : > { %v9766_v51 = vpop.f32.mrf.mxu3 }
 0x8a2   : > { %v9776_v26 = vpop.f32.mrf.mxu0 }
 0x8a3   : > { %10435 = vst [vmem:[#allocation31_spill] sm:$0xff] %v9776_v26 }
 0x8a4   : > { %v9778_v58 = vpop.f32.mrf.mxu1 }
 0x8a5   : > { %10436 = vst [vmem:[#allocation40_spill] sm:$0xff] %v9778_v58 }
 0x8a6   : > { %v9772_v47 = vpop.f32.mrf.mxu2  ;;  %v9774_v5 = vpop.f32.mrf.mxu3 }
 0x8aa   : > { %v4731_v53 = vpop.f32.mrf.mxu0 }
 0x8ac   : > { %v4770_v12 = vpop.f32.mrf.mxu1 }
 0x8ad   : > { %v4771_v36 = vadd.f32 %v4770_v12, %v4731_v53 }
 0x8ae   : > { %v9780_v23 = vpop.f32.mrf.mxu2  ;;  %v9782_v38 = vpop.f32.mrf.mxu3 }
 0x8af   : > { %10437 = vst [vmem:[#allocation17_spill] sm:$0xff] %v9782_v38 }
 0x8b2   : > { %v4739_v8 = vpop.f32.mrf.mxu0 }
 0x8b4   : > { %v4774_v43 = vpop.f32.mrf.mxu1 }
 0x8b5   : > { %v4775_v46 = vadd.f32 %v4774_v43, %v4739_v8 }
 0x8b6   : > { %v9784_v55 = vpop.f32.mrf.mxu2  ;;  %v9786_v44 = vpop.f32.mrf.mxu3 }
 0x8b7   : > { %10438 = vst [vmem:[#allocation23_spill] sm:$0xff] %v9784_v55 }
 0x8b8   : > { %10439 = vst [vmem:[#allocation18_spill] sm:$0xff] %v9786_v44 }
 0x8ba   : > { %v4863_v41 = vpop.f32.mrf.mxu0 }
 0x8bc   : > { %v4890_v3 = vpop.f32.mrf.mxu1 }
 0x8be   : > { %v9788_v14 = vpop.f32.mrf.mxu2  ;;  %v4830_v9 = vpop.f32.mrf.mxu3 }
 0x8bf   : > { %10440 = vst [vmem:[#allocation35_spill] sm:$0xff] %v9788_v14 }
 0x8c2   : > { %v4867_v15 = vpop.f32.mrf.mxu0 }
 0x8c4   : > { %v4894_v12 = vpop.f32.mrf.mxu1 }
 0x8c6   : > { %v4800_v0 = vpop.f32.mrf.mxu2  ;;  %v4836_v40 = vpop.f32.mrf.mxu3 }
 0x8c7   : > { %v4801_v33 = vadd.f32 %v4800_v0, %v4771_v36 }
 0x8c9   : > { %v4831_v17 = vadd.f32 %v4830_v9, %v4801_v33 }
 0x8cb   : > { %v4864_v59 = vadd.f32 %v4863_v41, %v4831_v17 }
 0x8cd   : > { %v4891_v4 = vadd.f32 %v4890_v3, %v4864_v59 }
 0x8ce   : > { %v4805_v49 = vpop.f32.mrf.mxu2 }
 0x8cf   : > { %v4898_v1 = vsel %vm301_vm0, %v4891_v4, 0  ;;  %v4806_v48 = vadd.f32 %v4805_v49, %v4775_v46 }
 0x8d0   : > { %v4921_v63 = vand.u32 4294901760, %v4898_v1 }
 0x8d1   : > { %v4837_v45 = vadd.f32 %v4836_v40, %v4806_v48 }
 0x8d2   : > { %v4922_v53 = vsub.f32 %v4898_v1, %v4921_v63  ;;  %4965 = vmatmul.f32.vlgmr.msra.gmra.mxu3 %v4921_v63 }
 0x8d3   : > { %v4868_v60 = vadd.f32 %v4867_v15, %v4837_v45  ;;  %5211 = vmatpush.msra.mxu3 %v5109_v22 }
 0x8d4   : > { %v4923_v9 = vand.u32 4294901760, %v4922_v53  ;;  %4995 = vmatmul.f32.vlgmr.msrb.gmra.mxu0 %v4922_v53 }
 0x8d5   : > { %v4895_v8 = vadd.f32 %v4894_v12, %v4868_v60  ;;  %5213 = vmatpush.msra.mxu3 %v5111_v28  ;;  %5244 = vmatpush.msrb.mxu0 %v5146_v6 }
 0x8d6   : > { %v4924_v43 = vsub.f32 %v4922_v53, %v4923_v9  ;;  %5025 = vmatmul.f32.vlgmr.msrb.gmra.mxu1 %v4923_v9 }
 0x8d7   : > { %v4901_v36 = vsel %vm301_vm0, %v4895_v8, 0  ;;  %5273 = vmatpush.msrb.mxu1 %v5109_v22  ;;  %5248 = vmatpush.msrb.mxu0 %v5152_v57 }
 0x8d8   : > { %v4925_v0 = vand.u32 4294901760, %v4924_v43  ;;  %v4929_v41 = vand.u32 4294901760, %v4901_v36  ;;  %v5481_v43 = vmul.f32 %v9734_v7, %v9734_v7 }
 0x8d9   : > { %5275 = vmatpush.msrb.mxu1 %v5111_v28 }
 0x8da   : > { %4926 = vmatmul.f32.vlgmr.msra.gmra.mxu2 %v4925_v0  ;;  %4969 = vmatmul.f32.gmra.mxu3 %v4929_v41  ;;  %v4930_v33 = vsub.f32 %v4901_v36, %v4929_v41 }
 0x8db   : > { %5181 = vmatpush.msra.mxu2 %v5145_v39 }
 0x8dc   : > { %5000 = vmatmul.f32.gmra.mxu0 %v4930_v33  ;;  %v4931_v3 = vand.u32 4294901760, %v4930_v33 }
 0x8dd   : > { %5184 = vmatpush.msra.mxu2 %v5151_v21 }
 0x8de   : > { %5031 = vmatmul.f32.gmra.mxu1 %v4931_v3  ;;  %v4932_v56 = vsub.f32 %v4930_v33, %v4931_v3 }
 0x8e0   : > { %v4933_v54 = vand.u32 4294901760, %v4932_v56 }
 0x8e2   : > { %4934 = vmatmul.f32.gmra.mxu2 %v4933_v54  ;;  %5085 = vmatmul.f32.vlgmr.msrb.gmra.mxu3 %v4921_v63 }
 0x8e3   : > { %5345 = vmatpush.msrb.mxu3 %v9064_v35 }
 0x8e4   : > { %5118 = vmatmul.f32.vlgmr.msra.gmra.mxu0 %v9026_v25 }
 0x8e5   : > { %5351 = vmatpush.msrb.mxu3 %v9070_v37  ;;  %5377 = vmatpush.msra.mxu0 %v9044_v29 }
 0x8e6   : > { %5157 = vmatmul.f32.vlgmr.msra.gmra.mxu1 %v9003_v10 }
 0x8e7   : > { %5380 = vmatpush.msra.mxu0 %v9052_v32  ;;  %5407 = vmatpush.msra.mxu1 %v9016_v20 }
 0x8e9   : > { %5409 = vmatpush.msra.mxu1 %v9046_v30 }
 0x8ea   : > { %5058 = vmatmul.f32.vlgmr.msrb.gmra.mxu2 %v4921_v63  ;;  %5089 = vmatmul.f32.gmra.mxu3 %v4929_v41  ;;  %v5482_v63 = vmul.f32 %v9720_v42, %v9720_v42 }
 0x8eb   : > { %5306 = vmatpush.msrb.mxu2 %v9016_v20 }
 0x8ec   : > { %5126 = vmatmul.f32.gmra.mxu0 %v9033_v27  ;;  %v5497_v62 = vand.u32 4294901760, %v5482_v63 }
 0x8ed   : > { %5308 = vmatpush.msrb.mxu2 %v9046_v30 }
 0x8ee   : > { %5161 = vmatmul.f32.gmra.mxu1 %v9005_v11  ;;  %v5533_v2 = vsub.f32 %v5482_v63, %v5497_v62 }
 0x8f0   : > { %v5534_v8 = vand.u32 4294901760, %v5533_v2 }
 0x8f2   : > { %5062 = vmatmul.f32.gmra.mxu2 %v4929_v41  ;;  %5217 = vmatmul.f32.vlgmr.msra.gmra.mxu3 %v9014_v18  ;;  %v5535_v0 = vsub.f32 %v5533_v2, %v5534_v8  ;;  %v5499_v41 = vand.u32 4294901760, %v5481_v43 }
 0x8f3   : > { %5469 = vmatpush.msra.mxu3 %v9016_v20 }
 0x8f4   : > { %5250 = vmatmul.f32.vlgmr.msrb.gmra.mxu0 %v9003_v10  ;;  %v5536_v3 = vand.u32 4294901760, %v5535_v0  ;;  %v5539_v56 = vsub.f32 %v5481_v43, %v5499_v41 }
 0x8f5   : > { %5471 = vmatpush.msra.mxu3 %v9046_v30  ;;  %5498 = vmatpush.msrb.mxu0 %v5497_v62 }
 0x8f6   : > { %5277 = vmatmul.f32.vlgmr.msrb.gmra.mxu1 %v9003_v10 }
 0x8f7   : > { %5500 = vmatpush.msrb.mxu0 %v5499_v41  ;;  %5537 = vmatpush.msrb.mxu1 %v5536_v3 }
 0x8fa   : > { %5187 = vmatmul.f32.vlgmr.msra.gmra.mxu2 %v9008_v13  ;;  %5223 = vmatmul.f32.gmra.mxu3 %v9023_v24 }
 0x8fb   : > { %5440 = vmatpush.msra.mxu2 %v9049_v31 }
 0x8fc   : > { %5254 = vmatmul.f32.gmra.mxu0 %v9005_v11 }
 0x8fd   : > { %5444 = vmatpush.msra.mxu2 %v9060_v34 }
 0x8fe   : > { %5281 = vmatmul.f32.gmra.mxu1 %v9005_v11 }
 0x902   : > { %5192 = vmatmul.f32.gmra.mxu2 %v9011_v16 }
 0x951   : > { %v9822_v39 = vpop.f32.mrf.mxu0 }
 0x953   : > { %v9824_v6 = vpop.f32.mrf.mxu1 }
 0x955   : > { %v9820_v22 = vpop.f32.mrf.mxu3 }
 0x959   : > { %v9830_v28 = vpop.f32.mrf.mxu0 }
 0x95a   : > { %10443 = vst [vmem:[#allocation36_spill] sm:$0xff] %v9830_v28 }
 0x95b   : > { %v9832_v59 = vpop.f32.mrf.mxu1 }
 0x95c   : > { %10444 = vst [vmem:[#allocation24_spill] sm:$0xff] %v9832_v59 }
 0x95d   : > { %v9826_v17 = vpop.f32.mrf.mxu2  ;;  %v9828_v52 = vpop.f32.mrf.mxu3 }
 0x961   : > { %v5119_v46 = vpop.f32.mrf.mxu0 }
 0x963   : > { %v5158_v49 = vpop.f32.mrf.mxu1 }
 0x964   : > { %v5159_v45 = vadd.f32 %v5158_v49, %v5119_v46 }
 0x965   : > { %v9834_v61 = vpop.f32.mrf.mxu2  ;;  %v9836_v21 = vpop.f32.mrf.mxu3 }
 0x966   : > { %10445 = vst [vmem:[#allocation32_spill] sm:$0xff] %v9836_v21 }
 0x969   : > { %v5127_v57 = vpop.f32.mrf.mxu0 }
 0x96b   : > { %v5162_v48 = vpop.f32.mrf.mxu1 }
 0x96c   : > { %v5163_v54 = vadd.f32 %v5162_v48, %v5127_v57 }
 0x96d   : > { %v9838_v4 = vpop.f32.mrf.mxu2  ;;  %v9840_v40 = vpop.f32.mrf.mxu3 }
 0x96e   : > { %10446 = vst [vmem:[#allocation30_spill] sm:$0xff] %v9840_v40  ;;  %v5540_v40 = vand.u32 4294901760, %v5539_v56 }
 0x971   : > { %v5251_v12 = vpop.f32.mrf.mxu0 }
 0x973   : > { %v5278_v9 = vpop.f32.mrf.mxu1 }
 0x975   : > { %v9842_v1 = vpop.f32.mrf.mxu2  ;;  %v5218_v15 = vpop.f32.mrf.mxu3 }
 0x976   : > { %10447 = vst [vmem:[#allocation22_spill] sm:$0xff] %v9842_v1  ;;  %v5541_v1 = vsub.f32 %v5539_v56, %v5540_v40 }
 0x979   : > { %v5255_v14 = vpop.f32.mrf.mxu0 }
 0x97d   : > { %v5188_v53 = vpop.f32.mrf.mxu2  ;;  %v5224_v49 = vpop.f32.mrf.mxu3 }
 0x97e   : > { %v5189_v60 = vadd.f32 %v5188_v53, %v5159_v45 }
 0x980   : > { %v5219_v36 = vadd.f32 %v5218_v15, %v5189_v60  ;;  %v5282_v60 = vpop.f32.mrf.mxu1 }
 0x982   : > { %v5252_v33 = vadd.f32 %v5251_v12, %v5219_v36  ;;  %v5542_v12 = vand.u32 4294901760, %v5541_v1 }
 0x984   : > { %v5279_v44 = vadd.f32 %v5278_v9, %v5252_v33  ;;  %5543 = vmatpush.msrb.mxu1 %v5542_v12 }
 0x985   : > { %v5193_v46 = vpop.f32.mrf.mxu2 }
 0x986   : > { %v5286_v63 = vsel %vm301_vm0, %v5279_v44, 0  ;;  %v5194_v45 = vadd.f32 %v5193_v46, %v5163_v54 }
 0x987   : > { %v5309_v53 = vand.u32 4294901760, %v5286_v63 }
 0x988   : > { %v5225_v58 = vadd.f32 %v5224_v49, %v5194_v45 }
 0x989   : > { %v5310_v15 = vsub.f32 %v5286_v63, %v5309_v53  ;;  %5353 = vmatmul.f32.vlgmr.msrb.gmra.mxu3 %v5309_v53 }
 0x98a   : > { %v5256_v36 = vadd.f32 %v5255_v14, %v5225_v58  ;;  %5599 = vmatpush.msrb.mxu3 %v5497_v62 }
 0x98b   : > { %v5311_v43 = vand.u32 4294901760, %v5310_v15  ;;  %5383 = vmatmul.f32.vlgmr.msra.gmra.mxu0 %v5310_v15 }
 0x98c   : > { %v5283_v57 = vadd.f32 %v5282_v60, %v5256_v36  ;;  %5601 = vmatpush.msrb.mxu3 %v5499_v41  ;;  %5632 = vmatpush.msra.mxu0 %v5534_v8  ;;  %v8597_v36 = vld [vmem:[%s8969_s30 + $0x28] sm:$0xff] }
 0x98d   : > { %v5312_v48 = vsub.f32 %v5310_v15, %v5311_v43  ;;  %5413 = vmatmul.f32.vlgmr.msra.gmra.mxu1 %v5311_v43  ;;  %v5870_v43 = vmul.f32 %v8597_v36, %v9720_v42 }
 0x98e   : > { %v5289_v44 = vsel %vm301_vm0, %v5283_v57, 0  ;;  %5661 = vmatpush.msra.mxu1 %v5497_v62  ;;  %5636 = vmatpush.msra.mxu0 %v5540_v40 }
 0x98f   : > { %v5313_v9 = vand.u32 4294901760, %v5312_v48  ;;  %v5317_v0 = vand.u32 4294901760, %v5289_v44  ;;  %v5885_v48 = vand.u32 4294901760, %v5870_v43 }
 0x990   : > { %5663 = vmatpush.msra.mxu1 %v5499_v41 }
 0x991   : > { %5314 = vmatmul.f32.vlgmr.msrb.gmra.mxu2 %v5313_v9  ;;  %5357 = vmatmul.f32.gmra.mxu3 %v5317_v0  ;;  %v5318_v1 = vsub.f32 %v5289_v44, %v5317_v0 }
 0x992   : > { %5569 = vmatpush.msrb.mxu2 %v5533_v2 }
 0x993   : > { %5388 = vmatmul.f32.gmra.mxu0 %v5318_v1  ;;  %v5319_v58 = vand.u32 4294901760, %v5318_v1 }
 0x994   : > { %5572 = vmatpush.msrb.mxu2 %v5539_v56 }
 0x995   : > { %5419 = vmatmul.f32.gmra.mxu1 %v5319_v58  ;;  %v5320_v14 = vsub.f32 %v5318_v1, %v5319_v58  ;;  %v5921_v1 = vsub.f32 %v5870_v43, %v5885_v48 }
 0x997   : > { %v5321_v33 = vand.u32 4294901760, %v5320_v14 }
 0x999   : > { %5322 = vmatmul.f32.gmra.mxu2 %v5321_v33  ;;  %5473 = vmatmul.f32.vlgmr.msra.gmra.mxu3 %v5309_v53  ;;  %v5922_v33 = vand.u32 4294901760, %v5921_v1 }
 0x99a   : > { %5733 = vmatpush.msra.mxu3 %v9064_v35 }
 0x99b   : > { %5506 = vmatmul.f32.vlgmr.msrb.gmra.mxu0 %v9026_v25 }
 0x99c   : > { %5739 = vmatpush.msra.mxu3 %v9070_v37  ;;  %5765 = vmatpush.msrb.mxu0 %v9044_v29 }
 0x99d   : > { %5545 = vmatmul.f32.vlgmr.msrb.gmra.mxu1 %v9003_v10 }
 0x99e   : > { %5768 = vmatpush.msrb.mxu0 %v9052_v32  ;;  %5795 = vmatpush.msrb.mxu1 %v9016_v20 }
 0x9a0   : > { %5797 = vmatpush.msrb.mxu1 %v9046_v30 }
 0x9a1   : > { %5446 = vmatmul.f32.vlgmr.msra.gmra.mxu2 %v5309_v53  ;;  %5477 = vmatmul.f32.gmra.mxu3 %v5317_v0 }
 0x9a2   : > { %5694 = vmatpush.msra.mxu2 %v9016_v20 }
 0x9a3   : > { %5514 = vmatmul.f32.gmra.mxu0 %v9033_v27 }
 0x9a4   : > { %5696 = vmatpush.msra.mxu2 %v9046_v30 }
 0x9a5   : > { %5549 = vmatmul.f32.gmra.mxu1 %v9005_v11 }
 0x9a9   : > { %5450 = vmatmul.f32.gmra.mxu2 %v5317_v0  ;;  %5605 = vmatmul.f32.vlgmr.msrb.gmra.mxu3 %v9014_v18 }
 0x9aa   : > { %5857 = vmatpush.msrb.mxu3 %v9016_v20 }
 0x9ab   : > { %5638 = vmatmul.f32.vlgmr.msra.gmra.mxu0 %v9003_v10 }
 0x9ac   : > { %5859 = vmatpush.msrb.mxu3 %v9046_v30  ;;  %5886 = vmatpush.msra.mxu0 %v5885_v48 }
 0x9ad   : > { %5665 = vmatmul.f32.vlgmr.msra.gmra.mxu1 %v9003_v10 }
 0x9b1   : > { %5575 = vmatmul.f32.vlgmr.msrb.gmra.mxu2 %v9008_v13  ;;  %5611 = vmatmul.f32.gmra.mxu3 %v9023_v24 }
 0x9b2   : > { %5828 = vmatpush.msrb.mxu2 %v9049_v31 }
 0x9b3   : > { %5642 = vmatmul.f32.gmra.mxu0 %v9005_v11 }
 0x9b4   : > { %5832 = vmatpush.msrb.mxu2 %v9060_v34 }
 0x9b5   : > { %5669 = vmatmul.f32.gmra.mxu1 %v9005_v11 }
 0x9b9   : > { %5580 = vmatmul.f32.gmra.mxu2 %v9011_v16 }
 0xa08   : > { %v9876_v62 = vpop.f32.mrf.mxu0 }
 0xa0a   : > { %v9878_v2 = vpop.f32.mrf.mxu1 }
 0xa0b   : > { %10448 = vst [vmem:[#allocation16_spill] sm:$0xff] %v9878_v2 }
 0xa0c   : > { %v9874_v40 = vpop.f32.mrf.mxu3 }
 0xa10   : > { %v9884_v3 = vpop.f32.mrf.mxu0 }
 0xa11   : > { %10450 = vst [vmem:[#allocation25_spill] sm:$0xff] %v9884_v3  ;;  %v5923_v3 = vsub.f32 %v5921_v1, %v5922_v33 }
 0xa12   : > { %v9886_v56 = vpop.f32.mrf.mxu1 }
 0xa13   : > { %10451 = vst [vmem:[#allocation19_spill] sm:$0xff] %v9886_v56  ;;  %v8598_v56 = vld [vmem:[%s8969_s30 + $0x20] sm:$0xff]  ;;  %v5924_v38 = vand.u32 4294901760, %v5923_v3 }
 0xa14   : > { %v9880_v8 = vpop.f32.mrf.mxu2  ;;  %v9882_v41 = vpop.f32.mrf.mxu3 }
 0xa15   : > { %10449 = vst [vmem:[#allocation29_spill] sm:$0xff] %v9882_v41  ;;  %5925 = vmatpush.msra.mxu1 %v5924_v38 }
 0xa18   : > { %v5507_v49 = vpop.f32.mrf.mxu0 }
 0xa1a   : > { %v5546_v45 = vpop.f32.mrf.mxu1 }
 0xa1b   : > { %v5547_v44 = vadd.f32 %v5546_v45, %v5507_v49 }
 0xa1c   : > { %v9888_v54 = vpop.f32.mrf.mxu2  ;;  %v9890_v46 = vpop.f32.mrf.mxu3 }
 0xa1d   : > { %10452 = vst [vmem:[#allocation37_spill] sm:$0xff] %v9888_v54 }
 0xa1e   : > { %10453 = vst [vmem:[#allocation26_spill] sm:$0xff] %v9890_v46 }
 0xa20   : > { %v5515_v15 = vpop.f32.mrf.mxu0 }
 0xa22   : > { %v5550_v12 = vpop.f32.mrf.mxu1 }
 0xa23   : > { %v5551_v36 = vadd.f32 %v5550_v12, %v5515_v15 }
 0xa24   : > { %v9892_v63 = vpop.f32.mrf.mxu2  ;;  %v9894_v53 = vpop.f32.mrf.mxu3 }
 0xa25   : > { %10454 = vst [vmem:[#allocation42_spill] sm:$0xff] %v9892_v63 }
 0xa26   : > { %10455 = vst [vmem:[#allocation27_spill] sm:$0xff] %v9894_v53  ;;  %v5869_v53 = vmul.f32 %v8598_v56, %v9734_v7 }
 0xa28   : > { %v5639_v0 = vpop.f32.mrf.mxu0 }
 0xa2a   : > { %v5666_v14 = vpop.f32.mrf.mxu1 }
 0xa2c   : > { %v9896_v60 = vpop.f32.mrf.mxu2  ;;  %v5606_v57 = vpop.f32.mrf.mxu3 }
 0xa2d   : > { %10456 = vst [vmem:[#allocation39_spill] sm:$0xff] %v9896_v60  ;;  %v5887_v60 = vand.u32 4294901760, %v5869_v53 }
 0xa2f   : > { %5888 = vmatpush.msra.mxu0 %v5887_v60  ;;  %v5927_v42 = vsub.f32 %v5869_v53, %v5887_v60 }
 0xa30   : > { %v5643_v26 = vpop.f32.mrf.mxu0 }
 0xa31   : > { %v5928_v21 = vand.u32 4294901760, %v5927_v42 }
 0xa33   : > { %v5929_v2 = vsub.f32 %v5927_v42, %v5928_v21 }
 0xa34   : > { %v5576_v9 = vpop.f32.mrf.mxu2  ;;  %v5612_v45 = vpop.f32.mrf.mxu3 }
 0xa35   : > { %v5577_v58 = vadd.f32 %v5576_v9, %v5547_v44 }
 0xa37   : > { %v5607_v46 = vadd.f32 %v5606_v57, %v5577_v58  ;;  %v5670_v57 = vpop.f32.mrf.mxu1 }
 0xa39   : > { %v5640_v59 = vadd.f32 %v5639_v0, %v5607_v46  ;;  %v5930_v46 = vand.u32 4294901760, %v5929_v2 }
 0xa3b   : > { %v5667_v63 = vadd.f32 %v5666_v14, %v5640_v59  ;;  %5931 = vmatpush.msra.mxu1 %v5930_v46  ;;  %v9953_v46 = vld [vmem:[%s8969_s30 + $0x38] sm:$0xff] }
 0xa3c   : > { %v5581_v49 = vpop.f32.mrf.mxu2  ;;  %10463 = vst [vmem:[#allocation34_spill] sm:$0xff] %v9953_v46 }
 0xa3d   : > { %v5674_v43 = vsel %vm301_vm0, %v5667_v63, 0  ;;  %v5582_v44 = vadd.f32 %v5581_v49, %v5551_v36 }
 0xa3e   : > { %v5697_v9 = vand.u32 4294901760, %v5674_v43 }
 0xa3f   : > { %v5613_v7 = vadd.f32 %v5612_v45, %v5582_v44 }
 0xa40   : > { %v5698_v56 = vsub.f32 %v5674_v43, %v5697_v9  ;;  %5741 = vmatmul.f32.vlgmr.msra.gmra.mxu3 %v5697_v9 }
 0xa41   : > { %v5644_v3 = vadd.f32 %v5643_v26, %v5613_v7  ;;  %5987 = vmatpush.msra.mxu3 %v5885_v48 }
 0xa42   : > { %v5699_v53 = vand.u32 4294901760, %v5698_v56  ;;  %5771 = vmatmul.f32.vlgmr.msrb.gmra.mxu0 %v5698_v56 }
 0xa43   : > { %v5671_v59 = vadd.f32 %v5670_v57, %v5644_v3  ;;  %5989 = vmatpush.msra.mxu3 %v5887_v60  ;;  %6020 = vmatpush.msrb.mxu0 %v5922_v33  ;;  %v6342_v3 = vand.u32 4294901760, %v9953_v46 }
 0xa44   : > { %v5700_v38 = vsub.f32 %v5698_v56, %v5699_v53  ;;  %5801 = vmatmul.f32.vlgmr.msrb.gmra.mxu1 %v5699_v53 }
 0xa45   : > { %v5677_v63 = vsel %vm301_vm0, %v5671_v59, 0  ;;  %6049 = vmatpush.msrb.mxu1 %v5885_v48  ;;  %6024 = vmatpush.msrb.mxu0 %v5928_v21 }
 0xa46   : > { %v5701_v15 = vand.u32 4294901760, %v5700_v38  ;;  %v5705_v12 = vand.u32 4294901760, %v5677_v63  ;;  %v6378_v38 = vsub.f32 %v9953_v46, %v6342_v3 }
 0xa47   : > { %6051 = vmatpush.msrb.mxu1 %v5887_v60 }
 0xa48   : > { %5702 = vmatmul.f32.vlgmr.msra.gmra.mxu2 %v5701_v15  ;;  %5745 = vmatmul.f32.gmra.mxu3 %v5705_v12  ;;  %v5706_v2 = vsub.f32 %v5677_v63, %v5705_v12 }
 0xa49   : > { %5957 = vmatpush.msra.mxu2 %v5921_v1 }
 0xa4a   : > { %5776 = vmatmul.f32.gmra.mxu0 %v5706_v2  ;;  %v5707_v26 = vand.u32 4294901760, %v5706_v2 }
 0xa4b   : > { %5960 = vmatpush.msra.mxu2 %v5927_v42 }
 0xa4c   : > { %5807 = vmatmul.f32.gmra.mxu1 %v5707_v26  ;;  %v5708_v0 = vsub.f32 %v5706_v2, %v5707_v26  ;;  %v6379_v2 = vand.u32 4294901760, %v6378_v38 }
 0xa4e   : > { %v5709_v58 = vand.u32 4294901760, %v5708_v0 }
 0xa50   : > { %5710 = vmatmul.f32.gmra.mxu2 %v5709_v58  ;;  %5861 = vmatmul.f32.vlgmr.msrb.gmra.mxu3 %v5697_v9  ;;  %v6380_v58 = vsub.f32 %v6378_v38, %v6379_v2 }
 0xa51   : > { %6121 = vmatpush.msrb.mxu3 %v9064_v35 }
 0xa52   : > { %5894 = vmatmul.f32.vlgmr.msra.gmra.mxu0 %v9026_v25 }
 0xa53   : > { %6127 = vmatpush.msrb.mxu3 %v9070_v37  ;;  %6153 = vmatpush.msra.mxu0 %v9044_v29 }
 0xa54   : > { %5933 = vmatmul.f32.vlgmr.msra.gmra.mxu1 %v9003_v10 }
 0xa55   : > { %6156 = vmatpush.msra.mxu0 %v9052_v32  ;;  %6183 = vmatpush.msra.mxu1 %v9016_v20 }
 0xa57   : > { %6185 = vmatpush.msra.mxu1 %v9046_v30 }
 0xa58   : > { %5834 = vmatmul.f32.vlgmr.msrb.gmra.mxu2 %v5697_v9  ;;  %5865 = vmatmul.f32.gmra.mxu3 %v5705_v12 }
 0xa59   : > { %6082 = vmatpush.msrb.mxu2 %v9016_v20 }
 0xa5a   : > { %5902 = vmatmul.f32.gmra.mxu0 %v9033_v27 }
 0xa5b   : > { %6084 = vmatpush.msrb.mxu2 %v9046_v30 }
 0xa5c   : > { %5937 = vmatmul.f32.gmra.mxu1 %v9005_v11 }
 0xa60   : > { %5838 = vmatmul.f32.gmra.mxu2 %v5705_v12  ;;  %5993 = vmatmul.f32.vlgmr.msra.gmra.mxu3 %v9014_v18 }
 0xa61   : > { %6245 = vmatpush.msra.mxu3 %v9016_v20 }
 0xa62   : > { %6026 = vmatmul.f32.vlgmr.msrb.gmra.mxu0 %v9003_v10 }
 0xa63   : > { %6247 = vmatpush.msra.mxu3 %v9046_v30  ;;  %6343 = vmatpush.msrb.mxu0 %v6342_v3 }
 0xa64   : > { %6053 = vmatmul.f32.vlgmr.msrb.gmra.mxu1 %v9003_v10 }
 0xa68   : > { %5963 = vmatmul.f32.vlgmr.msra.gmra.mxu2 %v9008_v13  ;;  %5999 = vmatmul.f32.gmra.mxu3 %v9023_v24 }
 0xa69   : > { %6216 = vmatpush.msra.mxu2 %v9049_v31 }
 0xa6a   : > { %6030 = vmatmul.f32.gmra.mxu0 %v9005_v11 }
 0xa6b   : > { %6220 = vmatpush.msra.mxu2 %v9060_v34 }
 0xa6c   : > { %6057 = vmatmul.f32.gmra.mxu1 %v9005_v11 }
 0xa70   : > { %5968 = vmatmul.f32.gmra.mxu2 %v9011_v16 }
 0xabf   : > { %v9930_v60 = vpop.f32.mrf.mxu0 }
 0xac1   : > { %v9932_v48 = vpop.f32.mrf.mxu1 }
 0xac3   : > { %v9928_v21 = vpop.f32.mrf.mxu3 }
 0xac7   : > { %v9938_v33 = vpop.f32.mrf.mxu0 }
 0xac8   : > { %10457 = vst [vmem:[#allocation41_spill] sm:$0xff] %v9938_v33 }
 0xac9   : > { %v9940_v42 = vpop.f32.mrf.mxu1 }
 0xaca   : > { %10458 = vst [vmem:[#allocation33_spill] sm:$0xff] %v9940_v42 }
 0xacb   : > { %v9934_v1 = vpop.f32.mrf.mxu2  ;;  %v9936_v14 = vpop.f32.mrf.mxu3 }
 0xacf   : > { %v5895_v45 = vpop.f32.mrf.mxu0 }
 0xad1   : > { %v5934_v44 = vpop.f32.mrf.mxu1 }
 0xad2   : > { %v5935_v59 = vadd.f32 %v5934_v44, %v5895_v45 }
 0xad3   : > { %v9942_v36 = vpop.f32.mrf.mxu2  ;;  %v9944_v49 = vpop.f32.mrf.mxu3 }
 0xad4   : > { %10459 = vst [vmem:[#allocation21_spill] sm:$0xff] %v9944_v49  ;;  %v6381_v49 = vand.u32 4294901760, %v6380_v58 }
 0xad6   : > { %6382 = vmatpush.msrb.mxu1 %v6381_v49 }
 0xad7   : > { %v5903_v7 = vpop.f32.mrf.mxu0 }
 0xad9   : > { %v5938_v57 = vpop.f32.mrf.mxu1 }
 0xada   : > { %v5939_v45 = vadd.f32 %v5938_v57, %v5903_v7 }
 0xadb   : > { %v9946_v43 = vpop.f32.mrf.mxu2  ;;  %v9948_v9 = vpop.f32.mrf.mxu3 }
 0xadc   : > { %10460 = vst [vmem:[#allocation28_spill] sm:$0xff] %v9946_v43 }
 0xadd   : > { %10461 = vst [vmem:[#allocation20_spill] sm:$0xff] %v9948_v9  ;;  %v9958_v9 = vld [vmem:[%s8969_s30 + $0x30] sm:$0xff] }
 0xade   : > { %10464 = vst [vmem:[#allocation43_spill] sm:$0xff] %v9958_v9 }
 0xadf   : > { %v6027_v15 = vpop.f32.mrf.mxu0 }
 0xae1   : > { %v6054_v26 = vpop.f32.mrf.mxu1 }
 0xae3   : > { %v9950_v56 = vpop.f32.mrf.mxu2  ;;  %v5994_v53 = vpop.f32.mrf.mxu3 }
 0xae4   : > { %10462 = vst [vmem:[#allocation38_spill] sm:$0xff] %v9950_v56  ;;  %v6344_v56 = vand.u32 4294901760, %v9958_v9 }
 0xae6   : > { %6345 = vmatpush.msrb.mxu0 %v6344_v56  ;;  %v6384_v33 = vsub.f32 %v9958_v9, %v6344_v56 }
 0xae8   : > { %v6385_v41 = vand.u32 4294901760, %v6384_v33 }
 0xaea   : > { %v6386_v54 = vsub.f32 %v6384_v33, %v6385_v41 }
 0xaeb   : > { %v5964_v63 = vpop.f32.mrf.mxu2  ;;  %v6000_v43 = vpop.f32.mrf.mxu3 }
 0xaec   : > { %v5965_v12 = vadd.f32 %v5964_v63, %v5935_v59 }
 0xaee   : > { %v5995_v0 = vadd.f32 %v5994_v53, %v5965_v12  ;;  %v6031_v12 = vpop.f32.mrf.mxu0 }
 0xaf0   : > { %v6028_v42 = vadd.f32 %v6027_v15, %v5995_v0  ;;  %v6058_v15 = vpop.f32.mrf.mxu1  ;;  %v6387_v0 = vand.u32 4294901760, %v6386_v54 }
 0xaf2   : > { %v6055_v44 = vadd.f32 %v6054_v26, %v6028_v42  ;;  %6388 = vmatpush.msrb.mxu1 %v6387_v0 }
 0xaf3   : > { %v5969_v46 = vpop.f32.mrf.mxu2 }
 0xaf4   : > { %v6062_v59 = vsel %vm301_vm0, %v6055_v44, 0  ;;  %v5970_v63 = vadd.f32 %v5969_v46, %v5939_v45  ;;  %v10470_v44 = vld [vmem:[#allocation28_spill] sm:$0xff] }
 0xaf5   : > { %v6085_v53 = vand.u32 4294901760, %v6062_v59 }
 0xaf6   : > { %v6001_v28 = vadd.f32 %v6000_v43, %v5970_v63  ;;  %v10473_v63 = vld [vmem:[#allocation42_spill] sm:$0xff] }
 0xaf7   : > { %v6086_v55 = vsub.f32 %v6062_v59, %v6085_v53  ;;  %6129 = vmatmul.f32.vlgmr.msrb.gmra.mxu3 %v6085_v53  ;;  %v10472_v59 = vld [vmem:[#allocation32_spill] sm:$0xff] }
 0xaf8   : > { %v6032_v58 = vadd.f32 %v6031_v12, %v6001_v28  ;;  %6444 = vmatpush.msrb.mxu3 %v6342_v3 }
 0xaf9   : > { %v6087_v9 = vand.u32 4294901760, %v6086_v55  ;;  %6159 = vmatmul.f32.vlgmr.msra.gmra.mxu0 %v6086_v55 }
 0xafa   : > { %v6059_v42 = vadd.f32 %v6058_v15, %v6032_v58  ;;  %6446 = vmatpush.msrb.mxu3 %v6344_v56  ;;  %6477 = vmatpush.msra.mxu0 %v6379_v2  ;;  %v4971_v2 = vadd.f32 %v9828_v52, %v9834_v61  ;;  %v10467_v61 = vld [vmem:[#allocation37_spill] sm:$0xff]  ;;  %v10476_v15 = vld [vmem:[#allocation24_spill] sm:$0xff] }
 0xafb   : > { %v6088_v49 = vsub.f32 %v6086_v55, %v6087_v9  ;;  %6189 = vmatmul.f32.vlgmr.msra.gmra.mxu1 %v6087_v9  ;;  %v4967_v55 = vadd.f32 %v9820_v22, %v9826_v17  ;;  %v10477_v58 = vld [vmem:[#allocation25_spill] sm:$0xff] }
 0xafc   : > { %v6065_v7 = vsel %vm301_vm0, %v6059_v42, 0  ;;  %6506 = vmatpush.msra.mxu1 %v6342_v3  ;;  %6481 = vmatpush.msra.mxu0 %v6385_v41  ;;  %v4581_v41 = vadd.f32 %v9766_v51, %v9772_v47  ;;  %v4585_v51 = vadd.f32 %v9774_v5, %v9780_v23  ;;  %v10471_v23 = vld [vmem:[#allocation31_spill] sm:$0xff] }
 0xafd   : > { %v6089_v57 = vand.u32 4294901760, %v6088_v49  ;;  %v6093_v43 = vand.u32 4294901760, %v6065_v7  ;;  %v4997_v9 = vadd.f32 %v9822_v39, %v4967_v55  ;;  %v10478_v49 = vld [vmem:[#allocation21_spill] sm:$0xff] }
 0xafe   : > { %6508 = vmatpush.msra.mxu1 %v6344_v56  ;;  %v5355_v56 = vadd.f32 %v9874_v40, %v9880_v8  ;;  %v4611_v3 = vadd.f32 %v9768_v19, %v4581_v41  ;;  %v5747_v40 = vadd.f32 %v9936_v14, %v9942_v36  ;;  %v10465_v8 = vld [vmem:[#allocation23_spill] sm:$0xff]  ;;  %v10474_v14 = vld [vmem:[#allocation41_spill] sm:$0xff] }
 0xaff   : > { %6090 = vmatmul.f32.vlgmr.msrb.gmra.mxu2 %v6089_v57  ;;  %6133 = vmatmul.f32.gmra.mxu3 %v6093_v43  ;;  %v6094_v54 = vsub.f32 %v6065_v7, %v6093_v43  ;;  %v5027_v22 = vadd.f32 %v9824_v6, %v4997_v9  ;;  %v10468_v6 = vld [vmem:[#allocation29_spill] sm:$0xff]  ;;  %v10479_v57 = vld [vmem:[#allocation40_spill] sm:$0xff] }
 0xb00   : > { %6414 = vmatpush.msrb.mxu2 %v6378_v38  ;;  %v5385_v17 = vadd.f32 %v9876_v62, %v5355_v56  ;;  %v4641_v47 = vadd.f32 %v9770_v50, %v4611_v3  ;;  %v10469_v62 = vld [vmem:[#allocation16_spill] sm:$0xff]  ;;  %v4616_v50 = vadd.f32 %v10471_v23, %v4585_v51  ;;  %v5778_v36 = vadd.f32 %v10474_v14, %v5747_v40  ;;  %v10482_v41 = vld [vmem:[#allocation33_spill] sm:$0xff]  ;;  %v10483_v56 = vld [vmem:[#allocation35_spill] sm:$0xff] }
 0xb01   : > { %6164 = vmatmul.f32.gmra.mxu0 %v6094_v54  ;;  %v6095_v28 = vand.u32 4294901760, %v6094_v54  ;;  %v5060_v39 = vadd.f32 %v9838_v4, %v5027_v22 }
 0xb02   : > { %6417 = vmatpush.msrb.mxu2 %v6384_v33  ;;  %v5743_v33 = vadd.f32 %v9928_v21, %v9934_v1  ;;  %v4674_v21 = vadd.f32 %v10465_v8, %v4641_v47  ;;  %v5359_v1 = vadd.f32 %v10468_v6, %v10467_v61  ;;  %v5415_v45 = vadd.f32 %v10469_v62, %v5385_v17  ;;  %v10485_v17 = vld [vmem:[#allocation38_spill] sm:$0xff]  ;;  %v10489_v61 = vld [vmem:[#allocation20_spill] sm:$0xff] }
 0xb03   : > { %6195 = vmatmul.f32.gmra.mxu1 %v6095_v28  ;;  %v6096_v46 = vsub.f32 %v6094_v54, %v6095_v28  ;;  %v5087_v4 = vadd.f32 %v10472_v59, %v5060_v39  ;;  %v10480_v28 = vld [vmem:[#allocation22_spill] sm:$0xff] }
 0xb04   : > { %v5773_v38 = vadd.f32 %v9930_v60, %v5743_v33  ;;  %v10466_v60 = vld [vmem:[#allocation36_spill] sm:$0xff]  ;;  %v5390_v42 = vadd.f32 %v10477_v58, %v5359_v1  ;;  %v5809_v33 = vadd.f32 %v10482_v41, %v5778_v36  ;;  %v10486_v47 = vld [vmem:[#allocation30_spill] sm:$0xff] }
 0xb05   : > { %v6097_v26 = vand.u32 4294901760, %v6096_v46  ;;  %v5002_v52 = vadd.f32 %v10466_v60, %v4971_v2  ;;  %v6259_v54 = vmul.f32 %v5087_v4, %v5087_v4 }
 0xb06   : > { %v5803_v19 = vadd.f32 %v9932_v48, %v5773_v38  ;;  %v10475_v48 = vld [vmem:[#allocation17_spill] sm:$0xff]  ;;  %v10484_v38 = vld [vmem:[#allocation19_spill] sm:$0xff]  ;;  %v5840_v51 = vadd.f32 %v10485_v17, %v5809_v33 }
 0xb07   : > { %6098 = vmatmul.f32.gmra.mxu2 %v6097_v26  ;;  %6249 = vmatmul.f32.vlgmr.msra.gmra.mxu3 %v6085_v53  ;;  %v4701_v12 = vadd.f32 %v10475_v48, %v4674_v21  ;;  %v5033_v0 = vadd.f32 %v10476_v15, %v5002_v52  ;;  %v10481_v26 = vld [vmem:[#allocation26_spill] sm:$0xff]  ;;  %v5421_v2 = vadd.f32 %v10484_v38, %v5390_v42 }
 0xb08   : > { %6578 = vmatpush.msra.mxu3 %v9064_v35  ;;  %v5836_v5 = vadd.f32 %v10470_v44, %v5803_v19  ;;  %v10487_v19 = vld [vmem:[#allocation39_spill] sm:$0xff]  ;;  %v10488_v21 = vld [vmem:[#allocation18_spill] sm:$0xff]  ;;  %v5867_v6 = vadd.f32 %v10489_v61, %v5840_v51 }
 0xb09   : > { %6351 = vmatmul.f32.vlgmr.msrb.gmra.mxu0 %v9026_v25  ;;  %v5064_v46 = vadd.f32 %v10480_v28, %v5033_v0  ;;  %v6257_v9 = vmul.f32 %v4701_v12, %v4701_v12  ;;  %v5452_v8 = vadd.f32 %v10487_v19, %v5421_v2 }
 0xb0a   : > { %6584 = vmatpush.msra.mxu3 %v9070_v37  ;;  %6610 = vmatpush.msrb.mxu0 %v9044_v29  ;;  %v5863_v7 = vadd.f32 %v10478_v49, %v5836_v5 }
 0xb0b   : > { %6390 = vmatmul.f32.vlgmr.msrb.gmra.mxu1 %v9003_v10  ;;  %v5091_v39 = vadd.f32 %v10486_v47, %v5064_v46  ;;  %v6279_v1 = vadd.f32 %v6259_v54, %v6257_v9 }
 0xb0c   : > { %6613 = vmatpush.msrb.mxu0 %v9052_v32  ;;  %6640 = vmatpush.msrb.mxu1 %v9016_v20  ;;  %v6265_v22 = vsub.f32 %v5863_v7, %v6259_v54 }
 0xb0d   : > { %v6260_v62 = vmul.f32 %v5091_v39, %v5091_v39 }
 0xb0e   : > { %6642 = vmatpush.msrb.mxu1 %v9046_v30 }
 0xb0f   : > { %6222 = vmatmul.f32.vlgmr.msra.gmra.mxu2 %v6085_v53  ;;  %6253 = vmatmul.f32.gmra.mxu3 %v6093_v43  ;;  %v5448_v53 = vadd.f32 %v10473_v63, %v5415_v45  ;;  %v10490_v45 = vld [vmem:[#allocation27_spill] sm:$0xff]  ;;  %v6281_v63 = vadd.f32 0.0001, %v6279_v1 }
 0xb10   : > { %6539 = vmatpush.msra.mxu2 %v9016_v20  ;;  %v5479_v44 = vadd.f32 %v10490_v45, %v5452_v8 }
 0xb11   : > { %6359 = vmatmul.f32.gmra.mxu0 %v9033_v27  ;;  %v5475_v55 = vadd.f32 %v10481_v26, %v5448_v53 }
 0xb12   : > { %6541 = vmatpush.msra.mxu2 %v9046_v30 }
 0xb13   : > { %6394 = vmatmul.f32.gmra.mxu1 %v9005_v11  ;;  %v6263_v40 = vsub.f32 %v5475_v55, %v6257_v9 }
 0xb15   : > { %v6283_v52 = vadd.f32 %v6265_v22, %v6263_v40  ;;  %v6261_v22 = vmul.f32 %v5087_v4, %v4701_v12 }
 0xb17   : > { %6226 = vmatmul.f32.gmra.mxu2 %v6093_v43  ;;  %6450 = vmatmul.f32.vlgmr.msrb.gmra.mxu3 %v9014_v18  ;;  %v4647_v43 = vadd.f32 %v10479_v57, %v4616_v50  ;;  %v6285_v23 = vadd.f32 0.0009, %v6283_v52  ;;  %v6266_v50 = vsub.f32 %v5867_v6, %v6260_v62  ;;  %v6269_v52 = vmul.f32 2.0, %v6261_v22 }
 0xb18   : > { %6702 = vmatpush.msrb.mxu3 %v9016_v20 }
 0xb19   : > { %6483 = vmatmul.f32.vlgmr.msra.gmra.mxu0 %v9003_v10  ;;  %v4678_v3 = vadd.f32 %v10483_v56, %v4647_v43  ;;  %v6287_v36 = vmul.f32 %v6285_v23, %v6281_v63  ;;  %v6271_v23 = vadd.f32 0.0001, %v6269_v52 }
 0xb1a   : > { %6704 = vmatpush.msrb.mxu3 %v9046_v30 }
 0xb1b   : > { %6510 = vmatmul.f32.vlgmr.msra.gmra.mxu1 %v9003_v10  ;;  %v4705_v60 = vadd.f32 %v10488_v21, %v4678_v3  ;;  %8587 = vrcp.f32 %v6287_v36  ;;  %vm6294_vm3 = vweird.f32 %v6287_v36  ;;  %v6298_v4 = vand.u32 2147483647, %v6287_v36 }
 0xb1d   : > { %v6258_v5 = vmul.f32 %v4705_v60, %v4705_v60  ;;  %vm6299_vm5 = vcmp.eq.f32.partialorder %v6298_v4, 8.507059e+37 }
 0xb1f   : > { %6420 = vmatmul.f32.vlgmr.msrb.gmra.mxu2 %v9008_v13  ;;  %6456 = vmatmul.f32.gmra.mxu3 %v9023_v24  ;;  %v6264_v53 = vsub.f32 %v5479_v44, %v6258_v5  ;;  %v6280_v15 = vadd.f32 %v6260_v62, %v6258_v5  ;;  %v6300_v62 = vand.u32 2147483648, %v6287_v36 }
 0xb20   : > { %6673 = vmatpush.msrb.mxu2 %v9049_v31 }
 0xb21   : > { %6487 = vmatmul.f32.gmra.mxu0 %v9005_v11  ;;  %v6284_v48 = vadd.f32 %v6266_v50, %v6264_v53  ;;  %v6282_v49 = vadd.f32 0.0001, %v6280_v15  ;;  %v8588_v54 = vpop.eup %8587  ;;  %v6262_v50 = vmul.f32 %v5091_v39, %v4705_v60  ;;  %v6301_v15 = vor.u32 1.1754944e-38, %v6300_v62 }
 0xb22   : > { %6677 = vmatpush.msrb.mxu2 %v9060_v34  ;;  %v6290_v55 = vmul.f32 %v8588_v54, %v6287_v36  ;;  %vm6295_vm2 = vweird.f32 %v8588_v54  ;;  %v10046_v36 = vld [vmem:[%s8977_s5 + $0x38] sm:$0xff] }
 0xb23   : > { %6514 = vmatmul.f32.gmra.mxu1 %v9005_v11  ;;  %v6286_v58 = vadd.f32 0.0009, %v6284_v48  ;;  %vm6296_vm4 = vmor %vm6294_vm3, %vm6295_vm2 }
 0xb24   : > { %v6291_v56 = vsub.f32 1.0, %v6290_v55 }
 0xb25   : > { %v10036_v57 = vmul.f32 %v6286_v58, %v6282_v49  ;;  %v6270_v49 = vmul.f32 2.0, %v6262_v50 }
 0xb26   : > { %v6292_v19 = vmul.f32 %v8588_v54, %v6291_v56 }
 0xb27   : > { %6425 = vmatmul.f32.gmra.mxu2 %v9011_v16  ;;  %8589 = vrcp.f32 %v10036_v57  ;;  %vm6308_vm7 = vweird.f32 %v10036_v57  ;;  %v6272_v56 = vadd.f32 0.0001, %v6270_v49 }
 0xb28   : > { %v6293_v6 = vadd.f32 %v8588_v54, %v6292_v19 }
 0xb2a   : > { %v6297_v53 = vsel %vm6296_vm4, %v8588_v54, %v6293_v6  ;;  %v6728_v54 = vand.u32 4294901760, %v10046_v36 }
 0xb2c   : > { %6729 = vmatpush.msra.mxu0 %v6728_v54 }
 0xb2d   : > { %v10039_v3 = vpop.eup %8589 }
 0xb2e   : > { %v6304_v47 = vmul.f32 %v10039_v3, %v10036_v57  ;;  %vm6309_vm6 = vweird.f32 %v10039_v3 }
 0xb2f   : > { %vm6310_vm8 = vmor %vm6308_vm7, %vm6309_vm6 }
 0xb30   : > { %v6305_v1 = vsub.f32 1.0, %v6304_v47 }
 0xb32   : > { %v6306_v48 = vmul.f32 %v10039_v3, %v6305_v1 }
 0xb76   : > { %v6160_v14 = vpop.f32.mrf.mxu0 }
 0xb78   : > { %v6190_v0 = vpop.f32.mrf.mxu1 }
 0xb7a   : > { %v6130_v59 = vpop.f32.mrf.mxu3 }
 0xb7e   : > { %v6165_v43 = vpop.f32.mrf.mxu0 }
 0xb80   : > { %v6196_v46 = vpop.f32.mrf.mxu1 }
 0xb82   : > { %v6091_v42 = vpop.f32.mrf.mxu2  ;;  %v6134_v7 = vpop.f32.mrf.mxu3 }
 0xb83   : > { %v6131_v28 = vadd.f32 %v6130_v59, %v6091_v42 }
 0xb85   : > { %v6161_v41 = vadd.f32 %v6160_v14, %v6131_v28  ;;  %v6314_v28 = vand.u32 2147483648, %v10036_v57 }
 0xb86   : > { %v6352_v9 = vpop.f32.mrf.mxu0 }
 0xb87   : > { %v6191_v2 = vadd.f32 %v6190_v0, %v6161_v41  ;;  %v6312_v41 = vand.u32 2147483647, %v10036_v57 }
 0xb88   : > { %v6391_v51 = vpop.f32.mrf.mxu1 }
 0xb89   : > { %vm6313_vm9 = vcmp.eq.f32.partialorder %v6312_v41, 8.507059e+37 }
 0xb8a   : > { %v6099_v26 = vpop.f32.mrf.mxu2  ;;  %v6250_v33 = vpop.f32.mrf.mxu3 }
 0xb8b   : > { %v6135_v38 = vadd.f32 %v6134_v7, %v6099_v26  ;;  %v6302_v7 = vsel %vm6299_vm5, %v6301_v15, %v6297_v53  ;;  %v6392_v26 = vadd.f32 %v6391_v51, %v6352_v9  ;;  %v6315_v9 = vor.u32 1.1754944e-38, %v6314_v28 }
 0xb8d   : > { %v6166_v8 = vadd.f32 %v6165_v43, %v6135_v38  ;;  %v6307_v43 = vadd.f32 %v10039_v3, %v6306_v48 }
 0xb8e   : > { %v6360_v44 = vpop.f32.mrf.mxu0 }
 0xb8f   : > { %v6197_v12 = vadd.f32 %v6196_v46, %v6166_v8 }
 0xb90   : > { %v6395_v0 = vpop.f32.mrf.mxu1 }
 0xb92   : > { %v6223_v17 = vpop.f32.mrf.mxu2  ;;  %v6254_v45 = vpop.f32.mrf.mxu3 }
 0xb93   : > { %v6224_v40 = vadd.f32 %v6223_v17, %v6191_v2  ;;  %v6311_v17 = vsel %vm6310_vm8, %v10039_v3, %v6307_v43 }
 0xb94   : > { %v6316_v52 = vsel %vm6313_vm9, %v6315_v9, %v6311_v17 }
 0xb95   : > { %v6251_v21 = vadd.f32 %v6250_v33, %v6224_v40  ;;  %v6764_v33 = vsub.f32 %v10046_v36, %v6728_v54 }
 0xb96   : > { %v6484_v2 = vpop.f32.mrf.mxu0 }
 0xb97   : > { %v6267_v61 = vsub.f32 %v6251_v21, %v6261_v22  ;;  %v6765_v40 = vand.u32 4294901760, %v6764_v33  ;;  %v10060_v21 = vld [vmem:[%s8977_s5 + $0x30] sm:$0xff] }
 0xb98   : > { %v6511_v51 = vpop.f32.mrf.mxu1 }
 0xb99   : > { %v6273_v5 = vmul.f32 2.0, %v6267_v61  ;;  %v6766_v8 = vsub.f32 %v6764_v33, %v6765_v40  ;;  %v6730_v61 = vand.u32 4294901760, %v10060_v21 }
 0xb9a   : > { %v6227_v59 = vpop.f32.mrf.mxu2  ;;  %v6451_v46 = vpop.f32.mrf.mxu3 }
 0xb9b   : > { %v6275_v63 = vadd.f32 0.0009, %v6273_v5  ;;  %v6228_v14 = vadd.f32 %v6227_v59, %v6197_v12  ;;  %v6767_v62 = vand.u32 4294901760, %v6766_v8  ;;  %6731 = vmatpush.msra.mxu0 %v6730_v61  ;;  %v6770_v3 = vsub.f32 %v10060_v21, %v6730_v61 }
 0xb9d   : > { %v6277_v58 = vmul.f32 %v6275_v63, %v6271_v23  ;;  %v6255_v42 = vadd.f32 %v6254_v45, %v6228_v14  ;;  %v6396_v45 = vadd.f32 %v6395_v0, %v6360_v44  ;;  %6768 = vmatpush.msra.mxu1 %v6767_v62  ;;  %v6771_v23 = vand.u32 4294901760, %v6770_v3 }
 0xb9e   : > { %v6488_v53 = vpop.f32.mrf.mxu0 }
 0xb9f   : > { %v6317_v39 = vmul.f32 %v6302_v7, %v6277_v58  ;;  %v6268_v60 = vsub.f32 %v6255_v42, %v6262_v50  ;;  %v6772_v14 = vsub.f32 %v6770_v3, %v6771_v23 }
 0xba0   : > { %v6515_v58 = vpop.f32.mrf.mxu1 }
 0xba1   : > { %8487 = vst.msk [vmem:[%s9398_s21 + $0x20] sm:$0xff] %vm301_vm0, %v6317_v39  ;;  %v6274_v55 = vmul.f32 2.0, %v6268_v60  ;;  %v6773_v42 = vand.u32 4294901760, %v6772_v14 }
 0xba2   : > { %v6421_v38 = vpop.f32.mrf.mxu2  ;;  %v6457_v12 = vpop.f32.mrf.mxu3 }
 0xba3   : > { %v6276_v22 = vadd.f32 0.0009, %v6274_v55  ;;  %v6422_v47 = vadd.f32 %v6421_v38, %v6392_v26  ;;  %6774 = vmatpush.msra.mxu1 %v6773_v42 }
 0xba5   : > { %v6278_v19 = vmul.f32 %v6276_v22, %v6272_v56  ;;  %v6452_v57 = vadd.f32 %v6451_v46, %v6422_v47 }
 0xba7   : > { %v6318_v6 = vmul.f32 %v6316_v52, %v6278_v19  ;;  %v6485_v1 = vadd.f32 %v6484_v2, %v6452_v57 }
 0xba9   : > { %8488 = vst.msk [vmem:[%s9398_s21 + $0x28] sm:$0xff] %vm301_vm0, %v6318_v6  ;;  %v6512_v5 = vadd.f32 %v6511_v51, %v6485_v1 }
 0xbaa   : > { %v6426_v4 = vpop.f32.mrf.mxu2 }
 0xbab   : > { %v6519_v50 = vsel %vm301_vm0, %v6512_v5, 0  ;;  %v6427_v59 = vadd.f32 %v6426_v4, %v6396_v45 }
 0xbac   : > { %v6542_v63 = vand.u32 4294901760, %v6519_v50 }
 0xbad   : > { %v6458_v48 = vadd.f32 %v6457_v12, %v6427_v59  ;;  %v10492_v59 = vld [vmem:[#allocation43_spill] sm:$0xff] }
 0xbae   : > { %v6543_v15 = vsub.f32 %v6519_v50, %v6542_v63  ;;  %6586 = vmatmul.f32.vlgmr.msra.gmra.mxu3 %v6542_v63 }
 0xbaf   : > { %v6489_v49 = vadd.f32 %v6488_v53, %v6458_v48  ;;  %6830 = vmatpush.msra.mxu3 %v6728_v54 }
 0xbb0   : > { %v6544_v7 = vand.u32 4294901760, %v6543_v15  ;;  %6616 = vmatmul.f32.vlgmr.msrb.gmra.mxu0 %v6543_v15 }
 0xbb1   : > { %v6516_v44 = vadd.f32 %v6515_v58, %v6489_v49  ;;  %6832 = vmatpush.msra.mxu3 %v6730_v61  ;;  %6863 = vmatpush.msrb.mxu0 %v6765_v40 }
 0xbb2   : > { %v6545_v0 = vsub.f32 %v6543_v15, %v6544_v7  ;;  %6646 = vmatmul.f32.vlgmr.msrb.gmra.mxu1 %v6544_v7 }
 0xbb3   : > { %v6522_v39 = vsel %vm301_vm0, %v6516_v44, 0  ;;  %6892 = vmatpush.msrb.mxu1 %v6728_v54  ;;  %6867 = vmatpush.msrb.mxu0 %v6771_v23 }
 0xbb4   : > { %v6546_v60 = vand.u32 4294901760, %v6545_v0  ;;  %v6550_v43 = vand.u32 4294901760, %v6522_v39 }
 0xbb5   : > { %6894 = vmatpush.msrb.mxu1 %v6730_v61  ;;  %v10491_v61 = vld [vmem:[#allocation34_spill] sm:$0xff] }
 0xbb6   : > { %6547 = vmatmul.f32.vlgmr.msra.gmra.mxu2 %v6546_v60  ;;  %6590 = vmatmul.f32.gmra.mxu3 %v6550_v43  ;;  %v6551_v28 = vsub.f32 %v6522_v39, %v6550_v43  ;;  %v7101_v6 = vmul.f32 %v10491_v61, %v10491_v61 }
 0xbb7   : > { %6800 = vmatpush.msra.mxu2 %v6764_v33 }
 0xbb8   : > { %6621 = vmatmul.f32.gmra.mxu0 %v6551_v28  ;;  %v6552_v46 = vand.u32 4294901760, %v6551_v28  ;;  %v7116_v62 = vand.u32 4294901760, %v7101_v6 }
 0xbb9   : > { %6803 = vmatpush.msra.mxu2 %v6770_v3 }
 0xbba   : > { %6652 = vmatmul.f32.gmra.mxu1 %v6552_v46  ;;  %v6553_v26 = vsub.f32 %v6551_v28, %v6552_v46  ;;  %v7152_v4 = vsub.f32 %v7101_v6, %v7116_v62 }
 0xbbc   : > { %v6554_v55 = vand.u32 4294901760, %v6553_v26  ;;  %v7153_v50 = vand.u32 4294901760, %v7152_v4 }
 0xbbe   : > { %6555 = vmatmul.f32.gmra.mxu2 %v6554_v55  ;;  %6706 = vmatmul.f32.vlgmr.msrb.gmra.mxu3 %v6542_v63  ;;  %v7154_v14 = vsub.f32 %v7152_v4, %v7153_v50 }
 0xbbf   : > { %6964 = vmatpush.msrb.mxu3 %v9064_v35 }
 0xbc0   : > { %6737 = vmatmul.f32.vlgmr.msra.gmra.mxu0 %v9026_v25  ;;  %v7155_v58 = vand.u32 4294901760, %v7154_v14 }
 0xbc1   : > { %6970 = vmatpush.msrb.mxu3 %v9070_v37  ;;  %6996 = vmatpush.msra.mxu0 %v9044_v29 }
 0xbc2   : > { %6776 = vmatmul.f32.vlgmr.msra.gmra.mxu1 %v9003_v10 }
 0xbc3   : > { %6999 = vmatpush.msra.mxu0 %v9052_v32  ;;  %7026 = vmatpush.msra.mxu1 %v9016_v20 }
 0xbc5   : > { %7028 = vmatpush.msra.mxu1 %v9046_v30 }
 0xbc6   : > { %6679 = vmatmul.f32.vlgmr.msrb.gmra.mxu2 %v6542_v63  ;;  %6710 = vmatmul.f32.gmra.mxu3 %v6550_v43  ;;  %v7100_v63 = vmul.f32 %v10492_v59, %v10492_v59 }
 0xbc7   : > { %6925 = vmatpush.msrb.mxu2 %v9016_v20 }
 0xbc8   : > { %6745 = vmatmul.f32.gmra.mxu0 %v9033_v27  ;;  %v7118_v48 = vand.u32 4294901760, %v7100_v63 }
 0xbc9   : > { %6927 = vmatpush.msrb.mxu2 %v9046_v30 }
 0xbca   : > { %6780 = vmatmul.f32.gmra.mxu1 %v9005_v11  ;;  %v7158_v42 = vsub.f32 %v7100_v63, %v7118_v48 }
 0xbcc   : > { %v7159_v39 = vand.u32 4294901760, %v7158_v42 }
 0xbce   : > { %6683 = vmatmul.f32.gmra.mxu2 %v6550_v43  ;;  %6836 = vmatmul.f32.vlgmr.msra.gmra.mxu3 %v9014_v18  ;;  %v7160_v26 = vsub.f32 %v7158_v42, %v7159_v39 }
 0xbcf   : > { %7088 = vmatpush.msra.mxu3 %v9016_v20 }
 0xbd0   : > { %6869 = vmatmul.f32.vlgmr.msrb.gmra.mxu0 %v9003_v10  ;;  %v7161_v61 = vand.u32 4294901760, %v7160_v26 }
 0xbd1   : > { %7090 = vmatpush.msra.mxu3 %v9046_v30  ;;  %7117 = vmatpush.msrb.mxu0 %v7116_v62 }
 0xbd2   : > { %6896 = vmatmul.f32.vlgmr.msrb.gmra.mxu1 %v9003_v10 }
 0xbd3   : > { %7119 = vmatpush.msrb.mxu0 %v7118_v48  ;;  %7156 = vmatpush.msrb.mxu1 %v7155_v58 }
 0xbd5   : > { %7162 = vmatpush.msrb.mxu1 %v7161_v61 }
 0xbd6   : > { %6806 = vmatmul.f32.vlgmr.msra.gmra.mxu2 %v9008_v13  ;;  %6842 = vmatmul.f32.gmra.mxu3 %v9023_v24 }
 0xbd7   : > { %7059 = vmatpush.msra.mxu2 %v9049_v31 }
 0xbd8   : > { %6873 = vmatmul.f32.gmra.mxu0 %v9005_v11 }
 0xbd9   : > { %7063 = vmatpush.msra.mxu2 %v9060_v34 }
 0xbda   : > { %6900 = vmatmul.f32.gmra.mxu1 %v9005_v11 }
 0xbde   : > { %6811 = vmatmul.f32.gmra.mxu2 %v9011_v16 }
 0xc2d   : > { %v10094_v41 = vpop.f32.mrf.mxu0 }
 0xc2f   : > { %v10096_v33 = vpop.f32.mrf.mxu1 }
 0xc31   : > { %v10092_v54 = vpop.f32.mrf.mxu3 }
 0xc35   : > { %v10102_v2 = vpop.f32.mrf.mxu0 }
 0xc37   : > { %v10104_v22 = vpop.f32.mrf.mxu1 }
 0xc39   : > { %v10098_v56 = vpop.f32.mrf.mxu2  ;;  %v10100_v38 = vpop.f32.mrf.mxu3 }
 0xc3d   : > { %v6738_v40 = vpop.f32.mrf.mxu0 }
 0xc3f   : > { %v6777_v51 = vpop.f32.mrf.mxu1 }
 0xc40   : > { %v6778_v3 = vadd.f32 %v6777_v51, %v6738_v40 }
 0xc41   : > { %v10106_v17 = vpop.f32.mrf.mxu2  ;;  %v10108_v47 = vpop.f32.mrf.mxu3 }
 0xc45   : > { %v6746_v57 = vpop.f32.mrf.mxu0 }
 0xc47   : > { %v6781_v52 = vpop.f32.mrf.mxu1 }
 0xc48   : > { %v6782_v49 = vadd.f32 %v6781_v52, %v6746_v57 }
 0xc49   : > { %v10110_v9 = vpop.f32.mrf.mxu2  ;;  %v10112_v19 = vpop.f32.mrf.mxu3 }
 0xc4d   : > { %v6870_v5 = vpop.f32.mrf.mxu0 }
 0xc4f   : > { %v6897_v23 = vpop.f32.mrf.mxu1 }
 0xc51   : > { %v10114_v8 = vpop.f32.mrf.mxu2  ;;  %v6837_v1 = vpop.f32.mrf.mxu3 }
 0xc55   : > { %v6874_v46 = vpop.f32.mrf.mxu0 }
 0xc57   : > { %v6901_v51 = vpop.f32.mrf.mxu1 }
 0xc59   : > { %v6807_v45 = vpop.f32.mrf.mxu2  ;;  %v6843_v0 = vpop.f32.mrf.mxu3 }
 0xc5a   : > { %v6808_v12 = vadd.f32 %v6807_v45, %v6778_v3 }
 0xc5c   : > { %v6838_v53 = vadd.f32 %v6837_v1, %v6808_v12 }
 0xc5e   : > { %v6871_v15 = vadd.f32 %v6870_v5, %v6838_v53 }
 0xc60   : > { %v6898_v7 = vadd.f32 %v6897_v23, %v6871_v15 }
 0xc61   : > { %v6812_v44 = vpop.f32.mrf.mxu2 }
 0xc62   : > { %v6905_v60 = vsel %vm301_vm0, %v6898_v7, 0  ;;  %v6813_v43 = vadd.f32 %v6812_v44, %v6782_v49 }
 0xc63   : > { %v6928_v28 = vand.u32 4294901760, %v6905_v60 }
 0xc64   : > { %v6844_v55 = vadd.f32 %v6843_v0, %v6813_v43 }
 0xc65   : > { %v6929_v40 = vsub.f32 %v6905_v60, %v6928_v28  ;;  %6972 = vmatmul.f32.vlgmr.msrb.gmra.mxu3 %v6928_v28 }
 0xc66   : > { %v6875_v6 = vadd.f32 %v6874_v46, %v6844_v55  ;;  %7218 = vmatpush.msrb.mxu3 %v7116_v62 }
 0xc67   : > { %v6930_v1 = vand.u32 4294901760, %v6929_v40  ;;  %7002 = vmatmul.f32.vlgmr.msra.gmra.mxu0 %v6929_v40 }
 0xc68   : > { %v6902_v57 = vadd.f32 %v6901_v51, %v6875_v6  ;;  %7220 = vmatpush.msrb.mxu3 %v7118_v48  ;;  %7251 = vmatpush.msra.mxu0 %v7153_v50 }
 0xc69   : > { %v6931_v52 = vsub.f32 %v6929_v40, %v6930_v1  ;;  %7032 = vmatmul.f32.vlgmr.msra.gmra.mxu1 %v6930_v1 }
 0xc6a   : > { %v6908_v3 = vsel %vm301_vm0, %v6902_v57, 0  ;;  %7280 = vmatpush.msra.mxu1 %v7116_v62  ;;  %7255 = vmatpush.msra.mxu0 %v7159_v39 }
 0xc6b   : > { %v6932_v45 = vand.u32 4294901760, %v6931_v52  ;;  %v6936_v5 = vand.u32 4294901760, %v6908_v3  ;;  %v7489_v52 = vmul.f32 %v10046_v36, %v10046_v36 }
 0xc6c   : > { %7282 = vmatpush.msra.mxu1 %v7118_v48 }
 0xc6d   : > { %v6937_v12 = vsub.f32 %v6908_v3, %v6936_v5  ;;  %6933 = vmatmul.f32.vlgmr.msrb.gmra.mxu2 %v6932_v45  ;;  %6976 = vmatmul.f32.gmra.mxu3 %v6936_v5  ;;  %v7504_v45 = vand.u32 4294901760, %v7489_v52 }
 0xc6e   : > { %7188 = vmatpush.msrb.mxu2 %v7152_v4 }
 0xc6f   : > { %7007 = vmatmul.f32.gmra.mxu0 %v6937_v12  ;;  %v6938_v23 = vand.u32 4294901760, %v6937_v12 }
 0xc70   : > { %7191 = vmatpush.msrb.mxu2 %v7158_v42 }
 0xc71   : > { %7038 = vmatmul.f32.gmra.mxu1 %v6938_v23  ;;  %v6939_v59 = vsub.f32 %v6937_v12, %v6938_v23 }
 0xc73   : > { %v6940_v63 = vand.u32 4294901760, %v6939_v59  ;;  %v7540_v59 = vsub.f32 %v7489_v52, %v7504_v45 }
 0xc75   : > { %6941 = vmatmul.f32.gmra.mxu2 %v6940_v63  ;;  %7092 = vmatmul.f32.vlgmr.msra.gmra.mxu3 %v6928_v28 }
 0xc76   : > { %7352 = vmatpush.msra.mxu3 %v9064_v35 }
 0xc77   : > { %7125 = vmatmul.f32.vlgmr.msrb.gmra.mxu0 %v9026_v25 }
 0xc78   : > { %7358 = vmatpush.msra.mxu3 %v9070_v37  ;;  %7384 = vmatpush.msrb.mxu0 %v9044_v29 }
 0xc79   : > { %7164 = vmatmul.f32.vlgmr.msrb.gmra.mxu1 %v9003_v10 }
 0xc7a   : > { %7387 = vmatpush.msrb.mxu0 %v9052_v32  ;;  %7414 = vmatpush.msrb.mxu1 %v9016_v20 }
 0xc7c   : > { %7416 = vmatpush.msrb.mxu1 %v9046_v30 }
 0xc7d   : > { %7065 = vmatmul.f32.vlgmr.msra.gmra.mxu2 %v6928_v28  ;;  %7096 = vmatmul.f32.gmra.mxu3 %v6936_v5 }
 0xc7e   : > { %7313 = vmatpush.msra.mxu2 %v9016_v20 }
 0xc7f   : > { %7133 = vmatmul.f32.gmra.mxu0 %v9033_v27 }
 0xc80   : > { %7315 = vmatpush.msra.mxu2 %v9046_v30 }
 0xc81   : > { %7168 = vmatmul.f32.gmra.mxu1 %v9005_v11 }
 0xc85   : > { %7069 = vmatmul.f32.gmra.mxu2 %v6936_v5  ;;  %7224 = vmatmul.f32.vlgmr.msrb.gmra.mxu3 %v9014_v18 }
 0xc86   : > { %7476 = vmatpush.msrb.mxu3 %v9016_v20 }
 0xc87   : > { %7257 = vmatmul.f32.vlgmr.msra.gmra.mxu0 %v9003_v10 }
 0xc88   : > { %7478 = vmatpush.msrb.mxu3 %v9046_v30  ;;  %7505 = vmatpush.msra.mxu0 %v7504_v45 }
 0xc89   : > { %7284 = vmatmul.f32.vlgmr.msra.gmra.mxu1 %v9003_v10 }
 0xc8d   : > { %7194 = vmatmul.f32.vlgmr.msrb.gmra.mxu2 %v9008_v13  ;;  %7230 = vmatmul.f32.gmra.mxu3 %v9023_v24 }
 0xc8e   : > { %7447 = vmatpush.msrb.mxu2 %v9049_v31 }
 0xc8f   : > { %7261 = vmatmul.f32.gmra.mxu0 %v9005_v11 }
 0xc90   : > { %7451 = vmatpush.msrb.mxu2 %v9060_v34 }
 0xc91   : > { %7288 = vmatmul.f32.gmra.mxu1 %v9005_v11 }
 0xc95   : > { %7199 = vmatmul.f32.gmra.mxu2 %v9011_v16 }
 0xce4   : > { %v7003_v4 = vpop.f32.mrf.mxu0 }
 0xce6   : > { %v7033_v50 = vpop.f32.mrf.mxu1 }
 0xce8   : > { %v6973_v62 = vpop.f32.mrf.mxu3 }
 0xcec   : > { %v7008_v58 = vpop.f32.mrf.mxu0 }
 0xcee   : > { %v7039_v49 = vpop.f32.mrf.mxu1 }
 0xcf0   : > { %v6934_v53 = vpop.f32.mrf.mxu2  ;;  %v6977_v48 = vpop.f32.mrf.mxu3 }
 0xcf1   : > { %v6974_v14 = vadd.f32 %v6973_v62, %v6934_v53 }
 0xcf3   : > { %v7004_v15 = vadd.f32 %v7003_v4, %v6974_v14  ;;  %v7541_v4 = vand.u32 4294901760, %v7540_v59 }
 0xcf4   : > { %v7126_v60 = vpop.f32.mrf.mxu0 }
 0xcf5   : > { %v7034_v42 = vadd.f32 %v7033_v50, %v7004_v15  ;;  %v7488_v50 = vmul.f32 %v10060_v21, %v10060_v21  ;;  %v7542_v14 = vsub.f32 %v7540_v59, %v7541_v4 }
 0xcf6   : > { %v7165_v46 = vpop.f32.mrf.mxu1 }
 0xcf7   : > { %v7166_v5 = vadd.f32 %v7165_v46, %v7126_v60 }
 0xcf8   : > { %v6942_v7 = vpop.f32.mrf.mxu2  ;;  %v7093_v39 = vpop.f32.mrf.mxu3 }
 0xcf9   : > { %v6978_v44 = vadd.f32 %v6977_v48, %v6942_v7  ;;  %v7506_v48 = vand.u32 4294901760, %v7488_v50 }
 0xcfb   : > { %v7009_v0 = vadd.f32 %v7008_v58, %v6978_v44  ;;  %v7543_v58 = vand.u32 4294901760, %v7542_v14  ;;  %7507 = vmatpush.msra.mxu0 %v7506_v48 }
 0xcfc   : > { %v7134_v51 = vpop.f32.mrf.mxu0 }
 0xcfd   : > { %v7040_v43 = vadd.f32 %v7039_v49, %v7009_v0  ;;  %7544 = vmatpush.msra.mxu1 %v7543_v58 }
 0xcfe   : > { %v7169_v1 = vpop.f32.mrf.mxu1 }
 0xcff   : > { %v7170_v49 = vadd.f32 %v7169_v1, %v7134_v51 }
 0xd00   : > { %v7066_v28 = vpop.f32.mrf.mxu2  ;;  %v7097_v40 = vpop.f32.mrf.mxu3 }
 0xd01   : > { %v7067_v26 = vadd.f32 %v7066_v28, %v7034_v42  ;;  %v7546_v42 = vsub.f32 %v7488_v50, %v7506_v48 }
 0xd03   : > { %v10146_v55 = vadd.f32 %v7093_v39, %v7067_v26  ;;  %v7547_v39 = vand.u32 4294901760, %v7546_v42 }
 0xd04   : > { %v7258_v23 = vpop.f32.mrf.mxu0 }
 0xd05   : > { %v7548_v26 = vsub.f32 %v7546_v42, %v7547_v39 }
 0xd06   : > { %v7285_v62 = vpop.f32.mrf.mxu1 }
 0xd07   : > { %v7549_v52 = vand.u32 4294901760, %v7548_v26 }
 0xd08   : > { %v7070_v61 = vpop.f32.mrf.mxu2  ;;  %v7225_v3 = vpop.f32.mrf.mxu3 }
 0xd09   : > { %v7071_v6 = vadd.f32 %v7070_v61, %v7040_v43  ;;  %7550 = vmatpush.msra.mxu1 %v7549_v52 }
 0xd0b   : > { %v10148_v57 = vadd.f32 %v7097_v40, %v7071_v6 }
 0xd0c   : > { %v7262_v46 = vpop.f32.mrf.mxu0 }
 0xd0e   : > { %v7289_v6 = vpop.f32.mrf.mxu1 }
 0xd10   : > { %v7195_v12 = vpop.f32.mrf.mxu2  ;;  %v7231_v0 = vpop.f32.mrf.mxu3 }
 0xd11   : > { %v7196_v63 = vadd.f32 %v7195_v12, %v7166_v5 }
 0xd13   : > { %v7226_v53 = vadd.f32 %v7225_v3, %v7196_v63 }
 0xd15   : > { %v7259_v15 = vadd.f32 %v7258_v23, %v7226_v53 }
 0xd17   : > { %v7286_v7 = vadd.f32 %v7285_v62, %v7259_v15 }
 0xd18   : > { %v7200_v44 = vpop.f32.mrf.mxu2 }
 0xd19   : > { %v7293_v60 = vsel %vm301_vm0, %v7286_v7, 0  ;;  %v7201_v43 = vadd.f32 %v7200_v44, %v7170_v49 }
 0xd1a   : > { %v7316_v28 = vand.u32 4294901760, %v7293_v60 }
 0xd1b   : > { %v7232_v40 = vadd.f32 %v7231_v0, %v7201_v43 }
 0xd1c   : > { %v7317_v61 = vsub.f32 %v7293_v60, %v7316_v28  ;;  %7360 = vmatmul.f32.vlgmr.msra.gmra.mxu3 %v7316_v28 }
 0xd1d   : > { %v7263_v3 = vadd.f32 %v7262_v46, %v7232_v40  ;;  %7606 = vmatpush.msra.mxu3 %v7504_v45 }
 0xd1e   : > { %v7318_v5 = vand.u32 4294901760, %v7317_v61  ;;  %7390 = vmatmul.f32.vlgmr.msrb.gmra.mxu0 %v7317_v61 }
 0xd1f   : > { %v7290_v51 = vadd.f32 %v7289_v6, %v7263_v3  ;;  %7608 = vmatpush.msra.mxu3 %v7506_v48  ;;  %7639 = vmatpush.msrb.mxu0 %v7541_v4 }
 0xd20   : > { %v7319_v1 = vsub.f32 %v7317_v61, %v7318_v5  ;;  %7420 = vmatmul.f32.vlgmr.msrb.gmra.mxu1 %v7318_v5 }
 0xd21   : > { %v7296_v12 = vsel %vm301_vm0, %v7290_v51, 0  ;;  %7668 = vmatpush.msrb.mxu1 %v7504_v45  ;;  %7643 = vmatpush.msrb.mxu0 %v7547_v39 }
 0xd22   : > { %v7320_v23 = vand.u32 4294901760, %v7319_v1  ;;  %v7324_v63 = vand.u32 4294901760, %v7296_v12 }
 0xd23   : > { %7670 = vmatpush.msrb.mxu1 %v7506_v48 }
 0xd24   : > { %v7325_v62 = vsub.f32 %v7296_v12, %v7324_v63  ;;  %7321 = vmatmul.f32.vlgmr.msra.gmra.mxu2 %v7320_v23  ;;  %7364 = vmatmul.f32.gmra.mxu3 %v7324_v63  ;;  %v8599_v23 = vld [vmem:[%s8969_s30 + $0x38] sm:$0xff] }
 0xd25   : > { %7576 = vmatpush.msra.mxu2 %v7540_v59 }
 0xd26   : > { %7395 = vmatmul.f32.gmra.mxu0 %v7325_v62  ;;  %v7326_v50 = vand.u32 4294901760, %v7325_v62 }
 0xd27   : > { %7579 = vmatpush.msra.mxu2 %v7546_v42 }
 0xd28   : > { %7426 = vmatmul.f32.gmra.mxu1 %v7326_v50  ;;  %v7327_v53 = vsub.f32 %v7325_v62, %v7326_v50 }
 0xd2a   : > { %v7328_v14 = vand.u32 4294901760, %v7327_v53 }
 0xd2c   : > { %7329 = vmatmul.f32.gmra.mxu2 %v7328_v14  ;;  %7480 = vmatmul.f32.vlgmr.msrb.gmra.mxu3 %v7316_v28 }
 0xd2d   : > { %7740 = vmatpush.msrb.mxu3 %v9064_v35 }
 0xd2e   : > { %7513 = vmatmul.f32.vlgmr.msra.gmra.mxu0 %v9026_v25 }
 0xd2f   : > { %7746 = vmatpush.msrb.mxu3 %v9070_v37  ;;  %7772 = vmatpush.msra.mxu0 %v9044_v29 }
 0xd30   : > { %7552 = vmatmul.f32.vlgmr.msra.gmra.mxu1 %v9003_v10 }
 0xd31   : > { %7775 = vmatpush.msra.mxu0 %v9052_v32  ;;  %7802 = vmatpush.msra.mxu1 %v9016_v20 }
 0xd33   : > { %7804 = vmatpush.msra.mxu1 %v9046_v30 }
 0xd34   : > { %7453 = vmatmul.f32.vlgmr.msrb.gmra.mxu2 %v7316_v28  ;;  %7484 = vmatmul.f32.gmra.mxu3 %v7324_v63 }
 0xd35   : > { %7701 = vmatpush.msrb.mxu2 %v9016_v20 }
 0xd36   : > { %7521 = vmatmul.f32.gmra.mxu0 %v9033_v27 }
 0xd37   : > { %7703 = vmatpush.msrb.mxu2 %v9046_v30 }
 0xd38   : > { %7556 = vmatmul.f32.gmra.mxu1 %v9005_v11 }
 0xd3c   : > { %7457 = vmatmul.f32.gmra.mxu2 %v7324_v63  ;;  %7612 = vmatmul.f32.vlgmr.msra.gmra.mxu3 %v9014_v18  ;;  %v7877_v63 = vmul.f32 %v8599_v23, %v10046_v36 }
 0xd3d   : > { %7864 = vmatpush.msra.mxu3 %v9016_v20 }
 0xd3e   : > { %7645 = vmatmul.f32.vlgmr.msrb.gmra.mxu0 %v9003_v10  ;;  %v7892_v50 = vand.u32 4294901760, %v7877_v63 }
 0xd3f   : > { %7866 = vmatpush.msra.mxu3 %v9046_v30 }
 0xd40   : > { %7672 = vmatmul.f32.vlgmr.msrb.gmra.mxu1 %v9003_v10  ;;  %7893 = vmatpush.msrb.mxu0 %v7892_v50 }
 0xd44   : > { %7582 = vmatmul.f32.vlgmr.msra.gmra.mxu2 %v9008_v13  ;;  %7618 = vmatmul.f32.gmra.mxu3 %v9023_v24 }
 0xd45   : > { %7835 = vmatpush.msra.mxu2 %v9049_v31 }
 0xd46   : > { %7649 = vmatmul.f32.gmra.mxu0 %v9005_v11 }
 0xd47   : > { %7839 = vmatpush.msra.mxu2 %v9060_v34 }
 0xd48   : > { %7676 = vmatmul.f32.gmra.mxu1 %v9005_v11 }
 0xd4c   : > { %7587 = vmatmul.f32.gmra.mxu2 %v9011_v16 }
 0xd9b   : > { %v7391_v59 = vpop.f32.mrf.mxu0 }
 0xd9d   : > { %v7421_v4 = vpop.f32.mrf.mxu1 }
 0xd9f   : > { %v7361_v45 = vpop.f32.mrf.mxu3 }
 0xda3   : > { %v7396_v49 = vpop.f32.mrf.mxu0 }
 0xda5   : > { %v7427_v44 = vpop.f32.mrf.mxu1 }
 0xda7   : > { %v7322_v48 = vpop.f32.mrf.mxu2  ;;  %v7365_v58 = vpop.f32.mrf.mxu3 }
 0xda8   : > { %v7362_v15 = vadd.f32 %v7361_v45, %v7322_v48 }
 0xdaa   : > { %v7392_v42 = vadd.f32 %v7391_v59, %v7362_v15  ;;  %v7928_v59 = vsub.f32 %v7877_v63, %v7892_v50 }
 0xdab   : > { %v7514_v28 = vpop.f32.mrf.mxu0 }
 0xdac   : > { %v7422_v7 = vadd.f32 %v7421_v4, %v7392_v42  ;;  %v7929_v15 = vand.u32 4294901760, %v7928_v59 }
 0xdad   : > { %v7553_v40 = vpop.f32.mrf.mxu1 }
 0xdae   : > { %v7554_v53 = vadd.f32 %v7553_v40, %v7514_v28 }
 0xdaf   : > { %v7330_v0 = vpop.f32.mrf.mxu2  ;;  %v7481_v43 = vpop.f32.mrf.mxu3 }
 0xdb0   : > { %v7366_v39 = vadd.f32 %v7365_v58, %v7330_v0  ;;  %v8600_v58 = vld [vmem:[%s8969_s30 + $0x30] sm:$0xff] }
 0xdb1   : > { %v7876_v42 = vmul.f32 %v8600_v58, %v10060_v21 }
 0xdb2   : > { %v7397_v60 = vadd.f32 %v7396_v49, %v7366_v39 }
 0xdb3   : > { %v7522_v3 = vpop.f32.mrf.mxu0 }
 0xdb4   : > { %v7428_v46 = vadd.f32 %v7427_v44, %v7397_v60  ;;  %v7894_v44 = vand.u32 4294901760, %v7876_v42 }
 0xdb5   : > { %v7557_v1 = vpop.f32.mrf.mxu1 }
 0xdb6   : > { %7895 = vmatpush.msrb.mxu0 %v7894_v44  ;;  %v7934_v36 = vsub.f32 %v7876_v42, %v7894_v44  ;;  %v7558_v60 = vadd.f32 %v7557_v1, %v7522_v3 }
 0xdb7   : > { %v7454_v26 = vpop.f32.mrf.mxu2  ;;  %v7485_v52 = vpop.f32.mrf.mxu3 }
 0xdb8   : > { %v7455_v61 = vadd.f32 %v7454_v26, %v7422_v7  ;;  %v7930_v7 = vsub.f32 %v7928_v59, %v7929_v15  ;;  %v7935_v26 = vand.u32 4294901760, %v7934_v36 }
 0xdba   : > { %v10180_v6 = vadd.f32 %v7481_v43, %v7455_v61  ;;  %v7931_v39 = vand.u32 4294901760, %v7930_v7 }
 0xdbb   : > { %v7646_v45 = vpop.f32.mrf.mxu0 }
 0xdbc   : > { %7932 = vmatpush.msrb.mxu1 %v7931_v39 }
 0xdbd   : > { %v7673_v48 = vpop.f32.mrf.mxu1 }
 0xdbf   : > { %v7458_v5 = vpop.f32.mrf.mxu2  ;;  %v7613_v62 = vpop.f32.mrf.mxu3 }
 0xdc0   : > { %v7459_v51 = vadd.f32 %v7458_v5, %v7428_v46 }
 0xdc2   : > { %v10182_v12 = vadd.f32 %v7485_v52, %v7459_v51  ;;  %v7936_v51 = vsub.f32 %v7934_v36, %v7935_v26 }
 0xdc3   : > { %v7650_v5 = vpop.f32.mrf.mxu0 }
 0xdc5   : > { %v7677_v63 = vpop.f32.mrf.mxu1 }
 0xdc7   : > { %v7583_v14 = vpop.f32.mrf.mxu2  ;;  %v7619_v46 = vpop.f32.mrf.mxu3 }
 0xdc8   : > { %v7584_v4 = vadd.f32 %v7583_v14, %v7554_v53 }
 0xdca   : > { %v7614_v49 = vadd.f32 %v7613_v62, %v7584_v4  ;;  %v7937_v62 = vand.u32 4294901760, %v7936_v51 }
 0xdcc   : > { %v7647_v0 = vadd.f32 %v7646_v45, %v7614_v49  ;;  %7938 = vmatpush.msrb.mxu1 %v7937_v62 }
 0xdce   : > { %v7674_v43 = vadd.f32 %v7673_v48, %v7647_v0 }
 0xdcf   : > { %v7588_v28 = vpop.f32.mrf.mxu2 }
 0xdd0   : > { %v7681_v40 = vsel %vm301_vm0, %v7674_v43, 0  ;;  %v7589_v61 = vadd.f32 %v7588_v28, %v7558_v60 }
 0xdd1   : > { %v7704_v52 = vand.u32 4294901760, %v7681_v40 }
 0xdd2   : > { %v7620_v21 = vadd.f32 %v7619_v46, %v7589_v61 }
 0xdd3   : > { %v7705_v23 = vsub.f32 %v7681_v40, %v7704_v52  ;;  %7748 = vmatmul.f32.vlgmr.msrb.gmra.mxu3 %v7704_v52 }
 0xdd4   : > { %v7651_v53 = vadd.f32 %v7650_v5, %v7620_v21  ;;  %7994 = vmatpush.msrb.mxu3 %v7892_v50 }
 0xdd5   : > { %v7706_v14 = vand.u32 4294901760, %v7705_v23  ;;  %7778 = vmatmul.f32.vlgmr.msra.gmra.mxu0 %v7705_v23 }
 0xdd6   : > { %v7678_v3 = vadd.f32 %v7677_v63, %v7651_v53  ;;  %7996 = vmatpush.msrb.mxu3 %v7894_v44  ;;  %8027 = vmatpush.msra.mxu0 %v7929_v15 }
 0xdd7   : > { %v7707_v1 = vsub.f32 %v7705_v23, %v7706_v14  ;;  %7808 = vmatmul.f32.vlgmr.msra.gmra.mxu1 %v7706_v14 }
 0xdd8   : > { %v7684_v45 = vsel %vm301_vm0, %v7678_v3, 0  ;;  %8056 = vmatpush.msra.mxu1 %v7892_v50  ;;  %8031 = vmatpush.msra.mxu0 %v7935_v26 }
 0xdd9   : > { %v7708_v4 = vand.u32 4294901760, %v7707_v1  ;;  %v7712_v48 = vand.u32 4294901760, %v7684_v45 }
 0xdda   : > { %8058 = vmatpush.msra.mxu1 %v7894_v44 }
 0xddb   : > { %v7713_v58 = vsub.f32 %v7684_v45, %v7712_v48  ;;  %7709 = vmatmul.f32.vlgmr.msrb.gmra.mxu2 %v7708_v4  ;;  %7752 = vmatmul.f32.gmra.mxu3 %v7712_v48 }
 0xddc   : > { %7964 = vmatpush.msrb.mxu2 %v7928_v59 }
 0xddd   : > { %7783 = vmatmul.f32.gmra.mxu0 %v7713_v58  ;;  %v7714_v42 = vand.u32 4294901760, %v7713_v58 }
 0xdde   : > { %7967 = vmatpush.msrb.mxu2 %v7934_v36 }
 0xddf   : > { %7814 = vmatmul.f32.gmra.mxu1 %v7714_v42  ;;  %v7715_v49 = vsub.f32 %v7713_v58, %v7714_v42 }
 0xde1   : > { %v7716_v7 = vand.u32 4294901760, %v7715_v49 }
 0xde3   : > { %7717 = vmatmul.f32.gmra.mxu2 %v7716_v7  ;;  %7868 = vmatmul.f32.vlgmr.msra.gmra.mxu3 %v7704_v52 }
 0xde4   : > { %8128 = vmatpush.msra.mxu3 %v9064_v35 }
 0xde5   : > { %7901 = vmatmul.f32.vlgmr.msrb.gmra.mxu0 %v9026_v25 }
 0xde6   : > { %8134 = vmatpush.msra.mxu3 %v9070_v37  ;;  %8160 = vmatpush.msrb.mxu0 %v9044_v29 }
 0xde7   : > { %7940 = vmatmul.f32.vlgmr.msrb.gmra.mxu1 %v9003_v10 }
 0xde8   : > { %8163 = vmatpush.msrb.mxu0 %v9052_v32  ;;  %8190 = vmatpush.msrb.mxu1 %v9016_v20 }
 0xdea   : > { %8192 = vmatpush.msrb.mxu1 %v9046_v30 }
 0xdeb   : > { %7841 = vmatmul.f32.vlgmr.msra.gmra.mxu2 %v7704_v52  ;;  %7872 = vmatmul.f32.gmra.mxu3 %v7712_v48  ;;  %v8267_v52 = vmul.f32 %v10148_v57, %v10148_v57 }
 0xdec   : > { %8089 = vmatpush.msra.mxu2 %v9016_v20 }
 0xded   : > { %7909 = vmatmul.f32.gmra.mxu0 %v9033_v27 }
 0xdee   : > { %8091 = vmatpush.msra.mxu2 %v9046_v30 }
 0xdef   : > { %7944 = vmatmul.f32.gmra.mxu1 %v9005_v11 }
 0xdf3   : > { %7845 = vmatmul.f32.gmra.mxu2 %v7712_v48  ;;  %8000 = vmatmul.f32.vlgmr.msrb.gmra.mxu3 %v9014_v18 }
 0xdf4   : > { %8252 = vmatpush.msrb.mxu3 %v9016_v20 }
 0xdf5   : > { %8033 = vmatmul.f32.vlgmr.msra.gmra.mxu0 %v9003_v10 }
 0xdf6   : > { %8254 = vmatpush.msrb.mxu3 %v9046_v30 }
 0xdf7   : > { %8060 = vmatmul.f32.vlgmr.msra.gmra.mxu1 %v9003_v10  ;;  %v6588_v10 = vadd.f32 %v10092_v54, %v10098_v56 }
 0xdfb   : > { %7970 = vmatmul.f32.vlgmr.msrb.gmra.mxu2 %v9008_v13  ;;  %8006 = vmatmul.f32.gmra.mxu3 %v9023_v24 }
 0xdfc   : > { %8223 = vmatpush.msrb.mxu2 %v9049_v31  ;;  %v6618_v31 = vadd.f32 %v10094_v41, %v6588_v10 }
 0xdfd   : > { %8037 = vmatmul.f32.gmra.mxu0 %v9005_v11 }
 0xdfe   : > { %8227 = vmatpush.msrb.mxu2 %v9060_v34 }
 0xdff   : > { %8064 = vmatmul.f32.gmra.mxu1 %v9005_v11  ;;  %v6592_v11 = vadd.f32 %v10100_v38, %v10106_v17  ;;  %v8266_v38 = vmul.f32 %v10146_v55, %v10146_v55 }
 0xe01   : > { %v6623_v56 = vadd.f32 %v10102_v2, %v6592_v11 }
 0xe03   : > { %7975 = vmatmul.f32.gmra.mxu2 %v9011_v16  ;;  %v6648_v16 = vadd.f32 %v10096_v33, %v6618_v31  ;;  %v6654_v36 = vadd.f32 %v10104_v22, %v6623_v56 }
 0xe05   : > { %v6681_v50 = vadd.f32 %v10110_v9, %v6648_v16  ;;  %v6685_v9 = vadd.f32 %v10114_v8, %v6654_v36 }
 0xe07   : > { %v10223_v0 = vadd.f32 %v10108_v47, %v6681_v50  ;;  %v10233_v26 = vadd.f32 %v10112_v19, %v6685_v9 }
 0xe09   : > { %v8264_v17 = vmul.f32 %v10223_v0, %v10223_v0  ;;  %v8265_v8 = vmul.f32 %v10233_v26, %v10233_v26 }
 0xe0b   : > { %v8286_v43 = vadd.f32 %v8266_v38, %v8264_v17  ;;  %v8270_v2 = vsub.f32 %v10180_v6, %v8264_v17  ;;  %v8287_v63 = vadd.f32 %v8267_v52, %v8265_v8  ;;  %v8271_v62 = vsub.f32 %v10182_v12, %v8265_v8 }
 0xe0d   : > { %v8288_v61 = vadd.f32 0.0001, %v8286_v43  ;;  %v8289_v4 = vadd.f32 0.0001, %v8287_v63 }
 0xe52   : > { %v7779_v20 = vpop.f32.mrf.mxu0 }
 0xe54   : > { %v7809_v25 = vpop.f32.mrf.mxu1 }
 0xe56   : > { %v7749_v18 = vpop.f32.mrf.mxu3 }
 0xe5a   : > { %v7784_v30 = vpop.f32.mrf.mxu0 }
 0xe5c   : > { %v7815_v35 = vpop.f32.mrf.mxu1 }
 0xe5e   : > { %v7710_v27 = vpop.f32.mrf.mxu2  ;;  %v7753_v29 = vpop.f32.mrf.mxu3 }
 0xe5f   : > { %v7750_v13 = vadd.f32 %v7749_v18, %v7710_v27 }
 0xe61   : > { %v7780_v24 = vadd.f32 %v7779_v20, %v7750_v13 }
 0xe62   : > { %v7902_v54 = vpop.f32.mrf.mxu0 }
 0xe63   : > { %v7810_v32 = vadd.f32 %v7809_v25, %v7780_v24 }
 0xe64   : > { %v7941_v39 = vpop.f32.mrf.mxu1 }
 0xe65   : > { %v7942_v14 = vadd.f32 %v7941_v39, %v7902_v54 }
 0xe66   : > { %v7718_v34 = vpop.f32.mrf.mxu2  ;;  %v7869_v15 = vpop.f32.mrf.mxu3 }
 0xe67   : > { %v7754_v37 = vadd.f32 %v7753_v29, %v7718_v34 }
 0xe69   : > { %v7785_v59 = vadd.f32 %v7784_v30, %v7754_v37 }
 0xe6a   : > { %v7910_v46 = vpop.f32.mrf.mxu0 }
 0xe6b   : > { %v7816_v44 = vadd.f32 %v7815_v35, %v7785_v59 }
 0xe6c   : > { %v7945_v21 = vpop.f32.mrf.mxu1 }
 0xe6d   : > { %v7946_v20 = vadd.f32 %v7945_v21, %v7910_v46 }
 0xe6e   : > { %v7842_v41 = vpop.f32.mrf.mxu2  ;;  %v7873_v47 = vpop.f32.mrf.mxu3 }
 0xe6f   : > { %v7843_v33 = vadd.f32 %v7842_v41, %v7810_v32 }
 0xe71   : > { %v7870_v60 = vadd.f32 %v7869_v15, %v7843_v33 }
 0xe72   : > { %v8034_v45 = vpop.f32.mrf.mxu0 }
 0xe73   : > { %v8272_v28 = vsub.f32 %v7870_v60, %v8266_v38 }
 0xe74   : > { %v8061_v42 = vpop.f32.mrf.mxu1 }
 0xe75   : > { %v8290_v22 = vadd.f32 %v8272_v28, %v8270_v2 }
 0xe76   : > { %v7846_v40 = vpop.f32.mrf.mxu2  ;;  %v8001_v53 = vpop.f32.mrf.mxu3 }
 0xe77   : > { %v8292_v5 = vadd.f32 0.0009, %v8290_v22  ;;  %v7847_v51 = vadd.f32 %v7846_v40, %v7816_v44  ;;  %v8268_v40 = vmul.f32 %v10146_v55, %v10223_v0 }
 0xe79   : > { %v10239_v23 = vmul.f32 %v8292_v5, %v8288_v61  ;;  %v7874_v6 = vadd.f32 %v7873_v47, %v7847_v51 }
 0xe7a   : > { %v8038_v24 = vpop.f32.mrf.mxu0 }
 0xe7b   : > { %v8273_v19 = vsub.f32 %v7874_v6, %v8267_v52  ;;  %8591 = vrcp.f32 %v10239_v23  ;;  %vm8301_vm11 = vweird.f32 %v10239_v23  ;;  %v8305_v55 = vand.u32 2147483647, %v10239_v23 }
 0xe7c   : > { %v8065_v32 = vpop.f32.mrf.mxu1 }
 0xe7d   : > { %v8291_v3 = vadd.f32 %v8273_v19, %v8271_v62  ;;  %v8276_v62 = vmul.f32 2.0, %v8268_v40  ;;  %vm8306_vm13 = vcmp.eq.f32.partialorder %v8305_v55, 8.507059e+37 }
 0xe7e   : > { %v7971_v1 = vpop.f32.mrf.mxu2  ;;  %v8007_v10 = vpop.f32.mrf.mxu3 }
 0xe7f   : > { %v8293_v48 = vadd.f32 0.0009, %v8291_v3  ;;  %v7972_v58 = vadd.f32 %v7971_v1, %v7942_v14  ;;  %v8307_v1 = vand.u32 2147483648, %v10239_v23 }
 0xe81   : > { %v10242_v49 = vmul.f32 %v8293_v48, %v8289_v4  ;;  %v8002_v7 = vadd.f32 %v8001_v53, %v7972_v58  ;;  %v8592_v36 = vpop.eup %8591  ;;  %v8278_v4 = vadd.f32 0.0001, %v8276_v62  ;;  %v8269_v48 = vmul.f32 %v10148_v57, %v10233_v26 }
 0xe82   : > { %v8297_v60 = vmul.f32 %v8592_v36, %v10239_v23  ;;  %vm8302_vm10 = vweird.f32 %v8592_v36 }
 0xe83   : > { %v8035_v18 = vadd.f32 %v8034_v45, %v8002_v7  ;;  %8593 = vrcp.f32 %v10242_v49  ;;  %vm8303_vm12 = vmor %vm8301_vm11, %vm8302_vm10  ;;  %v8321_v57 = vand.u32 2147483648, %v10242_v49  ;;  %vm8315_vm15 = vweird.f32 %v10242_v49 }
 0xe84   : > { %v8298_v28 = vsub.f32 1.0, %v8297_v60 }
 0xe85   : > { %v8062_v25 = vadd.f32 %v8061_v42, %v8035_v18 }
 0xe86   : > { %v7976_v27 = vpop.f32.mrf.mxu2  ;;  %v8299_v21 = vmul.f32 %v8592_v36, %v8298_v28 }
 0xe87   : > { %v8069_v12 = vsel %vm301_vm0, %v8062_v25, 0  ;;  %v7977_v13 = vadd.f32 %v7976_v27, %v7946_v20  ;;  %v8308_v25 = vor.u32 1.1754944e-38, %v8307_v1 }
 0xe88   : > { %v8092_v29 = vand.u32 4294901760, %v8069_v12  ;;  %v8300_v53 = vadd.f32 %v8592_v36, %v8299_v21 }
 0xe89   : > { %v8008_v30 = vadd.f32 %v8007_v10, %v7977_v13  ;;  %v8594_v47 = vpop.eup %8593  ;;  %v8277_v13 = vmul.f32 2.0, %v8269_v48 }
 0xe8a   : > { %v8093_v31 = vsub.f32 %v8069_v12, %v8092_v29  ;;  %8136 = vmatmul.f32.vlgmr.msra.gmra.mxu3 %v8092_v29  ;;  %v8311_v5 = vmul.f32 %v8594_v47, %v10242_v49  ;;  %v8304_v7 = vsel %vm8303_vm12, %v8592_v36, %v8300_v53  ;;  %vm8316_vm14 = vweird.f32 %v8594_v47 }
 0xe8b   : > { %v8039_v35 = vadd.f32 %v8038_v24, %v8008_v30  ;;  %v8309_v23 = vsel %vm8306_vm13, %v8308_v25, %v8304_v7  ;;  %vm8317_vm1 = vmor %vm8315_vm15, %vm8316_vm14 }
 0xe8c   : > { %v8094_v34 = vand.u32 4294901760, %v8093_v31  ;;  %8166 = vmatmul.f32.vlgmr.msrb.gmra.mxu0 %v8093_v31  ;;  %v8312_v14 = vsub.f32 1.0, %v8311_v5 }
 0xe8d   : > { %v8066_v11 = vadd.f32 %v8065_v32, %v8039_v35  ;;  %v8279_v32 = vadd.f32 0.0001, %v8277_v13 }
 0xe8e   : > { %v8095_v16 = vsub.f32 %v8093_v31, %v8094_v34  ;;  %8196 = vmatmul.f32.vlgmr.msrb.gmra.mxu1 %v8094_v34  ;;  %v8313_v20 = vmul.f32 %v8594_v47, %v8312_v14  ;;  %v8319_v31 = vand.u32 2147483647, %v10242_v49 }
 0xe8f   : > { %v8072_v37 = vsel %vm301_vm0, %v8066_v11, 0  ;;  %v8322_v11 = vor.u32 1.1754944e-38, %v8321_v57 }
 0xe90   : > { %v8096_v50 = vand.u32 4294901760, %v8095_v16  ;;  %v8100_v59 = vand.u32 4294901760, %v8072_v37  ;;  %v8314_v30 = vadd.f32 %v8594_v47, %v8313_v20  ;;  %vm8320_vm2 = vcmp.eq.f32.partialorder %v8319_v31, 8.507059e+37 }
 0xe92   : > { %v8101_v15 = vsub.f32 %v8072_v37, %v8100_v59  ;;  %8097 = vmatmul.f32.vlgmr.msra.gmra.mxu2 %v8096_v50  ;;  %8140 = vmatmul.f32.gmra.mxu3 %v8100_v59  ;;  %v8318_v34 = vsel %vm8317_vm1, %v8594_v47, %v8314_v30 }
 0xe93   : > { %v8323_v37 = vsel %vm8320_vm2, %v8322_v11, %v8318_v34 }
 0xe94   : > { %8171 = vmatmul.f32.gmra.mxu0 %v8101_v15  ;;  %v8102_v54 = vand.u32 4294901760, %v8101_v15 }
 0xe96   : > { %8202 = vmatmul.f32.gmra.mxu1 %v8102_v54  ;;  %v8103_v56 = vsub.f32 %v8101_v15, %v8102_v54 }
 0xe98   : > { %v8104_v44 = vand.u32 4294901760, %v8103_v56 }
 0xe9a   : > { %8105 = vmatmul.f32.gmra.mxu2 %v8104_v44  ;;  %8256 = vmatmul.f32.vlgmr.msrb.gmra.mxu3 %v8092_v29 }
 0xea2   : > { %8229 = vmatmul.f32.vlgmr.msrb.gmra.mxu2 %v8092_v29  ;;  %8260 = vmatmul.f32.gmra.mxu3 %v8100_v59 }
 0xeaa   : > { %8233 = vmatmul.f32.gmra.mxu2 %v8100_v59 }
 0xf09   : > { %v8167_v17 = vpop.f32.mrf.mxu0 }
 0xf0b   : > { %v8197_v2 = vpop.f32.mrf.mxu1 }
 0xf0d   : > { %v8137_v41 = vpop.f32.mrf.mxu3 }
 0xf11   : > { %v8172_v8 = vpop.f32.mrf.mxu0 }
 0xf13   : > { %v8203_v3 = vpop.f32.mrf.mxu1 }
 0xf15   : > { %v8098_v39 = vpop.f32.mrf.mxu2  ;;  %v8141_v38 = vpop.f32.mrf.mxu3 }
 0xf16   : > { %v8138_v33 = vadd.f32 %v8137_v41, %v8098_v39 }
 0xf18   : > { %v8168_v43 = vadd.f32 %v8167_v17, %v8138_v33 }
 0xf1a   : > { %v8198_v22 = vadd.f32 %v8197_v2, %v8168_v43 }
 0xf1d   : > { %v8106_v9 = vpop.f32.mrf.mxu2  ;;  %v8257_v61 = vpop.f32.mrf.mxu3 }
 0xf1e   : > { %v8142_v46 = vadd.f32 %v8141_v38, %v8106_v9 }
 0xf20   : > { %v8173_v6 = vadd.f32 %v8172_v8, %v8142_v46 }
 0xf22   : > { %v8204_v0 = vadd.f32 %v8203_v3, %v8173_v6 }
 0xf25   : > { %v8230_v52 = vpop.f32.mrf.mxu2  ;;  %v8261_v27 = vpop.f32.mrf.mxu3 }
 0xf26   : > { %v8231_v51 = vadd.f32 %v8230_v52, %v8198_v22 }
 0xf28   : > { %v8258_v63 = vadd.f32 %v8257_v61, %v8231_v51 }
 0xf2a   : > { %v8274_v19 = vsub.f32 %v8258_v63, %v8268_v40 }
 0xf2c   : > { %v8280_v45 = vmul.f32 2.0, %v8274_v19 }
 0xf2d   : > { %v8234_v58 = vpop.f32.mrf.mxu2 }
 0xf2e   : > { %v8282_v42 = vadd.f32 0.0009, %v8280_v45  ;;  %v8235_v18 = vadd.f32 %v8234_v58, %v8204_v0 }
 0xf30   : > { %v8284_v10 = vmul.f32 %v8282_v42, %v8278_v4  ;;  %v8262_v12 = vadd.f32 %v8261_v27, %v8235_v18 }
 0xf32   : > { %v8324_v29 = vmul.f32 %v8309_v23, %v8284_v10  ;;  %v8275_v24 = vsub.f32 %v8262_v12, %v8269_v48 }
 0xf34   : > { %8493 = vst.msk [vmem:[%s9398_s21 + $0x30] sm:$0xff] %vm301_vm0, %v8324_v29  ;;  %v8281_v26 = vmul.f32 2.0, %v8275_v24 }
 0xf36   : > { %v8283_v35 = vadd.f32 0.0009, %v8281_v26 }
 0xf38   : > { %v8285_v16 = vmul.f32 %v8283_v35, %v8279_v32 }
 0xf3a   : > { %v8325_v50 = vmul.f32 %v8323_v37, %v8285_v16 }
 0xf3c   : > { %8494 = vst.msk [vmem:[%s9398_s21 + $0x38] sm:$0xff] %vm301_vm0, %v8325_v50 }
 0xf3d   : > { %8748 = shalt.err (!%p8745_p11)
}
 0xf3e   : > { %s8805_s23 = smov 128   ;;  %s8806_s0 = smov 8  }
 0xf3f   : > { %8515 = dma.vmem_to_hbm [thread:$0]  (%p8904_p3), %s8343_s19, 1024, %s8345_s27, %s8330_s28, %s8805_s23, %s8805_s23, %s8806_s0  }
 0xf40 PF: > { %s8359_s30 = sand.u32 1, %s8787_s15   ;;  %p10493_p12 = scmp.ge.s32.totalorder %s8799_s18, 2 }
 0xf41   : > { %s8360_s26 = scalar_lea.sflag [#allocation4], %s8359_s30 }
 0xf42   : > { %p8532_p13 = pnand %p10493_p12, %p8867_p6 }
 0xf44   : > { %p8533_p0 = pneg %p8532_p13 }
 0xf46   : > { %8782 = dma.done.wait (%p8533_p0), %s8360_s26, 1024  }
 0xf47   : > { %8784 = vsyncadd (%p8533_p0), %s8360_s26, 4294966272  ;;  %p21_p5 = scmp.ge.s32.totalorder %s8894_s10, 4   ;;  %s10494_s15 = smov %s8791_s16 }
 0xf48   : > { %s10495_s16 = smov %s8795_s17  ;;  %s10496_s17 = smov %s8910_s14 }
 0xf49   : > { %s10497_s18 = smov %s8894_s10  ;;  %23 = sbr.rel (!%p21_p5) target bundleno = 12 (0xc), region = 111 }
 0xf4e   :  { %8366 = vsyncpa [#allocation3], 1 }
 0xf4f   :  { %8368 = vsyncpa [#allocation3 + $0x1], 1 }
 0xf50   :  { %8369 = vsyncpa [#allocation6], 1 }
 0xf51   :  { %8371 = vsyncpa [#allocation6 + $0x1], 1 }
 0xf52   :  { %8372 = vsyncpa [#allocation9], 1 }
 0xf53   :  { %8373 = vsyncpa [#allocation4], 1 }
 0xf54   :  { %8375 = vsyncpa [#allocation4 + $0x1], 1 }

</bundles_post_ra>
